<compile_context>
chip_gen: v7x
topology: tpu7x:2x2x1
jax: 0.10.0
libtpu: 0.0.40
codegen_flags: <defaults>
</compile_context>

<pallas_src>
import functools

import jax
import jax.numpy as jnp
from jax.experimental import pallas as pl
from jax.experimental.pallas import tpu as pltpu

EPS = 1e-5        # nn.LayerNorm default eps
NEG_INF = -1e30   # finite "-inf": identical softmax result, avoids NaN on fully-masked rows


def _decoder_block_kernel(*refs, num_heads, tgt_mode, has_kpm, matmul_dtype, head_split):
    it = iter(refs)
    x_ref = next(it)
    enc_ref = next(it)
    tgt_ref = next(it) if tgt_mode == "array" else None
    kpm_ref = next(it) if has_kpm else None
    (sa_qkv_w, sa_qkv_b, sa_ow, sa_ob,
     ca_q_w, ca_q_b, ca_kv_w, ca_kv_b, ca_ow, ca_ob,
     ln1g, ln1b, ln2g, ln2b, ln3g, ln3b,
     w1, b1, w2, b2, out_ref) = it

    f32 = jnp.float32
    cdt = matmul_dtype
    bb, S, E = x_ref.shape
    Se = enc_ref.shape[1]
    H = num_heads
    dh = E // H

    def matmul(a, w_ref, b_ref):
        # a: (N, in); w_ref pre-transposed (in, out) in matmul dtype; b_ref: (1, out) f32.
        return jnp.dot(a.astype(cdt), w_ref[...], preferred_element_type=f32) + b_ref[...]

    def layer_norm(z, g_ref, b_ref):
        mu = jnp.mean(z, axis=-1, keepdims=True)
        var = jnp.mean(jnp.square(z - mu), axis=-1, keepdims=True)
        return (z - mu) * jax.lax.rsqrt(var + EPS) * g_ref[...] + b_ref[...]

    def split_heads(z2d, off, seq):
        # (bb*seq, C)[:, off:off+E] (already matmul dtype) -> (H*bb, seq, dh)
        zc = z2d[:, off:off + E]
        if head_split == "einshape":
            zh = pltpu.einshape("n(hd)->hnd", zc, h=H)   # one XLU relayout, lane-layout aware
        else:
            zh = jnp.stack([zc[:, h * dh:(h + 1) * dh] for h in range(H)], axis=0)
        return zh.reshape(H * bb, seq, dh)

    def merge_heads(o, seq):
        # (H*bb, seq, dh) f32 -> (bb*seq, E) with heads concatenated along features
        oh = o.reshape(H, bb * seq, dh)
        if head_split == "einshape":
            return pltpu.einshape("hnd->n(hd)", oh)
        return jnp.concatenate([oh[h] for h in range(H)], axis=-1)

    def attention(q2d, kv2d, qoff, koff, voff, Sq, Sk, add_mask, out_w, out_b):
        # q2d/kv2d already in matmul dtype; 1/sqrt(dh) is folded into the Q weights/bias.
        qh = split_heads(q2d, qoff, Sq)
        kh = split_heads(kv2d, koff, Sk)
        vh = split_heads(kv2d, voff, Sk)
        s = jnp.einsum("bqd,bkd->bqk", qh, kh,
                       preferred_element_type=f32)               # (H*bb, Sq, Sk) f32
        if add_mask is not None:                                 # broadcast over (H, bb, Sq, Sk)
            s = (s.reshape(H, bb, Sq, Sk) + add_mask).reshape(H * bb, Sq, Sk)
        s = s - jnp.max(s, axis=-1, keepdims=True)
        p = jnp.exp(s)
        inv = pl.reciprocal(jnp.sum(p, axis=-1, keepdims=True), approx=True)  # EUP slot
        # TODO(synk): for long Sq/Sk, tile over Sk with an online-softmax (flash) inner loop so
        # s/p never materialize at (H*bb, Sq, Sk) -- mandatory at long context on v7x (64 MiB).
        o = jnp.einsum("bqk,bkd->bqd", p.astype(cdt), vh,
                       preferred_element_type=f32)               # (H*bb, Sq, dh) f32
        o = o * inv            # normalize AFTER PV: (.., dh) elementwise work, not (.., Sk)
        return matmul(merge_heads(o, Sq), out_w, out_b)

    x2d = x_ref[...].astype(f32).reshape(bb * S, E)
    enc2d = enc_ref[...].reshape(bb * Se, E)

    if tgt_mode == "causal":            # causal additive mask generated in-kernel (no DMA)
        rows = jax.lax.broadcasted_iota(jnp.int32, (S, S), 0)
        cols = jax.lax.broadcasted_iota(jnp.int32, (S, S), 1)
        tgt_add = jnp.where(rows >= cols, 0.0, NEG_INF).astype(f32)[None, None]
    elif tgt_mode == "array":
        tgt_add = tgt_ref[...].astype(f32)[None, None]           # (1, 1, S, S)
    else:
        tgt_add = None
    kpm_add = kpm_ref[...].astype(f32)[None] if has_kpm else None  # (1, bb, 1, Se)

    # ---- self-attention + residual + LayerNorm 1 (dropout == identity at inference) ----
    qkv = matmul(x2d, sa_qkv_w, sa_qkv_b).astype(cdt)            # fused QKV (bb*S, 3E), one cast
    sa = attention(qkv, qkv, 0, E, 2 * E, S, S, tgt_add, sa_ow, sa_ob)
    x1 = layer_norm(x2d + sa, ln1g, ln1b)

    # ---- cross-attention + residual + LayerNorm 2 ----
    qc = matmul(x1, ca_q_w, ca_q_b).astype(cdt)                  # (bb*S, E)
    kvc = matmul(enc2d, ca_kv_w, ca_kv_b).astype(cdt)            # fused K/V (bb*Se, 2E)
    ca = attention(qc, kvc, 0, 0, E, S, Se, kpm_add, ca_ow, ca_ob)
    x2 = layer_norm(x1 + ca, ln2g, ln2b)

    # ---- FFN (Linear -> ReLU -> Linear) + residual + LayerNorm 3 ----
    # TODO(synk): for very large ffn_hidden_dim keep w1/w2 in HBM (memory_space=pl.ANY) and
    # stream F-chunks with pltpu.emit_pipeline into a VMEM accumulator (v7x 64 MiB budget).
    hdn = jnp.maximum(matmul(x2, w1, b1), 0.0)
    ffn = matmul(hdn, w2, b2)
    x3 = layer_norm(x2 + ffn, ln3g, ln3b)

    out_ref[...] = x3.reshape(bb, S, E).astype(out_ref.dtype)


def _prep_weights(params, E, num_heads, matmul_dtype):
    """Host-side layout plumbing: transpose to (in,out), fuse/split QKV, fold 1/sqrt(dh) into
    the Q projections, cast matmul weights to the matmul dtype."""
    f32 = jnp.float32
    mdt = matmul_dtype
    dh = E // num_heads
    scale = 1.0 / (dh ** 0.5)

    sa_in_w = params["sa_in_w"].astype(f32)                      # PyTorch packed (3E, E)
    sa_in_b = params["sa_in_b"].reshape(1, 3 * E).astype(f32)
    sa_qkv_w = sa_in_w.T.at[:, :E].multiply(scale)               # (E, 3E), Q columns pre-scaled
    sa_qkv_b = sa_in_b.at[:, :E].multiply(scale)

    ca_in_w = params["ca_in_w"].astype(f32)
    ca_in_b = params["ca_in_b"].reshape(1, 3 * E).astype(f32)
    ca_q_w = ca_in_w[:E].T * scale                               # (E, E) cross Q, pre-scaled
    ca_q_b = ca_in_b[:, :E] * scale
    ca_kv_w = ca_in_w[E:].T                                      # (E, 2E) fused cross K/V

    return [
        sa_qkv_w.astype(mdt), sa_qkv_b,
        params["sa_out_w"].T.astype(mdt), params["sa_out_b"].reshape(1, E).astype(f32),
        ca_q_w.astype(mdt), ca_q_b,
        ca_kv_w.astype(mdt), ca_in_b[:, E:],
        params["ca_out_w"].T.astype(mdt), params["ca_out_b"].reshape(1, E).astype(f32),
        params["ln1_g"].reshape(1, E).astype(f32), params["ln1_b"].reshape(1, E).astype(f32),
        params["ln2_g"].reshape(1, E).astype(f32), params["ln2_b"].reshape(1, E).astype(f32),
        params["ln3_g"].reshape(1, E).astype(f32), params["ln3_b"].reshape(1, E).astype(f32),
        params["ffn_w1"].T.astype(mdt), params["ffn_b1"].reshape(1, -1).astype(f32),
        params["ffn_w2"].T.astype(mdt), params["ffn_b2"].reshape(1, E).astype(f32),
    ]


def _default_batch_block(B):
    """Pick batch_block so the grid has 2-8 steps: activation DMA/writeback overlaps compute
    (double-buffered BlockSpecs) and both v7x TensorCores get work, while per-step blocks stay
    big enough to amortize the ~0.35us step overhead.  Pass batch_block= explicitly to shrink
    the per-step working set for tight VMEM (esp. v7x: 64 MiB)."""
    if B == 1:
        return 1
    for steps in (4, 2, 8, 6, 3, 5, 7):
        if B % steps == 0:
            return B // steps
    return 1


def _vmem_limit_bytes():
    """~85% of this chip's physical VMEM (v5e/v6e: 128 MiB -> ~109 MiB, v7x: 64 MiB -> ~54 MiB)
    instead of a hardcoded 32 MiB."""
    try:
        cap = int(pltpu.get_tpu_info().vmem_capacity_bytes)
    except Exception:
        cap = 64 * 1024 * 1024        # conservative (v7x-sized) fallback
    return int(cap * 0.85)


_CONFIGS = (
    # Most -> least optimized; later entries only used if this jax/libtpu build cannot lower
    # pltpu.einshape or BlockSpec(pipeline_mode=pl.Buffered(1)).
    dict(head_split="einshape", single_buffer_weights=True),
    dict(head_split="einshape", single_buffer_weights=False),
    dict(head_split="slice", single_buffer_weights=True),
    dict(head_split="slice", single_buffer_weights=False),
)
_CONFIG_START = 0


def transformer_decoder_block(x, encoder_outputs, params, *, num_heads,
                              src_key_padding_mask=None, tgt_mask=None,
                              matmul_dtype=jnp.bfloat16, batch_block=None):
    global _CONFIG_START
    B, S, E = x.shape
    Be, Se, Ee = encoder_outputs.shape
    assert Be == B and Ee == E and E % num_heads == 0
    # NOTE: for production shapes keep E, S, Se multiples of 128 (lane-dense loads/stores) and
    # batch_block*S a multiple of 128 (v5e) / 256 (v6e, v7x) for full MXU occupancy.
    f32 = jnp.float32

    bb = _default_batch_block(B) if batch_block is None else batch_block
    assert B % bb == 0, "batch_block must divide batch size"

    # Target (self-attn) mask: generated in-kernel when causal; DMA'd only when arbitrary.
    if tgt_mask is None:
        tgt_mode, tgt_add = "none", None
    elif isinstance(tgt_mask, str):
        assert tgt_mask == "causal"
        tgt_mode, tgt_add = "causal", None
    else:
        tgt_mode = "array"
        if tgt_mask.dtype == jnp.bool_:
            tgt_add = jnp.where(tgt_mask, NEG_INF, 0.0).astype(f32)
        else:
            tgt_add = jnp.maximum(tgt_mask.astype(f32), NEG_INF)   # clamp literal -inf

    has_kpm = src_key_padding_mask is not None
    if has_kpm:
        if src_key_padding_mask.dtype == jnp.bool_:
            kpm_add = jnp.where(src_key_padding_mask, NEG_INF, 0.0)
        else:
            kpm_add = jnp.maximum(src_key_padding_mask.astype(f32), NEG_INF)
        kpm_add = kpm_add.astype(f32).reshape(B, 1, Se)

    weights = _prep_weights(params, E, num_heads, matmul_dtype)
    F = weights[16].shape[1]                                       # ffn_w1 is (E, F)

    in_arrays = [x, encoder_outputs]
    if tgt_mode == "array":
        in_arrays.append(tgt_add)
    if has_kpm:
        in_arrays.append(kpm_add)
    in_arrays += weights

    # Advisory cost estimate so XLA schedules surrounding ops around the fused block.
    H = num_heads
    flops = 2 * B * S * E * 3 * E                                  # self QKV projection
    flops += 2 * 2 * B * S * S * E                                 # self scores + PV
    flops += 2 * B * S * E * E                                     # self out proj
    flops += 2 * B * S * E * E + 2 * B * Se * E * 2 * E            # cross Q + K/V projections
    flops += 2 * 2 * B * S * Se * E                                # cross scores + PV
    flops += 2 * B * S * E * E                                     # cross out proj
    flops += 2 * 2 * B * S * E * F                                 # FFN
    transcendentals = B * H * S * (S + Se) + 3 * B * S
    bytes_accessed = sum(int(a.size) * a.dtype.itemsize for a in in_arrays)
    bytes_accessed += B * S * E * x.dtype.itemsize
    cost = pl.CostEstimate(flops=int(flops), transcendentals=int(transcendentals),
                           bytes_accessed=int(bytes_accessed))
    vmem_limit = _vmem_limit_bytes()

    def build(head_split, single_buffer_weights):
        def const_spec(arr):
            # Constant-index blocks (weights/bias/LN/tgt mask): one VMEM buffer suffices —
            # halves weight residency vs the default double-buffering.
            nd = arr.ndim
            kw = {"pipeline_mode": pl.Buffered(1)} if single_buffer_weights else {}
            return pl.BlockSpec(arr.shape, lambda b, _nd=nd: (0,) * _nd, **kw)

        in_specs = [pl.BlockSpec((bb, S, E), lambda b: (b, 0, 0)),
                    pl.BlockSpec((bb, Se, E), lambda b: (b, 0, 0))]
        if tgt_mode == "array":
            in_specs.append(const_spec(tgt_add))
        if has_kpm:
            in_specs.append(pl.BlockSpec((bb, 1, Se), lambda b: (b, 0, 0)))
        in_specs += [const_spec(w) for w in weights]

        kernel = functools.partial(
            _decoder_block_kernel, num_heads=num_heads, tgt_mode=tgt_mode,
            has_kpm=has_kpm, matmul_dtype=matmul_dtype, head_split=head_split)

        return pl.pallas_call(
            kernel,
            out_shape=jax.ShapeDtypeStruct((B, S, E), x.dtype),
            grid=(B // bb,),
            in_specs=in_specs,
            out_specs=pl.BlockSpec((bb, S, E), lambda b: (b, 0, 0)),
            compiler_params=pltpu.CompilerParams(
                dimension_semantics=("parallel",),
                vmem_limit_bytes=vmem_limit),
            cost_estimate=cost)

    last_err = None
    for idx in range(_CONFIG_START, len(_CONFIGS)):
        try:
            out = build(**_CONFIGS[idx])(*in_arrays)
            _CONFIG_START = idx           # cache the first config this jax/libtpu build supports
            return out
        except Exception as err:          # unsupported lowering feature -> try next config
            last_err = err
    raise last_err


def transformer_decoder(x, encoder_outputs, layer_params, *, num_heads,
                        src_key_padding_mask=None, tgt_mask=None, **kwargs):
    """Stack of decoder blocks (nn.TransformerDecoder-style loop over layers)."""
    # TODO(synk): on v5e (~820 GB/s HBM) small-batch decode is weight-DMA bound; hide layer
    # i+1's weight fetch behind layer i via the cross-pallas_call semaphore/VMEM-future pattern.
    for params in layer_params:
        x = transformer_decoder_block(
            x, encoder_outputs, params, num_heads=num_heads,
            src_key_padding_mask=src_key_padding_mask, tgt_mask=tgt_mask, **kwargs)
    return x


def init_params(key, embedding_dim, ffn_hidden_dim):
    E, F = embedding_dim, ffn_hidden_dim
    ks = jax.random.split(key, 12)
    rnd = lambda k, shape: (0.02 * jax.random.normal(k, shape)).astype(jnp.float32)
    return dict(
        sa_in_w=rnd(ks[0], (3 * E, E)), sa_in_b=rnd(ks[1], (1, 3 * E)),
        sa_out_w=rnd(ks[2], (E, E)),    sa_out_b=rnd(ks[3], (1, E)),
        ca_in_w=rnd(ks[4], (3 * E, E)), ca_in_b=rnd(ks[5], (1, 3 * E)),
        ca_out_w=rnd(ks[6], (E, E)),    ca_out_b=rnd(ks[7], (1, E)),
        ln1_g=jnp.ones((1, E), jnp.float32), ln1_b=jnp.zeros((1, E), jnp.float32),
        ln2_g=jnp.ones((1, E), jnp.float32), ln2_b=jnp.zeros((1, E), jnp.float32),
        ln3_g=jnp.ones((1, E), jnp.float32), ln3_b=jnp.zeros((1, E), jnp.float32),
        ffn_w1=rnd(ks[8], (F, E)),  ffn_b1=rnd(ks[9], (1, F)),
        ffn_w2=rnd(ks[10], (E, F)), ffn_b2=rnd(ks[11], (1, E)),
    )


if __name__ == "__main__":
    B, S_dec, S_enc = 2, 8, 16
    E, H, F = 32, 4, 64
    num_layers = 2

    key = jax.random.PRNGKey(0)
    kx, kenc, kp = jax.random.split(key, 3)
    x = jax.random.normal(kx, (B, S_dec, E), jnp.float32)
    enc_out = jax.random.normal(kenc, (B, S_enc, E), jnp.float32)
    layer_params = [init_params(k, E, F) for k in jax.random.split(kp, num_layers)]

    # Key-padding mask: pad out the last 4 encoder positions of batch element 1.
    src_kpm = jnp.zeros((B, S_enc), jnp.bool_).at[1, -4:].set(True)

    out = transformer_decoder(
        x, enc_out, layer_params, num_heads=H,
        src_key_padding_mask=src_kpm,
        tgt_mask="causal",   # causal additive mask generated inside the kernel (no (S,S) DMA)
    )
    out = jax.block_until_ready(out)
    assert out.shape == (B, S_dec, E) and bool(jnp.isfinite(out).all())
    print("KERNEL_OK")
</pallas_src>

<mosaic_0001>
module attributes {stable_mosaic.version = 11 : i64} {
  func.func @_decoder_block_kernel(%arg0: i32, %arg1: memref<1x8x32xf32, #tpu.memory_space<vmem>>, %arg2: memref<1x16x32xf32, #tpu.memory_space<vmem>>, %arg3: memref<1x1x16xf32, #tpu.memory_space<vmem>>, %arg4: memref<32x96xbf16, #tpu.memory_space<vmem>>, %arg5: memref<1x96xf32, #tpu.memory_space<vmem>>, %arg6: memref<32x32xbf16, #tpu.memory_space<vmem>>, %arg7: memref<1x32xf32, #tpu.memory_space<vmem>>, %arg8: memref<32x32xbf16, #tpu.memory_space<vmem>>, %arg9: memref<1x32xf32, #tpu.memory_space<vmem>>, %arg10: memref<32x64xbf16, #tpu.memory_space<vmem>>, %arg11: memref<1x64xf32, #tpu.memory_space<vmem>>, %arg12: memref<32x32xbf16, #tpu.memory_space<vmem>>, %arg13: memref<1x32xf32, #tpu.memory_space<vmem>>, %arg14: memref<1x32xf32, #tpu.memory_space<vmem>>, %arg15: memref<1x32xf32, #tpu.memory_space<vmem>>, %arg16: memref<1x32xf32, #tpu.memory_space<vmem>>, %arg17: memref<1x32xf32, #tpu.memory_space<vmem>>, %arg18: memref<1x32xf32, #tpu.memory_space<vmem>>, %arg19: memref<1x32xf32, #tpu.memory_space<vmem>>, %arg20: memref<32x64xbf16, #tpu.memory_space<vmem>>, %arg21: memref<1x64xf32, #tpu.memory_space<vmem>>, %arg22: memref<64x32xbf16, #tpu.memory_space<vmem>>, %arg23: memref<1x32xf32, #tpu.memory_space<vmem>>, %arg24: memref<1x8x32xf32, #tpu.memory_space<vmem>>) attributes {dimension_semantics = [#tpu.dimension_semantics<parallel>], iteration_bounds = array<i64: 2>, scalar_prefetch = 0 : i64, scratch_operands = 0 : i64, tpu.core_type = #tpu.core_type<tc>, window_params = [{transform_indices = @transform_0, window_bounds = array<i64: 1, 8, 32>}, {transform_indices = @transform_1, window_bounds = array<i64: 1, 16, 32>}, {transform_indices = @transform_2, window_bounds = array<i64: 1, 1, 16>}, {pipeline_mode = #tpu.pipeline_mode<synchronous>, transform_indices = @transform_3, window_bounds = array<i64: 32, 96>}, {pipeline_mode = #tpu.pipeline_mode<synchronous>, transform_indices = @transform_4, window_bounds = array<i64: 1, 96>}, {pipeline_mode = #tpu.pipeline_mode<synchronous>, transform_indices = @transform_5, window_bounds = array<i64: 32, 32>}, {pipeline_mode = #tpu.pipeline_mode<synchronous>, transform_indices = @transform_6, window_bounds = array<i64: 1, 32>}, {pipeline_mode = #tpu.pipeline_mode<synchronous>, transform_indices = @transform_7, window_bounds = array<i64: 32, 32>}, {pipeline_mode = #tpu.pipeline_mode<synchronous>, transform_indices = @transform_8, window_bounds = array<i64: 1, 32>}, {pipeline_mode = #tpu.pipeline_mode<synchronous>, transform_indices = @transform_9, window_bounds = array<i64: 32, 64>}, {pipeline_mode = #tpu.pipeline_mode<synchronous>, transform_indices = @transform_10, window_bounds = array<i64: 1, 64>}, {pipeline_mode = #tpu.pipeline_mode<synchronous>, transform_indices = @transform_11, window_bounds = array<i64: 32, 32>}, {pipeline_mode = #tpu.pipeline_mode<synchronous>, transform_indices = @transform_12, window_bounds = array<i64: 1, 32>}, {pipeline_mode = #tpu.pipeline_mode<synchronous>, transform_indices = @transform_13, window_bounds = array<i64: 1, 32>}, {pipeline_mode = #tpu.pipeline_mode<synchronous>, transform_indices = @transform_14, window_bounds = array<i64: 1, 32>}, {pipeline_mode = #tpu.pipeline_mode<synchronous>, transform_indices = @transform_15, window_bounds = array<i64: 1, 32>}, {pipeline_mode = #tpu.pipeline_mode<synchronous>, transform_indices = @transform_16, window_bounds = array<i64: 1, 32>}, {pipeline_mode = #tpu.pipeline_mode<synchronous>, transform_indices = @transform_17, window_bounds = array<i64: 1, 32>}, {pipeline_mode = #tpu.pipeline_mode<synchronous>, transform_indices = @transform_18, window_bounds = array<i64: 1, 32>}, {pipeline_mode = #tpu.pipeline_mode<synchronous>, transform_indices = @transform_19, window_bounds = array<i64: 32, 64>}, {pipeline_mode = #tpu.pipeline_mode<synchronous>, transform_indices = @transform_20, window_bounds = array<i64: 1, 64>}, {pipeline_mode = #tpu.pipeline_mode<synchronous>, transform_indices = @transform_21, window_bounds = array<i64: 64, 32>}, {pipeline_mode = #tpu.pipeline_mode<synchronous>, transform_indices = @transform_22, window_bounds = array<i64: 1, 32>}, {transform_indices = @transform_23, window_bounds = array<i64: 1, 8, 32>}]} {
    %c0 = arith.constant 0 : index
    %c0_0 = arith.constant 0 : index
    %c0_1 = arith.constant 0 : index
    %0 = vector.load %arg1[%c0, %c0_0, %c0_1] : memref<1x8x32xf32, #tpu.memory_space<vmem>>, vector<1x8x32xf32>
    %1 = vector.shape_cast %0 : vector<1x8x32xf32> to vector<8x32xf32>
    %c0_2 = arith.constant 0 : index
    %c0_3 = arith.constant 0 : index
    %c0_4 = arith.constant 0 : index
    %2 = vector.load %arg2[%c0_2, %c0_3, %c0_4] : memref<1x16x32xf32, #tpu.memory_space<vmem>>, vector<1x16x32xf32>
    %3 = vector.shape_cast %2 : vector<1x16x32xf32> to vector<16x32xf32>
    %4 = tpu.iota {dimensions = array<i32: 0>} : vector<8x8xi32>
    %5 = tpu.iota {dimensions = array<i32: 1>} : vector<8x8xi32>
    %6 = arith.cmpi sge, %4, %5 : vector<8x8xi32>
    %cst = arith.constant 0.000000e+00 : f32
    %cst_5 = arith.constant -1.000000e+30 : f32
    %7 = vector.broadcast %cst : f32 to vector<8x8xf32>
    %8 = vector.broadcast %cst_5 : f32 to vector<8x8xf32>
    %9 = arith.select %6, %7, %8 : vector<8x8xi1>, vector<8x8xf32>
    %10 = vector.shape_cast %9 : vector<8x8xf32> to vector<1x1x8x8xf32>
    %c0_6 = arith.constant 0 : index
    %c0_7 = arith.constant 0 : index
    %c0_8 = arith.constant 0 : index
    %11 = vector.load %arg3[%c0_6, %c0_7, %c0_8] : memref<1x1x16xf32, #tpu.memory_space<vmem>>, vector<1x1x16xf32>
    %12 = vector.shape_cast %11 : vector<1x1x16xf32> to vector<1x1x1x16xf32>
    %13 = arith.truncf %1 : vector<8x32xf32> to vector<8x32xbf16>
    %c0_9 = arith.constant 0 : index
    %c0_10 = arith.constant 0 : index
    %14 = vector.load %arg4[%c0_9, %c0_10] : memref<32x96xbf16, #tpu.memory_space<vmem>>, vector<32x96xbf16>
    %cst_11 = arith.constant dense<0.000000e+00> : vector<8x96xf32>
    %15 = tpu.matmul %13, %14, %cst_11 {dimension_numbers = #tpu.dot_dimension_numbers<[1], [0], [0], [1], [0, 0, 1, 1], [], []>} : vector<8x32xbf16>, vector<32x96xbf16>, vector<8x96xf32> -> vector<8x96xf32>
    %c0_12 = arith.constant 0 : index
    %c0_13 = arith.constant 0 : index
    %16 = vector.load %arg5[%c0_12, %c0_13] : memref<1x96xf32, #tpu.memory_space<vmem>>, vector<1x96xf32>
    %17 = vector.broadcast %16 : vector<1x96xf32> to vector<8x96xf32>
    %18 = arith.addf %15, %17 : vector<8x96xf32>
    %19 = arith.truncf %18 : vector<8x96xf32> to vector<8x96xbf16>
    %20 = vector.extract_strided_slice %19 {offsets = [0, 0], sizes = [8, 32], strides = [1, 1]} : vector<8x96xbf16> to vector<8x32xbf16>
    %21 = vector.extract_strided_slice %20 {offsets = [0, 0], sizes = [8, 8], strides = [1, 1]} : vector<8x32xbf16> to vector<8x8xbf16>
    %22 = vector.extract_strided_slice %20 {offsets = [0, 8], sizes = [8, 8], strides = [1, 1]} : vector<8x32xbf16> to vector<8x8xbf16>
    %23 = vector.extract_strided_slice %20 {offsets = [0, 16], sizes = [8, 8], strides = [1, 1]} : vector<8x32xbf16> to vector<8x8xbf16>
    %24 = vector.extract_strided_slice %20 {offsets = [0, 24], sizes = [8, 8], strides = [1, 1]} : vector<8x32xbf16> to vector<8x8xbf16>
    %25 = vector.shape_cast %21 : vector<8x8xbf16> to vector<1x8x8xbf16>
    %26 = vector.shape_cast %22 : vector<8x8xbf16> to vector<1x8x8xbf16>
    %27 = vector.shape_cast %23 : vector<8x8xbf16> to vector<1x8x8xbf16>
    %28 = vector.shape_cast %24 : vector<8x8xbf16> to vector<1x8x8xbf16>
    %29 = tpu.concatenate %25, %26, %27, %28 in 0 : vector<1x8x8xbf16>, vector<1x8x8xbf16>, vector<1x8x8xbf16>, vector<1x8x8xbf16> -> vector<4x8x8xbf16>
    %30 = vector.extract_strided_slice %19 {offsets = [0, 32], sizes = [8, 32], strides = [1, 1]} : vector<8x96xbf16> to vector<8x32xbf16>
    %31 = vector.extract_strided_slice %30 {offsets = [0, 0], sizes = [8, 8], strides = [1, 1]} : vector<8x32xbf16> to vector<8x8xbf16>
    %32 = vector.extract_strided_slice %30 {offsets = [0, 8], sizes = [8, 8], strides = [1, 1]} : vector<8x32xbf16> to vector<8x8xbf16>
    %33 = vector.extract_strided_slice %30 {offsets = [0, 16], sizes = [8, 8], strides = [1, 1]} : vector<8x32xbf16> to vector<8x8xbf16>
    %34 = vector.extract_strided_slice %30 {offsets = [0, 24], sizes = [8, 8], strides = [1, 1]} : vector<8x32xbf16> to vector<8x8xbf16>
    %35 = vector.shape_cast %31 : vector<8x8xbf16> to vector<1x8x8xbf16>
    %36 = vector.shape_cast %32 : vector<8x8xbf16> to vector<1x8x8xbf16>
    %37 = vector.shape_cast %33 : vector<8x8xbf16> to vector<1x8x8xbf16>
    %38 = vector.shape_cast %34 : vector<8x8xbf16> to vector<1x8x8xbf16>
    %39 = tpu.concatenate %35, %36, %37, %38 in 0 : vector<1x8x8xbf16>, vector<1x8x8xbf16>, vector<1x8x8xbf16>, vector<1x8x8xbf16> -> vector<4x8x8xbf16>
    %40 = vector.extract_strided_slice %19 {offsets = [0, 64], sizes = [8, 32], strides = [1, 1]} : vector<8x96xbf16> to vector<8x32xbf16>
    %41 = vector.extract_strided_slice %40 {offsets = [0, 0], sizes = [8, 8], strides = [1, 1]} : vector<8x32xbf16> to vector<8x8xbf16>
    %42 = vector.extract_strided_slice %40 {offsets = [0, 8], sizes = [8, 8], strides = [1, 1]} : vector<8x32xbf16> to vector<8x8xbf16>
    %43 = vector.extract_strided_slice %40 {offsets = [0, 16], sizes = [8, 8], strides = [1, 1]} : vector<8x32xbf16> to vector<8x8xbf16>
    %44 = vector.extract_strided_slice %40 {offsets = [0, 24], sizes = [8, 8], strides = [1, 1]} : vector<8x32xbf16> to vector<8x8xbf16>
    %45 = vector.shape_cast %41 : vector<8x8xbf16> to vector<1x8x8xbf16>
    %46 = vector.shape_cast %42 : vector<8x8xbf16> to vector<1x8x8xbf16>
    %47 = vector.shape_cast %43 : vector<8x8xbf16> to vector<1x8x8xbf16>
    %48 = vector.shape_cast %44 : vector<8x8xbf16> to vector<1x8x8xbf16>
    %49 = tpu.concatenate %45, %46, %47, %48 in 0 : vector<1x8x8xbf16>, vector<1x8x8xbf16>, vector<1x8x8xbf16>, vector<1x8x8xbf16> -> vector<4x8x8xbf16>
    "tpu.trace_start"() <{level = 10 : i32, message = "bqd,bkd->bqk"}> : () -> ()
    %cst_14 = arith.constant dense<0.000000e+00> : vector<4x8x8xf32>
    %50 = tpu.matmul %29, %39, %cst_14 {dimension_numbers = #tpu.dot_dimension_numbers<[2], [2], [1], [1], [0, 0, 0, 1, 1, 1], [0], [0]>} : vector<4x8x8xbf16>, vector<4x8x8xbf16>, vector<4x8x8xf32> -> vector<4x8x8xf32>
    "tpu.trace_stop"() : () -> ()
    %51 = vector.shape_cast %50 : vector<4x8x8xf32> to vector<4x1x8x8xf32>
    %52 = vector.broadcast %10 : vector<1x1x8x8xf32> to vector<4x1x8x8xf32>
    %53 = arith.addf %51, %52 : vector<4x1x8x8xf32>
    %54 = vector.shape_cast %53 : vector<4x1x8x8xf32> to vector<4x8x8xf32>
    %cst_15 = arith.constant dense<0xFF800000> : vector<4x8xf32>
    %55 = vector.multi_reduction <maximumf>, %54, %cst_15 [2] : vector<4x8x8xf32> to vector<4x8xf32>
    %56 = vector.shape_cast %55 : vector<4x8xf32> to vector<4x8x1xf32>
    %57 = vector.broadcast %56 : vector<4x8x1xf32> to vector<4x8x8xf32>
    %58 = arith.subf %54, %57 : vector<4x8x8xf32>
    %59 = math.exp %58 : vector<4x8x8xf32>
    %cst_16 = arith.constant dense<0.000000e+00> : vector<4x8xf32>
    %60 = vector.multi_reduction <add>, %59, %cst_16 [2] : vector<4x8x8xf32> to vector<4x8xf32>
    %61 = vector.shape_cast %60 : vector<4x8xf32> to vector<4x8x1xf32>
    %62 = tpu.reciprocal %61 {approx = true} : vector<4x8x1xf32> -> vector<4x8x1xf32>
    %63 = arith.truncf %59 : vector<4x8x8xf32> to vector<4x8x8xbf16>
    "tpu.trace_start"() <{level = 10 : i32, message = "bqk,bkd->bqd"}> : () -> ()
    %cst_17 = arith.constant dense<0.000000e+00> : vector<4x8x8xf32>
    %64 = tpu.matmul %63, %49, %cst_17 {dimension_numbers = #tpu.dot_dimension_numbers<[2], [1], [1], [2], [0, 0, 0, 1, 1, 2], [0], [0]>} : vector<4x8x8xbf16>, vector<4x8x8xbf16>, vector<4x8x8xf32> -> vector<4x8x8xf32>
    "tpu.trace_stop"() : () -> ()
    %65 = vector.broadcast %62 : vector<4x8x1xf32> to vector<4x8x8xf32>
    %66 = arith.mulf %64, %65 : vector<4x8x8xf32>
    %67 = vector.extract_strided_slice %66 {offsets = [0, 0, 0], sizes = [1, 8, 8], strides = [1, 1, 1]} : vector<4x8x8xf32> to vector<1x8x8xf32>
    %68 = vector.shape_cast %67 : vector<1x8x8xf32> to vector<8x8xf32>
    %69 = vector.extract_strided_slice %66 {offsets = [1, 0, 0], sizes = [1, 8, 8], strides = [1, 1, 1]} : vector<4x8x8xf32> to vector<1x8x8xf32>
    %70 = vector.shape_cast %69 : vector<1x8x8xf32> to vector<8x8xf32>
    %71 = vector.extract_strided_slice %66 {offsets = [2, 0, 0], sizes = [1, 8, 8], strides = [1, 1, 1]} : vector<4x8x8xf32> to vector<1x8x8xf32>
    %72 = vector.shape_cast %71 : vector<1x8x8xf32> to vector<8x8xf32>
    %73 = vector.extract_strided_slice %66 {offsets = [3, 0, 0], sizes = [1, 8, 8], strides = [1, 1, 1]} : vector<4x8x8xf32> to vector<1x8x8xf32>
    %74 = vector.shape_cast %73 : vector<1x8x8xf32> to vector<8x8xf32>
    %75 = tpu.concatenate %68, %70, %72, %74 in 1 : vector<8x8xf32>, vector<8x8xf32>, vector<8x8xf32>, vector<8x8xf32> -> vector<8x32xf32>
    %76 = arith.truncf %75 : vector<8x32xf32> to vector<8x32xbf16>
    %c0_18 = arith.constant 0 : index
    %c0_19 = arith.constant 0 : index
    %77 = vector.load %arg6[%c0_18, %c0_19] : memref<32x32xbf16, #tpu.memory_space<vmem>>, vector<32x32xbf16>
    %cst_20 = arith.constant dense<0.000000e+00> : vector<8x32xf32>
    %78 = tpu.matmul %76, %77, %cst_20 {dimension_numbers = #tpu.dot_dimension_numbers<[1], [0], [0], [1], [0, 0, 1, 1], [], []>} : vector<8x32xbf16>, vector<32x32xbf16>, vector<8x32xf32> -> vector<8x32xf32>
    %c0_21 = arith.constant 0 : index
    %c0_22 = arith.constant 0 : index
    %79 = vector.load %arg7[%c0_21, %c0_22] : memref<1x32xf32, #tpu.memory_space<vmem>>, vector<1x32xf32>
    %80 = vector.broadcast %79 : vector<1x32xf32> to vector<8x32xf32>
    %81 = arith.addf %78, %80 : vector<8x32xf32>
    %82 = arith.addf %1, %81 : vector<8x32xf32>
    %cst_23 = arith.constant dense<0.000000e+00> : vector<8xf32>
    %83 = vector.multi_reduction <add>, %82, %cst_23 [1] : vector<8x32xf32> to vector<8xf32>
    %84 = vector.shape_cast %83 : vector<8xf32> to vector<8x1xf32>
    %cst_24 = arith.constant 3.200000e+01 : f32
    %85 = vector.broadcast %cst_24 : f32 to vector<8x1xf32>
    %86 = arith.divf %84, %85 : vector<8x1xf32>
    %87 = vector.broadcast %86 : vector<8x1xf32> to vector<8x32xf32>
    %88 = arith.subf %82, %87 : vector<8x32xf32>
    %89 = arith.mulf %88, %88 : vector<8x32xf32>
    %cst_25 = arith.constant dense<0.000000e+00> : vector<8xf32>
    %90 = vector.multi_reduction <add>, %89, %cst_25 [1] : vector<8x32xf32> to vector<8xf32>
    %91 = vector.shape_cast %90 : vector<8xf32> to vector<8x1xf32>
    %cst_26 = arith.constant 3.200000e+01 : f32
    %92 = vector.broadcast %cst_26 : f32 to vector<8x1xf32>
    %93 = arith.divf %91, %92 : vector<8x1xf32>
    %94 = vector.broadcast %86 : vector<8x1xf32> to vector<8x32xf32>
    %95 = arith.subf %82, %94 : vector<8x32xf32>
    %cst_27 = arith.constant 9.99999974E-6 : f32
    %96 = vector.broadcast %cst_27 : f32 to vector<8x1xf32>
    %97 = arith.addf %93, %96 : vector<8x1xf32>
    %98 = math.rsqrt %97 : vector<8x1xf32>
    %99 = vector.broadcast %98 : vector<8x1xf32> to vector<8x32xf32>
    %100 = arith.mulf %95, %99 : vector<8x32xf32>
    %c0_28 = arith.constant 0 : index
    %c0_29 = arith.constant 0 : index
    %101 = vector.load %arg14[%c0_28, %c0_29] : memref<1x32xf32, #tpu.memory_space<vmem>>, vector<1x32xf32>
    %102 = vector.broadcast %101 : vector<1x32xf32> to vector<8x32xf32>
    %103 = arith.mulf %100, %102 : vector<8x32xf32>
    %c0_30 = arith.constant 0 : index
    %c0_31 = arith.constant 0 : index
    %104 = vector.load %arg15[%c0_30, %c0_31] : memref<1x32xf32, #tpu.memory_space<vmem>>, vector<1x32xf32>
    %105 = vector.broadcast %104 : vector<1x32xf32> to vector<8x32xf32>
    %106 = arith.addf %103, %105 : vector<8x32xf32>
    %107 = arith.truncf %106 : vector<8x32xf32> to vector<8x32xbf16>
    %c0_32 = arith.constant 0 : index
    %c0_33 = arith.constant 0 : index
    %108 = vector.load %arg8[%c0_32, %c0_33] : memref<32x32xbf16, #tpu.memory_space<vmem>>, vector<32x32xbf16>
    %cst_34 = arith.constant dense<0.000000e+00> : vector<8x32xf32>
    %109 = tpu.matmul %107, %108, %cst_34 {dimension_numbers = #tpu.dot_dimension_numbers<[1], [0], [0], [1], [0, 0, 1, 1], [], []>} : vector<8x32xbf16>, vector<32x32xbf16>, vector<8x32xf32> -> vector<8x32xf32>
    %c0_35 = arith.constant 0 : index
    %c0_36 = arith.constant 0 : index
    %110 = vector.load %arg9[%c0_35, %c0_36] : memref<1x32xf32, #tpu.memory_space<vmem>>, vector<1x32xf32>
    %111 = vector.broadcast %110 : vector<1x32xf32> to vector<8x32xf32>
    %112 = arith.addf %109, %111 : vector<8x32xf32>
    %113 = arith.truncf %112 : vector<8x32xf32> to vector<8x32xbf16>
    %114 = arith.truncf %3 : vector<16x32xf32> to vector<16x32xbf16>
    %c0_37 = arith.constant 0 : index
    %c0_38 = arith.constant 0 : index
    %115 = vector.load %arg10[%c0_37, %c0_38] : memref<32x64xbf16, #tpu.memory_space<vmem>>, vector<32x64xbf16>
    %cst_39 = arith.constant dense<0.000000e+00> : vector<16x64xf32>
    %116 = tpu.matmul %114, %115, %cst_39 {dimension_numbers = #tpu.dot_dimension_numbers<[1], [0], [0], [1], [0, 0, 1, 1], [], []>} : vector<16x32xbf16>, vector<32x64xbf16>, vector<16x64xf32> -> vector<16x64xf32>
    %c0_40 = arith.constant 0 : index
    %c0_41 = arith.constant 0 : index
    %117 = vector.load %arg11[%c0_40, %c0_41] : memref<1x64xf32, #tpu.memory_space<vmem>>, vector<1x64xf32>
    %118 = vector.broadcast %117 : vector<1x64xf32> to vector<16x64xf32>
    %119 = arith.addf %116, %118 : vector<16x64xf32>
    %120 = arith.truncf %119 : vector<16x64xf32> to vector<16x64xbf16>
    %121 = vector.extract_strided_slice %113 {offsets = [0, 0], sizes = [8, 8], strides = [1, 1]} : vector<8x32xbf16> to vector<8x8xbf16>
    %122 = vector.extract_strided_slice %113 {offsets = [0, 8], sizes = [8, 8], strides = [1, 1]} : vector<8x32xbf16> to vector<8x8xbf16>
    %123 = vector.extract_strided_slice %113 {offsets = [0, 16], sizes = [8, 8], strides = [1, 1]} : vector<8x32xbf16> to vector<8x8xbf16>
    %124 = vector.extract_strided_slice %113 {offsets = [0, 24], sizes = [8, 8], strides = [1, 1]} : vector<8x32xbf16> to vector<8x8xbf16>
    %125 = vector.shape_cast %121 : vector<8x8xbf16> to vector<1x8x8xbf16>
    %126 = vector.shape_cast %122 : vector<8x8xbf16> to vector<1x8x8xbf16>
    %127 = vector.shape_cast %123 : vector<8x8xbf16> to vector<1x8x8xbf16>
    %128 = vector.shape_cast %124 : vector<8x8xbf16> to vector<1x8x8xbf16>
    %129 = tpu.concatenate %125, %126, %127, %128 in 0 : vector<1x8x8xbf16>, vector<1x8x8xbf16>, vector<1x8x8xbf16>, vector<1x8x8xbf16> -> vector<4x8x8xbf16>
    %130 = vector.extract_strided_slice %120 {offsets = [0, 0], sizes = [16, 32], strides = [1, 1]} : vector<16x64xbf16> to vector<16x32xbf16>
    %131 = vector.extract_strided_slice %130 {offsets = [0, 0], sizes = [16, 8], strides = [1, 1]} : vector<16x32xbf16> to vector<16x8xbf16>
    %132 = vector.extract_strided_slice %130 {offsets = [0, 8], sizes = [16, 8], strides = [1, 1]} : vector<16x32xbf16> to vector<16x8xbf16>
    %133 = vector.extract_strided_slice %130 {offsets = [0, 16], sizes = [16, 8], strides = [1, 1]} : vector<16x32xbf16> to vector<16x8xbf16>
    %134 = vector.extract_strided_slice %130 {offsets = [0, 24], sizes = [16, 8], strides = [1, 1]} : vector<16x32xbf16> to vector<16x8xbf16>
    %135 = vector.shape_cast %131 : vector<16x8xbf16> to vector<1x16x8xbf16>
    %136 = vector.shape_cast %132 : vector<16x8xbf16> to vector<1x16x8xbf16>
    %137 = vector.shape_cast %133 : vector<16x8xbf16> to vector<1x16x8xbf16>
    %138 = vector.shape_cast %134 : vector<16x8xbf16> to vector<1x16x8xbf16>
    %139 = tpu.concatenate %135, %136, %137, %138 in 0 : vector<1x16x8xbf16>, vector<1x16x8xbf16>, vector<1x16x8xbf16>, vector<1x16x8xbf16> -> vector<4x16x8xbf16>
    %140 = vector.extract_strided_slice %120 {offsets = [0, 32], sizes = [16, 32], strides = [1, 1]} : vector<16x64xbf16> to vector<16x32xbf16>
    %141 = vector.extract_strided_slice %140 {offsets = [0, 0], sizes = [16, 8], strides = [1, 1]} : vector<16x32xbf16> to vector<16x8xbf16>
    %142 = vector.extract_strided_slice %140 {offsets = [0, 8], sizes = [16, 8], strides = [1, 1]} : vector<16x32xbf16> to vector<16x8xbf16>
    %143 = vector.extract_strided_slice %140 {offsets = [0, 16], sizes = [16, 8], strides = [1, 1]} : vector<16x32xbf16> to vector<16x8xbf16>
    %144 = vector.extract_strided_slice %140 {offsets = [0, 24], sizes = [16, 8], strides = [1, 1]} : vector<16x32xbf16> to vector<16x8xbf16>
    %145 = vector.shape_cast %141 : vector<16x8xbf16> to vector<1x16x8xbf16>
    %146 = vector.shape_cast %142 : vector<16x8xbf16> to vector<1x16x8xbf16>
    %147 = vector.shape_cast %143 : vector<16x8xbf16> to vector<1x16x8xbf16>
    %148 = vector.shape_cast %144 : vector<16x8xbf16> to vector<1x16x8xbf16>
    %149 = tpu.concatenate %145, %146, %147, %148 in 0 : vector<1x16x8xbf16>, vector<1x16x8xbf16>, vector<1x16x8xbf16>, vector<1x16x8xbf16> -> vector<4x16x8xbf16>
    "tpu.trace_start"() <{level = 10 : i32, message = "bqd,bkd->bqk"}> : () -> ()
    %cst_42 = arith.constant dense<0.000000e+00> : vector<4x8x16xf32>
    %150 = tpu.matmul %129, %139, %cst_42 {dimension_numbers = #tpu.dot_dimension_numbers<[2], [2], [1], [1], [0, 0, 0, 1, 1, 1], [0], [0]>} : vector<4x8x8xbf16>, vector<4x16x8xbf16>, vector<4x8x16xf32> -> vector<4x8x16xf32>
    "tpu.trace_stop"() : () -> ()
    %151 = vector.shape_cast %150 : vector<4x8x16xf32> to vector<4x1x8x16xf32>
    %152 = vector.broadcast %12 : vector<1x1x1x16xf32> to vector<4x1x8x16xf32>
    %153 = arith.addf %151, %152 : vector<4x1x8x16xf32>
    %154 = vector.shape_cast %153 : vector<4x1x8x16xf32> to vector<4x8x16xf32>
    %cst_43 = arith.constant dense<0xFF800000> : vector<4x8xf32>
    %155 = vector.multi_reduction <maximumf>, %154, %cst_43 [2] : vector<4x8x16xf32> to vector<4x8xf32>
    %156 = vector.shape_cast %155 : vector<4x8xf32> to vector<4x8x1xf32>
    %157 = vector.broadcast %156 : vector<4x8x1xf32> to vector<4x8x16xf32>
    %158 = arith.subf %154, %157 : vector<4x8x16xf32>
    %159 = math.exp %158 : vector<4x8x16xf32>
    %cst_44 = arith.constant dense<0.000000e+00> : vector<4x8xf32>
    %160 = vector.multi_reduction <add>, %159, %cst_44 [2] : vector<4x8x16xf32> to vector<4x8xf32>
    %161 = vector.shape_cast %160 : vector<4x8xf32> to vector<4x8x1xf32>
    %162 = tpu.reciprocal %161 {approx = true} : vector<4x8x1xf32> -> vector<4x8x1xf32>
    %163 = arith.truncf %159 : vector<4x8x16xf32> to vector<4x8x16xbf16>
    "tpu.trace_start"() <{level = 10 : i32, message = "bqk,bkd->bqd"}> : () -> ()
    %cst_45 = arith.constant dense<0.000000e+00> : vector<4x8x8xf32>
    %164 = tpu.matmul %163, %149, %cst_45 {dimension_numbers = #tpu.dot_dimension_numbers<[2], [1], [1], [2], [0, 0, 0, 1, 1, 2], [0], [0]>} : vector<4x8x16xbf16>, vector<4x16x8xbf16>, vector<4x8x8xf32> -> vector<4x8x8xf32>
    "tpu.trace_stop"() : () -> ()
    %165 = vector.broadcast %162 : vector<4x8x1xf32> to vector<4x8x8xf32>
    %166 = arith.mulf %164, %165 : vector<4x8x8xf32>
    %167 = vector.extract_strided_slice %166 {offsets = [0, 0, 0], sizes = [1, 8, 8], strides = [1, 1, 1]} : vector<4x8x8xf32> to vector<1x8x8xf32>
    %168 = vector.shape_cast %167 : vector<1x8x8xf32> to vector<8x8xf32>
    %169 = vector.extract_strided_slice %166 {offsets = [1, 0, 0], sizes = [1, 8, 8], strides = [1, 1, 1]} : vector<4x8x8xf32> to vector<1x8x8xf32>
    %170 = vector.shape_cast %169 : vector<1x8x8xf32> to vector<8x8xf32>
    %171 = vector.extract_strided_slice %166 {offsets = [2, 0, 0], sizes = [1, 8, 8], strides = [1, 1, 1]} : vector<4x8x8xf32> to vector<1x8x8xf32>
    %172 = vector.shape_cast %171 : vector<1x8x8xf32> to vector<8x8xf32>
    %173 = vector.extract_strided_slice %166 {offsets = [3, 0, 0], sizes = [1, 8, 8], strides = [1, 1, 1]} : vector<4x8x8xf32> to vector<1x8x8xf32>
    %174 = vector.shape_cast %173 : vector<1x8x8xf32> to vector<8x8xf32>
    %175 = tpu.concatenate %168, %170, %172, %174 in 1 : vector<8x8xf32>, vector<8x8xf32>, vector<8x8xf32>, vector<8x8xf32> -> vector<8x32xf32>
    %176 = arith.truncf %175 : vector<8x32xf32> to vector<8x32xbf16>
    %c0_46 = arith.constant 0 : index
    %c0_47 = arith.constant 0 : index
    %177 = vector.load %arg12[%c0_46, %c0_47] : memref<32x32xbf16, #tpu.memory_space<vmem>>, vector<32x32xbf16>
    %cst_48 = arith.constant dense<0.000000e+00> : vector<8x32xf32>
    %178 = tpu.matmul %176, %177, %cst_48 {dimension_numbers = #tpu.dot_dimension_numbers<[1], [0], [0], [1], [0, 0, 1, 1], [], []>} : vector<8x32xbf16>, vector<32x32xbf16>, vector<8x32xf32> -> vector<8x32xf32>
    %c0_49 = arith.constant 0 : index
    %c0_50 = arith.constant 0 : index
    %179 = vector.load %arg13[%c0_49, %c0_50] : memref<1x32xf32, #tpu.memory_space<vmem>>, vector<1x32xf32>
    %180 = vector.broadcast %179 : vector<1x32xf32> to vector<8x32xf32>
    %181 = arith.addf %178, %180 : vector<8x32xf32>
    %182 = arith.addf %106, %181 : vector<8x32xf32>
    %cst_51 = arith.constant dense<0.000000e+00> : vector<8xf32>
    %183 = vector.multi_reduction <add>, %182, %cst_51 [1] : vector<8x32xf32> to vector<8xf32>
    %184 = vector.shape_cast %183 : vector<8xf32> to vector<8x1xf32>
    %cst_52 = arith.constant 3.200000e+01 : f32
    %185 = vector.broadcast %cst_52 : f32 to vector<8x1xf32>
    %186 = arith.divf %184, %185 : vector<8x1xf32>
    %187 = vector.broadcast %186 : vector<8x1xf32> to vector<8x32xf32>
    %188 = arith.subf %182, %187 : vector<8x32xf32>
    %189 = arith.mulf %188, %188 : vector<8x32xf32>
    %cst_53 = arith.constant dense<0.000000e+00> : vector<8xf32>
    %190 = vector.multi_reduction <add>, %189, %cst_53 [1] : vector<8x32xf32> to vector<8xf32>
    %191 = vector.shape_cast %190 : vector<8xf32> to vector<8x1xf32>
    %cst_54 = arith.constant 3.200000e+01 : f32
    %192 = vector.broadcast %cst_54 : f32 to vector<8x1xf32>
    %193 = arith.divf %191, %192 : vector<8x1xf32>
    %194 = vector.broadcast %186 : vector<8x1xf32> to vector<8x32xf32>
    %195 = arith.subf %182, %194 : vector<8x32xf32>
    %cst_55 = arith.constant 9.99999974E-6 : f32
    %196 = vector.broadcast %cst_55 : f32 to vector<8x1xf32>
    %197 = arith.addf %193, %196 : vector<8x1xf32>
    %198 = math.rsqrt %197 : vector<8x1xf32>
    %199 = vector.broadcast %198 : vector<8x1xf32> to vector<8x32xf32>
    %200 = arith.mulf %195, %199 : vector<8x32xf32>
    %c0_56 = arith.constant 0 : index
    %c0_57 = arith.constant 0 : index
    %201 = vector.load %arg16[%c0_56, %c0_57] : memref<1x32xf32, #tpu.memory_space<vmem>>, vector<1x32xf32>
    %202 = vector.broadcast %201 : vector<1x32xf32> to vector<8x32xf32>
    %203 = arith.mulf %200, %202 : vector<8x32xf32>
    %c0_58 = arith.constant 0 : index
    %c0_59 = arith.constant 0 : index
    %204 = vector.load %arg17[%c0_58, %c0_59] : memref<1x32xf32, #tpu.memory_space<vmem>>, vector<1x32xf32>
    %205 = vector.broadcast %204 : vector<1x32xf32> to vector<8x32xf32>
    %206 = arith.addf %203, %205 : vector<8x32xf32>
    %207 = arith.truncf %206 : vector<8x32xf32> to vector<8x32xbf16>
    %c0_60 = arith.constant 0 : index
    %c0_61 = arith.constant 0 : index
    %208 = vector.load %arg20[%c0_60, %c0_61] : memref<32x64xbf16, #tpu.memory_space<vmem>>, vector<32x64xbf16>
    %cst_62 = arith.constant dense<0.000000e+00> : vector<8x64xf32>
    %209 = tpu.matmul %207, %208, %cst_62 {dimension_numbers = #tpu.dot_dimension_numbers<[1], [0], [0], [1], [0, 0, 1, 1], [], []>} : vector<8x32xbf16>, vector<32x64xbf16>, vector<8x64xf32> -> vector<8x64xf32>
    %c0_63 = arith.constant 0 : index
    %c0_64 = arith.constant 0 : index
    %210 = vector.load %arg21[%c0_63, %c0_64] : memref<1x64xf32, #tpu.memory_space<vmem>>, vector<1x64xf32>
    %211 = vector.broadcast %210 : vector<1x64xf32> to vector<8x64xf32>
    %212 = arith.addf %209, %211 : vector<8x64xf32>
    %cst_65 = arith.constant 0.000000e+00 : f32
    %213 = vector.broadcast %cst_65 : f32 to vector<8x64xf32>
    %214 = arith.maximumf %212, %213 : vector<8x64xf32>
    %215 = arith.truncf %214 : vector<8x64xf32> to vector<8x64xbf16>
    %c0_66 = arith.constant 0 : index
    %c0_67 = arith.constant 0 : index
    %216 = vector.load %arg22[%c0_66, %c0_67] : memref<64x32xbf16, #tpu.memory_space<vmem>>, vector<64x32xbf16>
    %cst_68 = arith.constant dense<0.000000e+00> : vector<8x32xf32>
    %217 = tpu.matmul %215, %216, %cst_68 {dimension_numbers = #tpu.dot_dimension_numbers<[1], [0], [0], [1], [0, 0, 1, 1], [], []>} : vector<8x64xbf16>, vector<64x32xbf16>, vector<8x32xf32> -> vector<8x32xf32>
    %c0_69 = arith.constant 0 : index
    %c0_70 = arith.constant 0 : index
    %218 = vector.load %arg23[%c0_69, %c0_70] : memref<1x32xf32, #tpu.memory_space<vmem>>, vector<1x32xf32>
    %219 = vector.broadcast %218 : vector<1x32xf32> to vector<8x32xf32>
    %220 = arith.addf %217, %219 : vector<8x32xf32>
    %221 = arith.addf %206, %220 : vector<8x32xf32>
    %cst_71 = arith.constant dense<0.000000e+00> : vector<8xf32>
    %222 = vector.multi_reduction <add>, %221, %cst_71 [1] : vector<8x32xf32> to vector<8xf32>
    %223 = vector.shape_cast %222 : vector<8xf32> to vector<8x1xf32>
    %cst_72 = arith.constant 3.200000e+01 : f32
    %224 = vector.broadcast %cst_72 : f32 to vector<8x1xf32>
    %225 = arith.divf %223, %224 : vector<8x1xf32>
    %226 = vector.broadcast %225 : vector<8x1xf32> to vector<8x32xf32>
    %227 = arith.subf %221, %226 : vector<8x32xf32>
    %228 = arith.mulf %227, %227 : vector<8x32xf32>
    %cst_73 = arith.constant dense<0.000000e+00> : vector<8xf32>
    %229 = vector.multi_reduction <add>, %228, %cst_73 [1] : vector<8x32xf32> to vector<8xf32>
    %230 = vector.shape_cast %229 : vector<8xf32> to vector<8x1xf32>
    %cst_74 = arith.constant 3.200000e+01 : f32
    %231 = vector.broadcast %cst_74 : f32 to vector<8x1xf32>
    %232 = arith.divf %230, %231 : vector<8x1xf32>
    %233 = vector.broadcast %225 : vector<8x1xf32> to vector<8x32xf32>
    %234 = arith.subf %221, %233 : vector<8x32xf32>
    %cst_75 = arith.constant 9.99999974E-6 : f32
    %235 = vector.broadcast %cst_75 : f32 to vector<8x1xf32>
    %236 = arith.addf %232, %235 : vector<8x1xf32>
    %237 = math.rsqrt %236 : vector<8x1xf32>
    %238 = vector.broadcast %237 : vector<8x1xf32> to vector<8x32xf32>
    %239 = arith.mulf %234, %238 : vector<8x32xf32>
    %c0_76 = arith.constant 0 : index
    %c0_77 = arith.constant 0 : index
    %240 = vector.load %arg18[%c0_76, %c0_77] : memref<1x32xf32, #tpu.memory_space<vmem>>, vector<1x32xf32>
    %241 = vector.broadcast %240 : vector<1x32xf32> to vector<8x32xf32>
    %242 = arith.mulf %239, %241 : vector<8x32xf32>
    %c0_78 = arith.constant 0 : index
    %c0_79 = arith.constant 0 : index
    %243 = vector.load %arg19[%c0_78, %c0_79] : memref<1x32xf32, #tpu.memory_space<vmem>>, vector<1x32xf32>
    %244 = vector.broadcast %243 : vector<1x32xf32> to vector<8x32xf32>
    %245 = arith.addf %242, %244 : vector<8x32xf32>
    %246 = vector.shape_cast %245 : vector<8x32xf32> to vector<1x8x32xf32>
    %c0_80 = arith.constant 0 : index
    %c0_81 = arith.constant 0 : index
    %c0_82 = arith.constant 0 : index
    %247 = vector.load %arg24[%c0_80, %c0_81, %c0_82] : memref<1x8x32xf32, #tpu.memory_space<vmem>>, vector<1x8x32xf32>
    tpu.vector_store %arg24[%c0_80, %c0_81, %c0_82], %246 {strides = array<i32>} : memref<1x8x32xf32, #tpu.memory_space<vmem>>, vector<1x8x32xf32>,
    return
  }
  func.func @transform_0(%arg0: i32) -> (i32, i32, i32) {
    %c0_i32 = arith.constant 0 : i32
    %c0_i32_0 = arith.constant 0 : i32
    %c0_i32_1 = arith.constant 0 : i32
    return %arg0, %c0_i32, %c0_i32_0 : i32, i32, i32
  }
  func.func @transform_1(%arg0: i32) -> (i32, i32, i32) {
    %c0_i32 = arith.constant 0 : i32
    %c0_i32_0 = arith.constant 0 : i32
    %c0_i32_1 = arith.constant 0 : i32
    return %arg0, %c0_i32, %c0_i32_0 : i32, i32, i32
  }
  func.func @transform_2(%arg0: i32) -> (i32, i32, i32) {
    %c0_i32 = arith.constant 0 : i32
    %c0_i32_0 = arith.constant 0 : i32
    %c0_i32_1 = arith.constant 0 : i32
    return %arg0, %c0_i32, %c0_i32_0 : i32, i32, i32
  }
  func.func @transform_3(%arg0: i32) -> (i32, i32) {
    %c0_i32 = arith.constant 0 : i32
    %c0_i32_0 = arith.constant 0 : i32
    %c0_i32_1 = arith.constant 0 : i32
    return %c0_i32, %c0_i32_0 : i32, i32
  }
  func.func @transform_4(%arg0: i32) -> (i32, i32) {
    %c0_i32 = arith.constant 0 : i32
    %c0_i32_0 = arith.constant 0 : i32
    %c0_i32_1 = arith.constant 0 : i32
    return %c0_i32, %c0_i32_0 : i32, i32
  }
  func.func @transform_5(%arg0: i32) -> (i32, i32) {
    %c0_i32 = arith.constant 0 : i32
    %c0_i32_0 = arith.constant 0 : i32
    %c0_i32_1 = arith.constant 0 : i32
    return %c0_i32, %c0_i32_0 : i32, i32
  }
  func.func @transform_6(%arg0: i32) -> (i32, i32) {
    %c0_i32 = arith.constant 0 : i32
    %c0_i32_0 = arith.constant 0 : i32
    %c0_i32_1 = arith.constant 0 : i32
    return %c0_i32, %c0_i32_0 : i32, i32
  }
  func.func @transform_7(%arg0: i32) -> (i32, i32) {
    %c0_i32 = arith.constant 0 : i32
    %c0_i32_0 = arith.constant 0 : i32
    %c0_i32_1 = arith.constant 0 : i32
    return %c0_i32, %c0_i32_0 : i32, i32
  }
  func.func @transform_8(%arg0: i32) -> (i32, i32) {
    %c0_i32 = arith.constant 0 : i32
    %c0_i32_0 = arith.constant 0 : i32
    %c0_i32_1 = arith.constant 0 : i32
    return %c0_i32, %c0_i32_0 : i32, i32
  }
  func.func @transform_9(%arg0: i32) -> (i32, i32) {
    %c0_i32 = arith.constant 0 : i32
    %c0_i32_0 = arith.constant 0 : i32
    %c0_i32_1 = arith.constant 0 : i32
    return %c0_i32, %c0_i32_0 : i32, i32
  }
  func.func @transform_10(%arg0: i32) -> (i32, i32) {
    %c0_i32 = arith.constant 0 : i32
    %c0_i32_0 = arith.constant 0 : i32
    %c0_i32_1 = arith.constant 0 : i32
    return %c0_i32, %c0_i32_0 : i32, i32
  }
  func.func @transform_11(%arg0: i32) -> (i32, i32) {
    %c0_i32 = arith.constant 0 : i32
    %c0_i32_0 = arith.constant 0 : i32
    %c0_i32_1 = arith.constant 0 : i32
    return %c0_i32, %c0_i32_0 : i32, i32
  }
  func.func @transform_12(%arg0: i32) -> (i32, i32) {
    %c0_i32 = arith.constant 0 : i32
    %c0_i32_0 = arith.constant 0 : i32
    %c0_i32_1 = arith.constant 0 : i32
    return %c0_i32, %c0_i32_0 : i32, i32
  }
  func.func @transform_13(%arg0: i32) -> (i32, i32) {
    %c0_i32 = arith.constant 0 : i32
    %c0_i32_0 = arith.constant 0 : i32
    %c0_i32_1 = arith.constant 0 : i32
    return %c0_i32, %c0_i32_0 : i32, i32
  }
  func.func @transform_14(%arg0: i32) -> (i32, i32) {
    %c0_i32 = arith.constant 0 : i32
    %c0_i32_0 = arith.constant 0 : i32
    %c0_i32_1 = arith.constant 0 : i32
    return %c0_i32, %c0_i32_0 : i32, i32
  }
  func.func @transform_15(%arg0: i32) -> (i32, i32) {
    %c0_i32 = arith.constant 0 : i32
    %c0_i32_0 = arith.constant 0 : i32
    %c0_i32_1 = arith.constant 0 : i32
    return %c0_i32, %c0_i32_0 : i32, i32
  }
  func.func @transform_16(%arg0: i32) -> (i32, i32) {
    %c0_i32 = arith.constant 0 : i32
    %c0_i32_0 = arith.constant 0 : i32
    %c0_i32_1 = arith.constant 0 : i32
    return %c0_i32, %c0_i32_0 : i32, i32
  }
  func.func @transform_17(%arg0: i32) -> (i32, i32) {
    %c0_i32 = arith.constant 0 : i32
    %c0_i32_0 = arith.constant 0 : i32
    %c0_i32_1 = arith.constant 0 : i32
    return %c0_i32, %c0_i32_0 : i32, i32
  }
  func.func @transform_18(%arg0: i32) -> (i32, i32) {
    %c0_i32 = arith.constant 0 : i32
    %c0_i32_0 = arith.constant 0 : i32
    %c0_i32_1 = arith.constant 0 : i32
    return %c0_i32, %c0_i32_0 : i32, i32
  }
  func.func @transform_19(%arg0: i32) -> (i32, i32) {
    %c0_i32 = arith.constant 0 : i32
    %c0_i32_0 = arith.constant 0 : i32
    %c0_i32_1 = arith.constant 0 : i32
    return %c0_i32, %c0_i32_0 : i32, i32
  }
  func.func @transform_20(%arg0: i32) -> (i32, i32) {
    %c0_i32 = arith.constant 0 : i32
    %c0_i32_0 = arith.constant 0 : i32
    %c0_i32_1 = arith.constant 0 : i32
    return %c0_i32, %c0_i32_0 : i32, i32
  }
  func.func @transform_21(%arg0: i32) -> (i32, i32) {
    %c0_i32 = arith.constant 0 : i32
    %c0_i32_0 = arith.constant 0 : i32
    %c0_i32_1 = arith.constant 0 : i32
    return %c0_i32, %c0_i32_0 : i32, i32
  }
  func.func @transform_22(%arg0: i32) -> (i32, i32) {
    %c0_i32 = arith.constant 0 : i32
    %c0_i32_0 = arith.constant 0 : i32
    %c0_i32_1 = arith.constant 0 : i32
    return %c0_i32, %c0_i32_0 : i32, i32
  }
  func.func @transform_23(%arg0: i32) -> (i32, i32, i32) {
    %c0_i32 = arith.constant 0 : i32
    %c0_i32_0 = arith.constant 0 : i32
    %c0_i32_1 = arith.constant 0 : i32
    return %arg0, %c0_i32, %c0_i32_0 : i32, i32, i32
  }
}

module attributes {stable_mosaic.version = 11 : i64} {
  func.func @_decoder_block_kernel(%arg0: i32, %arg1: memref<1x8x32xf32, #tpu.memory_space<vmem>>, %arg2: memref<1x16x32xf32, #tpu.memory_space<vmem>>, %arg3: memref<1x1x16xf32, #tpu.memory_space<vmem>>, %arg4: memref<32x96xbf16, #tpu.memory_space<vmem>>, %arg5: memref<1x96xf32, #tpu.memory_space<vmem>>, %arg6: memref<32x32xbf16, #tpu.memory_space<vmem>>, %arg7: memref<1x32xf32, #tpu.memory_space<vmem>>, %arg8: memref<32x32xbf16, #tpu.memory_space<vmem>>, %arg9: memref<1x32xf32, #tpu.memory_space<vmem>>, %arg10: memref<32x64xbf16, #tpu.memory_space<vmem>>, %arg11: memref<1x64xf32, #tpu.memory_space<vmem>>, %arg12: memref<32x32xbf16, #tpu.memory_space<vmem>>, %arg13: memref<1x32xf32, #tpu.memory_space<vmem>>, %arg14: memref<1x32xf32, #tpu.memory_space<vmem>>, %arg15: memref<1x32xf32, #tpu.memory_space<vmem>>, %arg16: memref<1x32xf32, #tpu.memory_space<vmem>>, %arg17: memref<1x32xf32, #tpu.memory_space<vmem>>, %arg18: memref<1x32xf32, #tpu.memory_space<vmem>>, %arg19: memref<1x32xf32, #tpu.memory_space<vmem>>, %arg20: memref<32x64xbf16, #tpu.memory_space<vmem>>, %arg21: memref<1x64xf32, #tpu.memory_space<vmem>>, %arg22: memref<64x32xbf16, #tpu.memory_space<vmem>>, %arg23: memref<1x32xf32, #tpu.memory_space<vmem>>, %arg24: memref<1x8x32xf32, #tpu.memory_space<vmem>>) attributes {dimension_semantics = [#tpu.dimension_semantics<parallel>], iteration_bounds = array<i64: 2>, scalar_prefetch = 0 : i64, scratch_operands = 0 : i64, tpu.core_type = #tpu.core_type<tc>, window_params = [{transform_indices = @transform_0, window_bounds = array<i64: 1, 8, 32>}, {transform_indices = @transform_1, window_bounds = array<i64: 1, 16, 32>}, {transform_indices = @transform_2, window_bounds = array<i64: 1, 1, 16>}, {pipeline_mode = #tpu.pipeline_mode<synchronous>, transform_indices = @transform_3, window_bounds = array<i64: 32, 96>}, {pipeline_mode = #tpu.pipeline_mode<synchronous>, transform_indices = @transform_4, window_bounds = array<i64: 1, 96>}, {pipeline_mode = #tpu.pipeline_mode<synchronous>, transform_indices = @transform_5, window_bounds = array<i64: 32, 32>}, {pipeline_mode = #tpu.pipeline_mode<synchronous>, transform_indices = @transform_6, window_bounds = array<i64: 1, 32>}, {pipeline_mode = #tpu.pipeline_mode<synchronous>, transform_indices = @transform_7, window_bounds = array<i64: 32, 32>}, {pipeline_mode = #tpu.pipeline_mode<synchronous>, transform_indices = @transform_8, window_bounds = array<i64: 1, 32>}, {pipeline_mode = #tpu.pipeline_mode<synchronous>, transform_indices = @transform_9, window_bounds = array<i64: 32, 64>}, {pipeline_mode = #tpu.pipeline_mode<synchronous>, transform_indices = @transform_10, window_bounds = array<i64: 1, 64>}, {pipeline_mode = #tpu.pipeline_mode<synchronous>, transform_indices = @transform_11, window_bounds = array<i64: 32, 32>}, {pipeline_mode = #tpu.pipeline_mode<synchronous>, transform_indices = @transform_12, window_bounds = array<i64: 1, 32>}, {pipeline_mode = #tpu.pipeline_mode<synchronous>, transform_indices = @transform_13, window_bounds = array<i64: 1, 32>}, {pipeline_mode = #tpu.pipeline_mode<synchronous>, transform_indices = @transform_14, window_bounds = array<i64: 1, 32>}, {pipeline_mode = #tpu.pipeline_mode<synchronous>, transform_indices = @transform_15, window_bounds = array<i64: 1, 32>}, {pipeline_mode = #tpu.pipeline_mode<synchronous>, transform_indices = @transform_16, window_bounds = array<i64: 1, 32>}, {pipeline_mode = #tpu.pipeline_mode<synchronous>, transform_indices = @transform_17, window_bounds = array<i64: 1, 32>}, {pipeline_mode = #tpu.pipeline_mode<synchronous>, transform_indices = @transform_18, window_bounds = array<i64: 1, 32>}, {pipeline_mode = #tpu.pipeline_mode<synchronous>, transform_indices = @transform_19, window_bounds = array<i64: 32, 64>}, {pipeline_mode = #tpu.pipeline_mode<synchronous>, transform_indices = @transform_20, window_bounds = array<i64: 1, 64>}, {pipeline_mode = #tpu.pipeline_mode<synchronous>, transform_indices = @transform_21, window_bounds = array<i64: 64, 32>}, {pipeline_mode = #tpu.pipeline_mode<synchronous>, transform_indices = @transform_22, window_bounds = array<i64: 1, 32>}, {transform_indices = @transform_23, window_bounds = array<i64: 1, 8, 32>}]} {
    %c0 = arith.constant 0 : index
    %c0_0 = arith.constant 0 : index
    %c0_1 = arith.constant 0 : index
    %0 = vector.load %arg1[%c0, %c0_0, %c0_1] : memref<1x8x32xf32, #tpu.memory_space<vmem>>, vector<1x8x32xf32>
    %1 = vector.shape_cast %0 : vector<1x8x32xf32> to vector<8x32xf32>
    %c0_2 = arith.constant 0 : index
    %c0_3 = arith.constant 0 : index
    %c0_4 = arith.constant 0 : index
    %2 = vector.load %arg2[%c0_2, %c0_3, %c0_4] : memref<1x16x32xf32, #tpu.memory_space<vmem>>, vector<1x16x32xf32>
    %3 = vector.shape_cast %2 : vector<1x16x32xf32> to vector<16x32xf32>
    %4 = tpu.iota {dimensions = array<i32: 0>} : vector<8x8xi32>
    %5 = tpu.iota {dimensions = array<i32: 1>} : vector<8x8xi32>
    %6 = arith.cmpi sge, %4, %5 : vector<8x8xi32>
    %cst = arith.constant 0.000000e+00 : f32
    %cst_5 = arith.constant -1.000000e+30 : f32
    %7 = vector.broadcast %cst : f32 to vector<8x8xf32>
    %8 = vector.broadcast %cst_5 : f32 to vector<8x8xf32>
    %9 = arith.select %6, %7, %8 : vector<8x8xi1>, vector<8x8xf32>
    %10 = vector.shape_cast %9 : vector<8x8xf32> to vector<1x1x8x8xf32>
    %c0_6 = arith.constant 0 : index
    %c0_7 = arith.constant 0 : index
    %c0_8 = arith.constant 0 : index
    %11 = vector.load %arg3[%c0_6, %c0_7, %c0_8] : memref<1x1x16xf32, #tpu.memory_space<vmem>>, vector<1x1x16xf32>
    %12 = vector.shape_cast %11 : vector<1x1x16xf32> to vector<1x1x1x16xf32>
    %13 = arith.truncf %1 : vector<8x32xf32> to vector<8x32xbf16>
    %c0_9 = arith.constant 0 : index
    %c0_10 = arith.constant 0 : index
    %14 = vector.load %arg4[%c0_9, %c0_10] : memref<32x96xbf16, #tpu.memory_space<vmem>>, vector<32x96xbf16>
    %cst_11 = arith.constant dense<0.000000e+00> : vector<8x96xf32>
    %15 = tpu.matmul %13, %14, %cst_11 {dimension_numbers = #tpu.dot_dimension_numbers<[1], [0], [0], [1], [0, 0, 1, 1], [], []>} : vector<8x32xbf16>, vector<32x96xbf16>, vector<8x96xf32> -> vector<8x96xf32>
    %c0_12 = arith.constant 0 : index
    %c0_13 = arith.constant 0 : index
    %16 = vector.load %arg5[%c0_12, %c0_13] : memref<1x96xf32, #tpu.memory_space<vmem>>, vector<1x96xf32>
    %17 = vector.broadcast %16 : vector<1x96xf32> to vector<8x96xf32>
    %18 = arith.addf %15, %17 : vector<8x96xf32>
    %19 = arith.truncf %18 : vector<8x96xf32> to vector<8x96xbf16>
    %20 = vector.extract_strided_slice %19 {offsets = [0, 0], sizes = [8, 32], strides = [1, 1]} : vector<8x96xbf16> to vector<8x32xbf16>
    %21 = vector.extract_strided_slice %20 {offsets = [0, 0], sizes = [8, 8], strides = [1, 1]} : vector<8x32xbf16> to vector<8x8xbf16>
    %22 = vector.extract_strided_slice %20 {offsets = [0, 8], sizes = [8, 8], strides = [1, 1]} : vector<8x32xbf16> to vector<8x8xbf16>
    %23 = vector.extract_strided_slice %20 {offsets = [0, 16], sizes = [8, 8], strides = [1, 1]} : vector<8x32xbf16> to vector<8x8xbf16>
    %24 = vector.extract_strided_slice %20 {offsets = [0, 24], sizes = [8, 8], strides = [1, 1]} : vector<8x32xbf16> to vector<8x8xbf16>
    %25 = vector.shape_cast %21 : vector<8x8xbf16> to vector<1x8x8xbf16>
    %26 = vector.shape_cast %22 : vector<8x8xbf16> to vector<1x8x8xbf16>
    %27 = vector.shape_cast %23 : vector<8x8xbf16> to vector<1x8x8xbf16>
    %28 = vector.shape_cast %24 : vector<8x8xbf16> to vector<1x8x8xbf16>
    %29 = tpu.concatenate %25, %26, %27, %28 in 0 : vector<1x8x8xbf16>, vector<1x8x8xbf16>, vector<1x8x8xbf16>, vector<1x8x8xbf16> -> vector<4x8x8xbf16>
    %30 = vector.extract_strided_slice %19 {offsets = [0, 32], sizes = [8, 32], strides = [1, 1]} : vector<8x96xbf16> to vector<8x32xbf16>
    %31 = vector.extract_strided_slice %30 {offsets = [0, 0], sizes = [8, 8], strides = [1, 1]} : vector<8x32xbf16> to vector<8x8xbf16>
    %32 = vector.extract_strided_slice %30 {offsets = [0, 8], sizes = [8, 8], strides = [1, 1]} : vector<8x32xbf16> to vector<8x8xbf16>
    %33 = vector.extract_strided_slice %30 {offsets = [0, 16], sizes = [8, 8], strides = [1, 1]} : vector<8x32xbf16> to vector<8x8xbf16>
    %34 = vector.extract_strided_slice %30 {offsets = [0, 24], sizes = [8, 8], strides = [1, 1]} : vector<8x32xbf16> to vector<8x8xbf16>
    %35 = vector.shape_cast %31 : vector<8x8xbf16> to vector<1x8x8xbf16>
    %36 = vector.shape_cast %32 : vector<8x8xbf16> to vector<1x8x8xbf16>
    %37 = vector.shape_cast %33 : vector<8x8xbf16> to vector<1x8x8xbf16>
    %38 = vector.shape_cast %34 : vector<8x8xbf16> to vector<1x8x8xbf16>
    %39 = tpu.concatenate %35, %36, %37, %38 in 0 : vector<1x8x8xbf16>, vector<1x8x8xbf16>, vector<1x8x8xbf16>, vector<1x8x8xbf16> -> vector<4x8x8xbf16>
    %40 = vector.extract_strided_slice %19 {offsets = [0, 64], sizes = [8, 32], strides = [1, 1]} : vector<8x96xbf16> to vector<8x32xbf16>
    %41 = vector.extract_strided_slice %40 {offsets = [0, 0], sizes = [8, 8], strides = [1, 1]} : vector<8x32xbf16> to vector<8x8xbf16>
    %42 = vector.extract_strided_slice %40 {offsets = [0, 8], sizes = [8, 8], strides = [1, 1]} : vector<8x32xbf16> to vector<8x8xbf16>
    %43 = vector.extract_strided_slice %40 {offsets = [0, 16], sizes = [8, 8], strides = [1, 1]} : vector<8x32xbf16> to vector<8x8xbf16>
    %44 = vector.extract_strided_slice %40 {offsets = [0, 24], sizes = [8, 8], strides = [1, 1]} : vector<8x32xbf16> to vector<8x8xbf16>
    %45 = vector.shape_cast %41 : vector<8x8xbf16> to vector<1x8x8xbf16>
    %46 = vector.shape_cast %42 : vector<8x8xbf16> to vector<1x8x8xbf16>
    %47 = vector.shape_cast %43 : vector<8x8xbf16> to vector<1x8x8xbf16>
    %48 = vector.shape_cast %44 : vector<8x8xbf16> to vector<1x8x8xbf16>
    %49 = tpu.concatenate %45, %46, %47, %48 in 0 : vector<1x8x8xbf16>, vector<1x8x8xbf16>, vector<1x8x8xbf16>, vector<1x8x8xbf16> -> vector<4x8x8xbf16>
    "tpu.trace_start"() <{level = 10 : i32, message = "bqd,bkd->bqk"}> : () -> ()
    %cst_14 = arith.constant dense<0.000000e+00> : vector<4x8x8xf32>
    %50 = tpu.matmul %29, %39, %cst_14 {dimension_numbers = #tpu.dot_dimension_numbers<[2], [2], [1], [1], [0, 0, 0, 1, 1, 1], [0], [0]>} : vector<4x8x8xbf16>, vector<4x8x8xbf16>, vector<4x8x8xf32> -> vector<4x8x8xf32>
    "tpu.trace_stop"() : () -> ()
    %51 = vector.shape_cast %50 : vector<4x8x8xf32> to vector<4x1x8x8xf32>
    %52 = vector.broadcast %10 : vector<1x1x8x8xf32> to vector<4x1x8x8xf32>
    %53 = arith.addf %51, %52 : vector<4x1x8x8xf32>
    %54 = vector.shape_cast %53 : vector<4x1x8x8xf32> to vector<4x8x8xf32>
    %cst_15 = arith.constant dense<0xFF800000> : vector<4x8xf32>
    %55 = vector.multi_reduction <maximumf>, %54, %cst_15 [2] : vector<4x8x8xf32> to vector<4x8xf32>
    %56 = vector.shape_cast %55 : vector<4x8xf32> to vector<4x8x1xf32>
    %57 = vector.broadcast %56 : vector<4x8x1xf32> to vector<4x8x8xf32>
    %58 = arith.subf %54, %57 : vector<4x8x8xf32>
    %59 = math.exp %58 : vector<4x8x8xf32>
    %cst_16 = arith.constant dense<0.000000e+00> : vector<4x8xf32>
    %60 = vector.multi_reduction <add>, %59, %cst_16 [2] : vector<4x8x8xf32> to vector<4x8xf32>
    %61 = vector.shape_cast %60 : vector<4x8xf32> to vector<4x8x1xf32>
    %62 = tpu.reciprocal %61 {approx = true} : vector<4x8x1xf32> -> vector<4x8x1xf32>
    %63 = arith.truncf %59 : vector<4x8x8xf32> to vector<4x8x8xbf16>
    "tpu.trace_start"() <{level = 10 : i32, message = "bqk,bkd->bqd"}> : () -> ()
    %cst_17 = arith.constant dense<0.000000e+00> : vector<4x8x8xf32>
    %64 = tpu.matmul %63, %49, %cst_17 {dimension_numbers = #tpu.dot_dimension_numbers<[2], [1], [1], [2], [0, 0, 0, 1, 1, 2], [0], [0]>} : vector<4x8x8xbf16>, vector<4x8x8xbf16>, vector<4x8x8xf32> -> vector<4x8x8xf32>
    "tpu.trace_stop"() : () -> ()
    %65 = vector.broadcast %62 : vector<4x8x1xf32> to vector<4x8x8xf32>
    %66 = arith.mulf %64, %65 : vector<4x8x8xf32>
    %67 = vector.extract_strided_slice %66 {offsets = [0, 0, 0], sizes = [1, 8, 8], strides = [1, 1, 1]} : vector<4x8x8xf32> to vector<1x8x8xf32>
    %68 = vector.shape_cast %67 : vector<1x8x8xf32> to vector<8x8xf32>
    %69 = vector.extract_strided_slice %66 {offsets = [1, 0, 0], sizes = [1, 8, 8], strides = [1, 1, 1]} : vector<4x8x8xf32> to vector<1x8x8xf32>
    %70 = vector.shape_cast %69 : vector<1x8x8xf32> to vector<8x8xf32>
    %71 = vector.extract_strided_slice %66 {offsets = [2, 0, 0], sizes = [1, 8, 8], strides = [1, 1, 1]} : vector<4x8x8xf32> to vector<1x8x8xf32>
    %72 = vector.shape_cast %71 : vector<1x8x8xf32> to vector<8x8xf32>
    %73 = vector.extract_strided_slice %66 {offsets = [3, 0, 0], sizes = [1, 8, 8], strides = [1, 1, 1]} : vector<4x8x8xf32> to vector<1x8x8xf32>
    %74 = vector.shape_cast %73 : vector<1x8x8xf32> to vector<8x8xf32>
    %75 = tpu.concatenate %68, %70, %72, %74 in 1 : vector<8x8xf32>, vector<8x8xf32>, vector<8x8xf32>, vector<8x8xf32> -> vector<8x32xf32>
    %76 = arith.truncf %75 : vector<8x32xf32> to vector<8x32xbf16>
    %c0_18 = arith.constant 0 : index
    %c0_19 = arith.constant 0 : index
    %77 = vector.load %arg6[%c0_18, %c0_19] : memref<32x32xbf16, #tpu.memory_space<vmem>>, vector<32x32xbf16>
    %cst_20 = arith.constant dense<0.000000e+00> : vector<8x32xf32>
    %78 = tpu.matmul %76, %77, %cst_20 {dimension_numbers = #tpu.dot_dimension_numbers<[1], [0], [0], [1], [0, 0, 1, 1], [], []>} : vector<8x32xbf16>, vector<32x32xbf16>, vector<8x32xf32> -> vector<8x32xf32>
    %c0_21 = arith.constant 0 : index
    %c0_22 = arith.constant 0 : index
    %79 = vector.load %arg7[%c0_21, %c0_22] : memref<1x32xf32, #tpu.memory_space<vmem>>, vector<1x32xf32>
    %80 = vector.broadcast %79 : vector<1x32xf32> to vector<8x32xf32>
    %81 = arith.addf %78, %80 : vector<8x32xf32>
    %82 = arith.addf %1, %81 : vector<8x32xf32>
    %cst_23 = arith.constant dense<0.000000e+00> : vector<8xf32>
    %83 = vector.multi_reduction <add>, %82, %cst_23 [1] : vector<8x32xf32> to vector<8xf32>
    %84 = vector.shape_cast %83 : vector<8xf32> to vector<8x1xf32>
    %cst_24 = arith.constant 3.200000e+01 : f32
    %85 = vector.broadcast %cst_24 : f32 to vector<8x1xf32>
    %86 = arith.divf %84, %85 : vector<8x1xf32>
    %87 = vector.broadcast %86 : vector<8x1xf32> to vector<8x32xf32>
    %88 = arith.subf %82, %87 : vector<8x32xf32>
    %89 = arith.mulf %88, %88 : vector<8x32xf32>
    %cst_25 = arith.constant dense<0.000000e+00> : vector<8xf32>
    %90 = vector.multi_reduction <add>, %89, %cst_25 [1] : vector<8x32xf32> to vector<8xf32>
    %91 = vector.shape_cast %90 : vector<8xf32> to vector<8x1xf32>
    %cst_26 = arith.constant 3.200000e+01 : f32
    %92 = vector.broadcast %cst_26 : f32 to vector<8x1xf32>
    %93 = arith.divf %91, %92 : vector<8x1xf32>
    %94 = vector.broadcast %86 : vector<8x1xf32> to vector<8x32xf32>
    %95 = arith.subf %82, %94 : vector<8x32xf32>
    %cst_27 = arith.constant 9.99999974E-6 : f32
    %96 = vector.broadcast %cst_27 : f32 to vector<8x1xf32>
    %97 = arith.addf %93, %96 : vector<8x1xf32>
    %98 = math.rsqrt %97 : vector<8x1xf32>
    %99 = vector.broadcast %98 : vector<8x1xf32> to vector<8x32xf32>
    %100 = arith.mulf %95, %99 : vector<8x32xf32>
    %c0_28 = arith.constant 0 : index
    %c0_29 = arith.constant 0 : index
    %101 = vector.load %arg14[%c0_28, %c0_29] : memref<1x32xf32, #tpu.memory_space<vmem>>, vector<1x32xf32>
    %102 = vector.broadcast %101 : vector<1x32xf32> to vector<8x32xf32>
    %103 = arith.mulf %100, %102 : vector<8x32xf32>
    %c0_30 = arith.constant 0 : index
    %c0_31 = arith.constant 0 : index
    %104 = vector.load %arg15[%c0_30, %c0_31] : memref<1x32xf32, #tpu.memory_space<vmem>>, vector<1x32xf32>
    %105 = vector.broadcast %104 : vector<1x32xf32> to vector<8x32xf32>
    %106 = arith.addf %103, %105 : vector<8x32xf32>
    %107 = arith.truncf %106 : vector<8x32xf32> to vector<8x32xbf16>
    %c0_32 = arith.constant 0 : index
    %c0_33 = arith.constant 0 : index
    %108 = vector.load %arg8[%c0_32, %c0_33] : memref<32x32xbf16, #tpu.memory_space<vmem>>, vector<32x32xbf16>
    %cst_34 = arith.constant dense<0.000000e+00> : vector<8x32xf32>
    %109 = tpu.matmul %107, %108, %cst_34 {dimension_numbers = #tpu.dot_dimension_numbers<[1], [0], [0], [1], [0, 0, 1, 1], [], []>} : vector<8x32xbf16>, vector<32x32xbf16>, vector<8x32xf32> -> vector<8x32xf32>
    %c0_35 = arith.constant 0 : index
    %c0_36 = arith.constant 0 : index
    %110 = vector.load %arg9[%c0_35, %c0_36] : memref<1x32xf32, #tpu.memory_space<vmem>>, vector<1x32xf32>
    %111 = vector.broadcast %110 : vector<1x32xf32> to vector<8x32xf32>
    %112 = arith.addf %109, %111 : vector<8x32xf32>
    %113 = arith.truncf %112 : vector<8x32xf32> to vector<8x32xbf16>
    %114 = arith.truncf %3 : vector<16x32xf32> to vector<16x32xbf16>
    %c0_37 = arith.constant 0 : index
    %c0_38 = arith.constant 0 : index
    %115 = vector.load %arg10[%c0_37, %c0_38] : memref<32x64xbf16, #tpu.memory_space<vmem>>, vector<32x64xbf16>
    %cst_39 = arith.constant dense<0.000000e+00> : vector<16x64xf32>
    %116 = tpu.matmul %114, %115, %cst_39 {dimension_numbers = #tpu.dot_dimension_numbers<[1], [0], [0], [1], [0, 0, 1, 1], [], []>} : vector<16x32xbf16>, vector<32x64xbf16>, vector<16x64xf32> -> vector<16x64xf32>
    %c0_40 = arith.constant 0 : index
    %c0_41 = arith.constant 0 : index
    %117 = vector.load %arg11[%c0_40, %c0_41] : memref<1x64xf32, #tpu.memory_space<vmem>>, vector<1x64xf32>
    %118 = vector.broadcast %117 : vector<1x64xf32> to vector<16x64xf32>
    %119 = arith.addf %116, %118 : vector<16x64xf32>
    %120 = arith.truncf %119 : vector<16x64xf32> to vector<16x64xbf16>
    %121 = vector.extract_strided_slice %113 {offsets = [0, 0], sizes = [8, 8], strides = [1, 1]} : vector<8x32xbf16> to vector<8x8xbf16>
    %122 = vector.extract_strided_slice %113 {offsets = [0, 8], sizes = [8, 8], strides = [1, 1]} : vector<8x32xbf16> to vector<8x8xbf16>
    %123 = vector.extract_strided_slice %113 {offsets = [0, 16], sizes = [8, 8], strides = [1, 1]} : vector<8x32xbf16> to vector<8x8xbf16>
    %124 = vector.extract_strided_slice %113 {offsets = [0, 24], sizes = [8, 8], strides = [1, 1]} : vector<8x32xbf16> to vector<8x8xbf16>
    %125 = vector.shape_cast %121 : vector<8x8xbf16> to vector<1x8x8xbf16>
    %126 = vector.shape_cast %122 : vector<8x8xbf16> to vector<1x8x8xbf16>
    %127 = vector.shape_cast %123 : vector<8x8xbf16> to vector<1x8x8xbf16>
    %128 = vector.shape_cast %124 : vector<8x8xbf16> to vector<1x8x8xbf16>
    %129 = tpu.concatenate %125, %126, %127, %128 in 0 : vector<1x8x8xbf16>, vector<1x8x8xbf16>, vector<1x8x8xbf16>, vector<1x8x8xbf16> -> vector<4x8x8xbf16>
    %130 = vector.extract_strided_slice %120 {offsets = [0, 0], sizes = [16, 32], strides = [1, 1]} : vector<16x64xbf16> to vector<16x32xbf16>
    %131 = vector.extract_strided_slice %130 {offsets = [0, 0], sizes = [16, 8], strides = [1, 1]} : vector<16x32xbf16> to vector<16x8xbf16>
    %132 = vector.extract_strided_slice %130 {offsets = [0, 8], sizes = [16, 8], strides = [1, 1]} : vector<16x32xbf16> to vector<16x8xbf16>
    %133 = vector.extract_strided_slice %130 {offsets = [0, 16], sizes = [16, 8], strides = [1, 1]} : vector<16x32xbf16> to vector<16x8xbf16>
    %134 = vector.extract_strided_slice %130 {offsets = [0, 24], sizes = [16, 8], strides = [1, 1]} : vector<16x32xbf16> to vector<16x8xbf16>
    %135 = vector.shape_cast %131 : vector<16x8xbf16> to vector<1x16x8xbf16>
    %136 = vector.shape_cast %132 : vector<16x8xbf16> to vector<1x16x8xbf16>
    %137 = vector.shape_cast %133 : vector<16x8xbf16> to vector<1x16x8xbf16>
    %138 = vector.shape_cast %134 : vector<16x8xbf16> to vector<1x16x8xbf16>
    %139 = tpu.concatenate %135, %136, %137, %138 in 0 : vector<1x16x8xbf16>, vector<1x16x8xbf16>, vector<1x16x8xbf16>, vector<1x16x8xbf16> -> vector<4x16x8xbf16>
    %140 = vector.extract_strided_slice %120 {offsets = [0, 32], sizes = [16, 32], strides = [1, 1]} : vector<16x64xbf16> to vector<16x32xbf16>
    %141 = vector.extract_strided_slice %140 {offsets = [0, 0], sizes = [16, 8], strides = [1, 1]} : vector<16x32xbf16> to vector<16x8xbf16>
    %142 = vector.extract_strided_slice %140 {offsets = [0, 8], sizes = [16, 8], strides = [1, 1]} : vector<16x32xbf16> to vector<16x8xbf16>
    %143 = vector.extract_strided_slice %140 {offsets = [0, 16], sizes = [16, 8], strides = [1, 1]} : vector<16x32xbf16> to vector<16x8xbf16>
    %144 = vector.extract_strided_slice %140 {offsets = [0, 24], sizes = [16, 8], strides = [1, 1]} : vector<16x32xbf16> to vector<16x8xbf16>
    %145 = vector.shape_cast %141 : vector<16x8xbf16> to vector<1x16x8xbf16>
    %146 = vector.shape_cast %142 : vector<16x8xbf16> to vector<1x16x8xbf16>
    %147 = vector.shape_cast %143 : vector<16x8xbf16> to vector<1x16x8xbf16>
    %148 = vector.shape_cast %144 : vector<16x8xbf16> to vector<1x16x8xbf16>
    %149 = tpu.concatenate %145, %146, %147, %148 in 0 : vector<1x16x8xbf16>, vector<1x16x8xbf16>, vector<1x16x8xbf16>, vector<1x16x8xbf16> -> vector<4x16x8xbf16>
    "tpu.trace_start"() <{level = 10 : i32, message = "bqd,bkd->bqk"}> : () -> ()
    %cst_42 = arith.constant dense<0.000000e+00> : vector<4x8x16xf32>
    %150 = tpu.matmul %129, %139, %cst_42 {dimension_numbers = #tpu.dot_dimension_numbers<[2], [2], [1], [1], [0, 0, 0, 1, 1, 1], [0], [0]>} : vector<4x8x8xbf16>, vector<4x16x8xbf16>, vector<4x8x16xf32> -> vector<4x8x16xf32>
    "tpu.trace_stop"() : () -> ()
    %151 = vector.shape_cast %150 : vector<4x8x16xf32> to vector<4x1x8x16xf32>
    %152 = vector.broadcast %12 : vector<1x1x1x16xf32> to vector<4x1x8x16xf32>
    %153 = arith.addf %151, %152 : vector<4x1x8x16xf32>
    %154 = vector.shape_cast %153 : vector<4x1x8x16xf32> to vector<4x8x16xf32>
    %cst_43 = arith.constant dense<0xFF800000> : vector<4x8xf32>
    %155 = vector.multi_reduction <maximumf>, %154, %cst_43 [2] : vector<4x8x16xf32> to vector<4x8xf32>
    %156 = vector.shape_cast %155 : vector<4x8xf32> to vector<4x8x1xf32>
    %157 = vector.broadcast %156 : vector<4x8x1xf32> to vector<4x8x16xf32>
    %158 = arith.subf %154, %157 : vector<4x8x16xf32>
    %159 = math.exp %158 : vector<4x8x16xf32>
    %cst_44 = arith.constant dense<0.000000e+00> : vector<4x8xf32>
    %160 = vector.multi_reduction <add>, %159, %cst_44 [2] : vector<4x8x16xf32> to vector<4x8xf32>
    %161 = vector.shape_cast %160 : vector<4x8xf32> to vector<4x8x1xf32>
    %162 = tpu.reciprocal %161 {approx = true} : vector<4x8x1xf32> -> vector<4x8x1xf32>
    %163 = arith.truncf %159 : vector<4x8x16xf32> to vector<4x8x16xbf16>
    "tpu.trace_start"() <{level = 10 : i32, message = "bqk,bkd->bqd"}> : () -> ()
    %cst_45 = arith.constant dense<0.000000e+00> : vector<4x8x8xf32>
    %164 = tpu.matmul %163, %149, %cst_45 {dimension_numbers = #tpu.dot_dimension_numbers<[2], [1], [1], [2], [0, 0, 0, 1, 1, 2], [0], [0]>} : vector<4x8x16xbf16>, vector<4x16x8xbf16>, vector<4x8x8xf32> -> vector<4x8x8xf32>
    "tpu.trace_stop"() : () -> ()
    %165 = vector.broadcast %162 : vector<4x8x1xf32> to vector<4x8x8xf32>
    %166 = arith.mulf %164, %165 : vector<4x8x8xf32>
    %167 = vector.extract_strided_slice %166 {offsets = [0, 0, 0], sizes = [1, 8, 8], strides = [1, 1, 1]} : vector<4x8x8xf32> to vector<1x8x8xf32>
    %168 = vector.shape_cast %167 : vector<1x8x8xf32> to vector<8x8xf32>
    %169 = vector.extract_strided_slice %166 {offsets = [1, 0, 0], sizes = [1, 8, 8], strides = [1, 1, 1]} : vector<4x8x8xf32> to vector<1x8x8xf32>
    %170 = vector.shape_cast %169 : vector<1x8x8xf32> to vector<8x8xf32>
    %171 = vector.extract_strided_slice %166 {offsets = [2, 0, 0], sizes = [1, 8, 8], strides = [1, 1, 1]} : vector<4x8x8xf32> to vector<1x8x8xf32>
    %172 = vector.shape_cast %171 : vector<1x8x8xf32> to vector<8x8xf32>
    %173 = vector.extract_strided_slice %166 {offsets = [3, 0, 0], sizes = [1, 8, 8], strides = [1, 1, 1]} : vector<4x8x8xf32> to vector<1x8x8xf32>
    %174 = vector.shape_cast %173 : vector<1x8x8xf32> to vector<8x8xf32>
    %175 = tpu.concatenate %168, %170, %172, %174 in 1 : vector<8x8xf32>, vector<8x8xf32>, vector<8x8xf32>, vector<8x8xf32> -> vector<8x32xf32>
    %176 = arith.truncf %175 : vector<8x32xf32> to vector<8x32xbf16>
    %c0_46 = arith.constant 0 : index
    %c0_47 = arith.constant 0 : index
    %177 = vector.load %arg12[%c0_46, %c0_47] : memref<32x32xbf16, #tpu.memory_space<vmem>>, vector<32x32xbf16>
    %cst_48 = arith.constant dense<0.000000e+00> : vector<8x32xf32>
    %178 = tpu.matmul %176, %177, %cst_48 {dimension_numbers = #tpu.dot_dimension_numbers<[1], [0], [0], [1], [0, 0, 1, 1], [], []>} : vector<8x32xbf16>, vector<32x32xbf16>, vector<8x32xf32> -> vector<8x32xf32>
    %c0_49 = arith.constant 0 : index
    %c0_50 = arith.constant 0 : index
    %179 = vector.load %arg13[%c0_49, %c0_50] : memref<1x32xf32, #tpu.memory_space<vmem>>, vector<1x32xf32>
    %180 = vector.broadcast %179 : vector<1x32xf32> to vector<8x32xf32>
    %181 = arith.addf %178, %180 : vector<8x32xf32>
    %182 = arith.addf %106, %181 : vector<8x32xf32>
    %cst_51 = arith.constant dense<0.000000e+00> : vector<8xf32>
    %183 = vector.multi_reduction <add>, %182, %cst_51 [1] : vector<8x32xf32> to vector<8xf32>
    %184 = vector.shape_cast %183 : vector<8xf32> to vector<8x1xf32>
    %cst_52 = arith.constant 3.200000e+01 : f32
    %185 = vector.broadcast %cst_52 : f32 to vector<8x1xf32>
    %186 = arith.divf %184, %185 : vector<8x1xf32>
    %187 = vector.broadcast %186 : vector<8x1xf32> to vector<8x32xf32>
    %188 = arith.subf %182, %187 : vector<8x32xf32>
    %189 = arith.mulf %188, %188 : vector<8x32xf32>
    %cst_53 = arith.constant dense<0.000000e+00> : vector<8xf32>
    %190 = vector.multi_reduction <add>, %189, %cst_53 [1] : vector<8x32xf32> to vector<8xf32>
    %191 = vector.shape_cast %190 : vector<8xf32> to vector<8x1xf32>
    %cst_54 = arith.constant 3.200000e+01 : f32
    %192 = vector.broadcast %cst_54 : f32 to vector<8x1xf32>
    %193 = arith.divf %191, %192 : vector<8x1xf32>
    %194 = vector.broadcast %186 : vector<8x1xf32> to vector<8x32xf32>
    %195 = arith.subf %182, %194 : vector<8x32xf32>
    %cst_55 = arith.constant 9.99999974E-6 : f32
    %196 = vector.broadcast %cst_55 : f32 to vector<8x1xf32>
    %197 = arith.addf %193, %196 : vector<8x1xf32>
    %198 = math.rsqrt %197 : vector<8x1xf32>
    %199 = vector.broadcast %198 : vector<8x1xf32> to vector<8x32xf32>
    %200 = arith.mulf %195, %199 : vector<8x32xf32>
    %c0_56 = arith.constant 0 : index
    %c0_57 = arith.constant 0 : index
    %201 = vector.load %arg16[%c0_56, %c0_57] : memref<1x32xf32, #tpu.memory_space<vmem>>, vector<1x32xf32>
    %202 = vector.broadcast %201 : vector<1x32xf32> to vector<8x32xf32>
    %203 = arith.mulf %200, %202 : vector<8x32xf32>
    %c0_58 = arith.constant 0 : index
    %c0_59 = arith.constant 0 : index
    %204 = vector.load %arg17[%c0_58, %c0_59] : memref<1x32xf32, #tpu.memory_space<vmem>>, vector<1x32xf32>
    %205 = vector.broadcast %204 : vector<1x32xf32> to vector<8x32xf32>
    %206 = arith.addf %203, %205 : vector<8x32xf32>
    %207 = arith.truncf %206 : vector<8x32xf32> to vector<8x32xbf16>
    %c0_60 = arith.constant 0 : index
    %c0_61 = arith.constant 0 : index
    %208 = vector.load %arg20[%c0_60, %c0_61] : memref<32x64xbf16, #tpu.memory_space<vmem>>, vector<32x64xbf16>
    %cst_62 = arith.constant dense<0.000000e+00> : vector<8x64xf32>
    %209 = tpu.matmul %207, %208, %cst_62 {dimension_numbers = #tpu.dot_dimension_numbers<[1], [0], [0], [1], [0, 0, 1, 1], [], []>} : vector<8x32xbf16>, vector<32x64xbf16>, vector<8x64xf32> -> vector<8x64xf32>
    %c0_63 = arith.constant 0 : index
    %c0_64 = arith.constant 0 : index
    %210 = vector.load %arg21[%c0_63, %c0_64] : memref<1x64xf32, #tpu.memory_space<vmem>>, vector<1x64xf32>
    %211 = vector.broadcast %210 : vector<1x64xf32> to vector<8x64xf32>
    %212 = arith.addf %209, %211 : vector<8x64xf32>
    %cst_65 = arith.constant 0.000000e+00 : f32
    %213 = vector.broadcast %cst_65 : f32 to vector<8x64xf32>
    %214 = arith.maximumf %212, %213 : vector<8x64xf32>
    %215 = arith.truncf %214 : vector<8x64xf32> to vector<8x64xbf16>
    %c0_66 = arith.constant 0 : index
    %c0_67 = arith.constant 0 : index
    %216 = vector.load %arg22[%c0_66, %c0_67] : memref<64x32xbf16, #tpu.memory_space<vmem>>, vector<64x32xbf16>
    %cst_68 = arith.constant dense<0.000000e+00> : vector<8x32xf32>
    %217 = tpu.matmul %215, %216, %cst_68 {dimension_numbers = #tpu.dot_dimension_numbers<[1], [0], [0], [1], [0, 0, 1, 1], [], []>} : vector<8x64xbf16>, vector<64x32xbf16>, vector<8x32xf32> -> vector<8x32xf32>
    %c0_69 = arith.constant 0 : index
    %c0_70 = arith.constant 0 : index
    %218 = vector.load %arg23[%c0_69, %c0_70] : memref<1x32xf32, #tpu.memory_space<vmem>>, vector<1x32xf32>
    %219 = vector.broadcast %218 : vector<1x32xf32> to vector<8x32xf32>
    %220 = arith.addf %217, %219 : vector<8x32xf32>
    %221 = arith.addf %206, %220 : vector<8x32xf32>
    %cst_71 = arith.constant dense<0.000000e+00> : vector<8xf32>
    %222 = vector.multi_reduction <add>, %221, %cst_71 [1] : vector<8x32xf32> to vector<8xf32>
    %223 = vector.shape_cast %222 : vector<8xf32> to vector<8x1xf32>
    %cst_72 = arith.constant 3.200000e+01 : f32
    %224 = vector.broadcast %cst_72 : f32 to vector<8x1xf32>
    %225 = arith.divf %223, %224 : vector<8x1xf32>
    %226 = vector.broadcast %225 : vector<8x1xf32> to vector<8x32xf32>
    %227 = arith.subf %221, %226 : vector<8x32xf32>
    %228 = arith.mulf %227, %227 : vector<8x32xf32>
    %cst_73 = arith.constant dense<0.000000e+00> : vector<8xf32>
    %229 = vector.multi_reduction <add>, %228, %cst_73 [1] : vector<8x32xf32> to vector<8xf32>
    %230 = vector.shape_cast %229 : vector<8xf32> to vector<8x1xf32>
    %cst_74 = arith.constant 3.200000e+01 : f32
    %231 = vector.broadcast %cst_74 : f32 to vector<8x1xf32>
    %232 = arith.divf %230, %231 : vector<8x1xf32>
    %233 = vector.broadcast %225 : vector<8x1xf32> to vector<8x32xf32>
    %234 = arith.subf %221, %233 : vector<8x32xf32>
    %cst_75 = arith.constant 9.99999974E-6 : f32
    %235 = vector.broadcast %cst_75 : f32 to vector<8x1xf32>
    %236 = arith.addf %232, %235 : vector<8x1xf32>
    %237 = math.rsqrt %236 : vector<8x1xf32>
    %238 = vector.broadcast %237 : vector<8x1xf32> to vector<8x32xf32>
    %239 = arith.mulf %234, %238 : vector<8x32xf32>
    %c0_76 = arith.constant 0 : index
    %c0_77 = arith.constant 0 : index
    %240 = vector.load %arg18[%c0_76, %c0_77] : memref<1x32xf32, #tpu.memory_space<vmem>>, vector<1x32xf32>
    %241 = vector.broadcast %240 : vector<1x32xf32> to vector<8x32xf32>
    %242 = arith.mulf %239, %241 : vector<8x32xf32>
    %c0_78 = arith.constant 0 : index
    %c0_79 = arith.constant 0 : index
    %243 = vector.load %arg19[%c0_78, %c0_79] : memref<1x32xf32, #tpu.memory_space<vmem>>, vector<1x32xf32>
    %244 = vector.broadcast %243 : vector<1x32xf32> to vector<8x32xf32>
    %245 = arith.addf %242, %244 : vector<8x32xf32>
    %246 = vector.shape_cast %245 : vector<8x32xf32> to vector<1x8x32xf32>
    %c0_80 = arith.constant 0 : index
    %c0_81 = arith.constant 0 : index
    %c0_82 = arith.constant 0 : index
    %247 = vector.load %arg24[%c0_80, %c0_81, %c0_82] : memref<1x8x32xf32, #tpu.memory_space<vmem>>, vector<1x8x32xf32>
    tpu.vector_store %arg24[%c0_80, %c0_81, %c0_82], %246 {strides = array<i32>} : memref<1x8x32xf32, #tpu.memory_space<vmem>>, vector<1x8x32xf32>,
    return
  }
  func.func @transform_0(%arg0: i32) -> (i32, i32, i32) {
    %c0_i32 = arith.constant 0 : i32
    %c0_i32_0 = arith.constant 0 : i32
    %c0_i32_1 = arith.constant 0 : i32
    return %arg0, %c0_i32, %c0_i32_0 : i32, i32, i32
  }
  func.func @transform_1(%arg0: i32) -> (i32, i32, i32) {
    %c0_i32 = arith.constant 0 : i32
    %c0_i32_0 = arith.constant 0 : i32
    %c0_i32_1 = arith.constant 0 : i32
    return %arg0, %c0_i32, %c0_i32_0 : i32, i32, i32
  }
  func.func @transform_2(%arg0: i32) -> (i32, i32, i32) {
    %c0_i32 = arith.constant 0 : i32
    %c0_i32_0 = arith.constant 0 : i32
    %c0_i32_1 = arith.constant 0 : i32
    return %arg0, %c0_i32, %c0_i32_0 : i32, i32, i32
  }
  func.func @transform_3(%arg0: i32) -> (i32, i32) {
    %c0_i32 = arith.constant 0 : i32
    %c0_i32_0 = arith.constant 0 : i32
    %c0_i32_1 = arith.constant 0 : i32
    return %c0_i32, %c0_i32_0 : i32, i32
  }
  func.func @transform_4(%arg0: i32) -> (i32, i32) {
    %c0_i32 = arith.constant 0 : i32
    %c0_i32_0 = arith.constant 0 : i32
    %c0_i32_1 = arith.constant 0 : i32
    return %c0_i32, %c0_i32_0 : i32, i32
  }
  func.func @transform_5(%arg0: i32) -> (i32, i32) {
    %c0_i32 = arith.constant 0 : i32
    %c0_i32_0 = arith.constant 0 : i32
    %c0_i32_1 = arith.constant 0 : i32
    return %c0_i32, %c0_i32_0 : i32, i32
  }
  func.func @transform_6(%arg0: i32) -> (i32, i32) {
    %c0_i32 = arith.constant 0 : i32
    %c0_i32_0 = arith.constant 0 : i32
    %c0_i32_1 = arith.constant 0 : i32
    return %c0_i32, %c0_i32_0 : i32, i32
  }
  func.func @transform_7(%arg0: i32) -> (i32, i32) {
    %c0_i32 = arith.constant 0 : i32
    %c0_i32_0 = arith.constant 0 : i32
    %c0_i32_1 = arith.constant 0 : i32
    return %c0_i32, %c0_i32_0 : i32, i32
  }
  func.func @transform_8(%arg0: i32) -> (i32, i32) {
    %c0_i32 = arith.constant 0 : i32
    %c0_i32_0 = arith.constant 0 : i32
    %c0_i32_1 = arith.constant 0 : i32
    return %c0_i32, %c0_i32_0 : i32, i32
  }
  func.func @transform_9(%arg0: i32) -> (i32, i32) {
    %c0_i32 = arith.constant 0 : i32
    %c0_i32_0 = arith.constant 0 : i32
    %c0_i32_1 = arith.constant 0 : i32
    return %c0_i32, %c0_i32_0 : i32, i32
  }
  func.func @transform_10(%arg0: i32) -> (i32, i32) {
    %c0_i32 = arith.constant 0 : i32
    %c0_i32_0 = arith.constant 0 : i32
    %c0_i32_1 = arith.constant 0 : i32
    return %c0_i32, %c0_i32_0 : i32, i32
  }
  func.func @transform_11(%arg0: i32) -> (i32, i32) {
    %c0_i32 = arith.constant 0 : i32
    %c0_i32_0 = arith.constant 0 : i32
    %c0_i32_1 = arith.constant 0 : i32
    return %c0_i32, %c0_i32_0 : i32, i32
  }
  func.func @transform_12(%arg0: i32) -> (i32, i32) {
    %c0_i32 = arith.constant 0 : i32
    %c0_i32_0 = arith.constant 0 : i32
    %c0_i32_1 = arith.constant 0 : i32
    return %c0_i32, %c0_i32_0 : i32, i32
  }
  func.func @transform_13(%arg0: i32) -> (i32, i32) {
    %c0_i32 = arith.constant 0 : i32
    %c0_i32_0 = arith.constant 0 : i32
    %c0_i32_1 = arith.constant 0 : i32
    return %c0_i32, %c0_i32_0 : i32, i32
  }
  func.func @transform_14(%arg0: i32) -> (i32, i32) {
    %c0_i32 = arith.constant 0 : i32
    %c0_i32_0 = arith.constant 0 : i32
    %c0_i32_1 = arith.constant 0 : i32
    return %c0_i32, %c0_i32_0 : i32, i32
  }
  func.func @transform_15(%arg0: i32) -> (i32, i32) {
    %c0_i32 = arith.constant 0 : i32
    %c0_i32_0 = arith.constant 0 : i32
    %c0_i32_1 = arith.constant 0 : i32
    return %c0_i32, %c0_i32_0 : i32, i32
  }
  func.func @transform_16(%arg0: i32) -> (i32, i32) {
    %c0_i32 = arith.constant 0 : i32
    %c0_i32_0 = arith.constant 0 : i32
    %c0_i32_1 = arith.constant 0 : i32
    return %c0_i32, %c0_i32_0 : i32, i32
  }
  func.func @transform_17(%arg0: i32) -> (i32, i32) {
    %c0_i32 = arith.constant 0 : i32
    %c0_i32_0 = arith.constant 0 : i32
    %c0_i32_1 = arith.constant 0 : i32
    return %c0_i32, %c0_i32_0 : i32, i32
  }
  func.func @transform_18(%arg0: i32) -> (i32, i32) {
    %c0_i32 = arith.constant 0 : i32
    %c0_i32_0 = arith.constant 0 : i32
    %c0_i32_1 = arith.constant 0 : i32
    return %c0_i32, %c0_i32_0 : i32, i32
  }
  func.func @transform_19(%arg0: i32) -> (i32, i32) {
    %c0_i32 = arith.constant 0 : i32
    %c0_i32_0 = arith.constant 0 : i32
    %c0_i32_1 = arith.constant 0 : i32
    return %c0_i32, %c0_i32_0 : i32, i32
  }
  func.func @transform_20(%arg0: i32) -> (i32, i32) {
    %c0_i32 = arith.constant 0 : i32
    %c0_i32_0 = arith.constant 0 : i32
    %c0_i32_1 = arith.constant 0 : i32
    return %c0_i32, %c0_i32_0 : i32, i32
  }
  func.func @transform_21(%arg0: i32) -> (i32, i32) {
    %c0_i32 = arith.constant 0 : i32
    %c0_i32_0 = arith.constant 0 : i32
    %c0_i32_1 = arith.constant 0 : i32
    return %c0_i32, %c0_i32_0 : i32, i32
  }
  func.func @transform_22(%arg0: i32) -> (i32, i32) {
    %c0_i32 = arith.constant 0 : i32
    %c0_i32_0 = arith.constant 0 : i32
    %c0_i32_1 = arith.constant 0 : i32
    return %c0_i32, %c0_i32_0 : i32, i32
  }
  func.func @transform_23(%arg0: i32) -> (i32, i32, i32) {
    %c0_i32 = arith.constant 0 : i32
    %c0_i32_0 = arith.constant 0 : i32
    %c0_i32_1 = arith.constant 0 : i32
    return %arg0, %c0_i32, %c0_i32_0 : i32, i32, i32
  }
}

</mosaic_0001>

<bundles_post_ra>
// kernel: tpu_custom_call.1
= control target key start
LH: loop header
LB: loop body
LE: loop exit
PB: predicated region body
PF: predicated region fallthrough
CT: control target
= control target key end

     0   :  { %s4243_s0 = inlined_call_operand.vmem [shape: f32[2,8,32], index: 0, kind: input, shape index: {}]   ;;  %s4244_s1 = inlined_call_operand.vmem [shape: f32[2,16,32], index: 1, kind: input, shape index: {}]   ;;  %s4245_s2 = inlined_call_operand.hbm [shape: f32[2,1,16], index: 2, kind: input, shape index: {}]   ;;  %s4246_s3 = inlined_call_operand.hbm [shape: bf16[32,96], index: 3, kind: input, shape index: {}]   ;;  %s4247_s4 = inlined_call_operand.vmem [shape: f32[1,96], index: 4, kind: input, shape index: {}]   ;;  %s4248_s5 = inlined_call_operand.hbm [shape: bf16[32,32], index: 5, kind: input, shape index: {}]   ;;  %s4249_s6 = inlined_call_operand.hbm [shape: f32[1,32], index: 6, kind: input, shape index: {}]   ;;  %s4250_s7 = inlined_call_operand.hbm [shape: bf16[32,32], index: 7, kind: input, shape index: {}]   ;;  %s4251_s8 = inlined_call_operand.hbm [shape: f32[1,32], index: 8, kind: input, shape index: {}]   ;;  %s4252_s9 = inlined_call_operand.vmem [shape: bf16[32,64], index: 9, kind: input, shape index: {}]   ;;  %s4253_s10 = inlined_call_operand.hbm [shape: f32[1,64], index: 10, kind: input, shape index: {}]   ;;  %s4254_s11 = inlined_call_operand.hbm [shape: bf16[32,32], index: 11, kind: input, shape index: {}]   ;;  %s4255_s12 = inlined_call_operand.hbm [shape: f32[1,32], index: 12, kind: input, shape index: {}]   ;;  %s4256_s13 = inlined_call_operand.hbm [shape: f32[1,32], index: 13, kind: input, shape index: {}]   ;;  %s4257_s14 = inlined_call_operand.vmem [shape: f32[1,32], index: 14, kind: input, shape index: {}]   ;;  %s4258_s15 = inlined_call_operand.vmem [shape: f32[1,32], index: 15, kind: input, shape index: {}]   ;;  %s4259_s16 = inlined_call_operand.vmem [shape: f32[1,32], index: 16, kind: input, shape index: {}]   ;;  %s4260_s17 = inlined_call_operand.vmem [shape: f32[1,32], index: 17, kind: input, shape index: {}]   ;;  %s4261_s18 = inlined_call_operand.vmem [shape: f32[1,32], index: 18, kind: input, shape index: {}]   ;;  %s4262_s19 = inlined_call_operand.vmem [shape: bf16[32,64], index: 19, kind: input, shape index: {}]   ;;  %s4263_s20 = inlined_call_operand.vmem [shape: f32[1,64], index: 20, kind: input, shape index: {}]   ;;  %s4264_s21 = inlined_call_operand.vmem [shape: bf16[64,32], index: 21, kind: input, shape index: {}]   ;;  %s4265_s22 = inlined_call_operand.vmem [shape: f32[1,32], index: 22, kind: input, shape index: {}]   ;;  %s4266_s23 = inlined_call_operand.hbm [shape: f32[2,8,32], index: 23, kind: output, shape index: {}]  }
   0x1   :  { %4290 = sst [smem:[#allocation27_spill]] %s4243_s0 }
   0x2   :  { %4291 = sst [smem:[#allocation28_spill]] %s4244_s1 }
   0x3   :  { %4292 = sst [smem:[#allocation29_spill]] %s4245_s2 }
   0x4   :  { %4293 = sst [smem:[#allocation30_spill]] %s4246_s3 }
   0x5   :  { %4294 = sst [smem:[#allocation31_spill]] %s4247_s4 }
   0x6   :  { %4295 = sst [smem:[#allocation32_spill]] %s4248_s5 }
   0x7   :  { %4296 = sst [smem:[#allocation33_spill]] %s4249_s6 }
   0x8   :  { %4297 = sst [smem:[#allocation34_spill]] %s4250_s7 }
   0x9   :  { %4298 = sst [smem:[#allocation35_spill]] %s4251_s8 }
   0xa   :  { %4299 = sst [smem:[#allocation36_spill]] %s4252_s9 }
   0xb   :  { %4300 = sst [smem:[#allocation37_spill]] %s4253_s10 }
   0xc   :  { %4301 = sst [smem:[#allocation38_spill]] %s4254_s11 }
   0xd   :  { %4302 = sst [smem:[#allocation39_spill]] %s4258_s15 }
   0xe   :  { %4303 = sst [smem:[#allocation40_spill]] %s4259_s16 }
   0xf   :  { %4304 = sst [smem:[#allocation41_spill]] %s4260_s17 }
  0x10   :  { %4305 = sst [smem:[#allocation42_spill]] %s4261_s18 }
  0x11   :  { %4306 = sst [smem:[#allocation43_spill]] %s4262_s19 }
  0x12   :  { %4307 = sst [smem:[#allocation44_spill]] %s4263_s20 }
  0x13   :  { %4308 = sst [smem:[#allocation45_spill]] %s4264_s21 }
  0x14   :  { %4309 = sst [smem:[#allocation46_spill]] %s4265_s22 }
  0x15   :  { %4310 = sst [smem:[#allocation47_spill]] %s4266_s23 }
  0x16   :  { %28 = vsyncpa [#allocation3], 0 }
  0x17   :  { %30 = vsyncpa [#allocation3 + $0x1], 0 }
  0x18   :  { %31 = vsyncpa [#allocation6], 0 }
  0x19   :  { %32 = vsyncpa [#allocation9], 0 }
  0x1a   :  { %33 = vsyncpa [#allocation12], 0 }
  0x1b   :  { %34 = vsyncpa [#allocation15], 0 }
  0x1c   :  { %35 = vsyncpa [#allocation18], 0 }
  0x1d   :  { %36 = vsyncpa [#allocation4], 0 }
  0x1e   :  { %38 = vsyncpa [#allocation4 + $0x1], 0  ;;  %s3598_s4 = smov 0   ;;  %s3600_s30 = smov 0  }
  0x1f   :  { %s3602_s24 = smov 0   ;;  %s3604_s25 = smov 0  }
  0x20 LB: > { %s3454_s5 = smov [#allocation5]   ;;  %s3619_s26 = sadd.s32 4294967295, %s3452_s25   ;;  %s3452_s25 = sphi %s3604_s25, %s4364_s25   ;;  %s3448_s24 = sphi %s3602_s24, %s4363_s24   ;;  %s3444_s30 = sphi %s3600_s30, %s4362_s30   ;;  %s3440_s4 = sphi %s3598_s4, %s4361_s4  }
  0x21   : > { %s585_s1 = sshll.u32 %s3454_s5, 4  ;;  %p2585_p0 = scmp.ge.s32.totalorder %s3452_s25, 1  ;;  %s3624_s1 = int_to_ptr.vmem [resolvable:$true] %s585_s1 }
  0x22   : > { %p4277_p1 = scmp.eq.s32.totalorder %s3619_s26, 0  ;;  %p573_p2 = scmp.lt.s32.totalorder %s3452_s25, 3 }
  0x23   : > { %s3455_s6 = smov [#allocation8]   ;;  %s3456_s28 = smov [#allocation11]  }
  0x24   : > { %p3626_p3 = pnand %p2585_p0, %p573_p2  ;;  %s615_s27 = sshll.u32 %s3455_s6, 4  ;;  %s3639_s27 = int_to_ptr.vmem [resolvable:$true] %s615_s27 }
  0x25   : > { %s639_s29 = sshll.u32 %s3456_s28, 4  ;;  %s4313_s5 = sld [smem:[#allocation30_spill]]  ;;  %s3641_s29 = int_to_ptr.vmem [resolvable:$true] %s639_s29 }
  0x26   : > { %s4311_s2 = scalar_select %p3626_p3, 1, 0 }
  0x27   : > { %p2920_p5 = pneg %p3626_p3 }
  0x29   : > { %p3635_p6 = pnand %p2920_p5, %p4277_p1 }
  0x2b   : > { %s3084_s23 = scalar_lea.hbm %s4313_s5, 256  ;;  %p3651_p8 = pneg %p3635_p6 }
  0x2c   : > { %p3085_p7 = scmp.ne.s32.totalorder %s4313_s5, %s3084_s23  ;;  %p3091_p11 = scmp.lt.u32.totalorder %s3084_s23, %s4313_s5 }
  0x2e   : > { %p3087_p9 = pnand %p3651_p8, %p3085_p7 }
  0x30   : > { %p3088_p10 = pneg %p3087_p9 }
  0x32   : > { %p3093_p12 = pnand %p3091_p11, %p3088_p10 }
  0x34   : > { %3096 = shalt.err (!%p3093_p12)
}
  0x35   : > { %s3097_s17 = scalar_lea.vmem %s3624_s1, 256  ;;  %p3105_p5 = scmp.lt.s32.totalorder %s3624_s1, %s3624_s1 }
  0x36   : > { %p3098_p13 = scmp.ne.s32.totalorder %s3624_s1, %s3097_s17  ;;  %p3106_p4 = scmp.lt.s32.totalorder %s3097_s17, %s3097_s17 }
  0x38   : > { %p3100_p0 = pnand %p3098_p13, %p3651_p8  ;;  %p3107_p7 = por %p3106_p4, %p3105_p5 }
  0x3a   : > { %p3101_p2 = pneg %p3100_p0 }
  0x3c   : > { %p3108_p9 = pnand %p3107_p7, %p3101_p2 }
  0x3e   : > { %3111 = shalt.err (!%p3108_p9)
}
  0x3f   : > { %s4275_s18 = smov 64   ;;  %s3458_s22 = smov 4  }
  0x40   : > { %2923 = dma.hbm_to_vmem [thread:$0]  (!%p3635_p6), %s4313_s5, 256, %s3624_s1, [#allocation6], %s4275_s18, %s4275_s18, %s3458_s22  }
  0x41   : > { %s4315_s20 = sld [smem:[#allocation33_spill]] }
  0x47   : > { %s3112_s17 = scalar_lea.hbm %s4315_s20, 16 }
  0x48   : > { %p3113_p4 = scmp.ne.s32.totalorder %s4315_s20, %s3112_s17  ;;  %p3119_p12 = scmp.lt.u32.totalorder %s3112_s17, %s4315_s20 }
  0x4a   : > { %p3115_p10 = pnand %p3113_p4, %p3651_p8 }
  0x4c   : > { %p3116_p11 = pneg %p3115_p10 }
  0x4e   : > { %p3121_p13 = pnand %p3119_p12, %p3116_p11 }
  0x50   : > { %3124 = shalt.err (!%p3121_p13)
}
  0x51   : > { %s3125_s1 = scalar_lea.vmem %s3639_s27, 16  ;;  %s3132_s15 = scalar_lea.vmem %s3639_s27, 32 }
  0x52   : > { %p3126_p0 = scmp.ne.s32.totalorder %s3639_s27, %s3125_s1  ;;  %p3133_p7 = scmp.lt.s32.totalorder %s3639_s27, %s3639_s27 }
  0x53   : > { %p3134_p9 = scmp.lt.s32.totalorder %s3132_s15, %s3125_s1 }
  0x54   : > { %p3128_p2 = pnand %p3126_p0, %p3651_p8 }
  0x55   : > { %p3135_p4 = por %p3134_p9, %p3133_p7 }
  0x56   : > { %p3129_p5 = pneg %p3128_p2 }
  0x58   : > { %p3136_p10 = pnand %p3135_p4, %p3129_p5 }
  0x5a   : > { %3139 = shalt.err (!%p3136_p10)
}
  0x5b   : > { %2929 = dma.hbm_to_vmem [thread:$0]  (!%p3635_p6), %s4315_s20, 16, %s3639_s27, [#allocation9]  }
  0x5c   : > { %s4316_s8 = sld [smem:[#allocation35_spill]] }
  0x62   : > { %s3140_s3 = scalar_lea.hbm %s4316_s8, 16 }
  0x63   : > { %p3141_p11 = scmp.ne.s32.totalorder %s4316_s8, %s3140_s3  ;;  %p3147_p0 = scmp.lt.u32.totalorder %s3140_s3, %s4316_s8 }
  0x65   : > { %p3143_p12 = pnand %p3141_p11, %p3651_p8 }
  0x67   : > { %p3144_p13 = pneg %p3143_p12 }
  0x69   : > { %p3149_p2 = pnand %p3147_p0, %p3144_p13 }
  0x6b   : > { %3152 = shalt.err (!%p3149_p2)
}
  0x6c   : > { %s3153_s27 = scalar_lea.vmem %s3641_s29, 16  ;;  %s3160_s15 = scalar_lea.vmem %s3641_s29, 32 }
  0x6d   : > { %p3154_p5 = scmp.ne.s32.totalorder %s3641_s29, %s3153_s27  ;;  %p3161_p4 = scmp.lt.s32.totalorder %s3641_s29, %s3641_s29 }
  0x6e   : > { %p3162_p10 = scmp.lt.s32.totalorder %s3160_s15, %s3153_s27 }
  0x6f   : > { %p3156_p7 = pnand %p3154_p5, %p3651_p8 }
  0x70   : > { %p3163_p11 = por %p3162_p10, %p3161_p4 }
  0x71   : > { %p3157_p9 = pneg %p3156_p7 }
  0x73   : > { %p3164_p12 = pnand %p3163_p11, %p3157_p9 }
  0x75   : > { %3167 = shalt.err (!%p3164_p12)
}
  0x76   : > { %2935 = dma.hbm_to_vmem [thread:$0]  (!%p3635_p6), %s4316_s8, 16, %s3641_s29, [#allocation12]  }
  0x77   : > { %s3459_s21 = smov [#allocation14]   ;;  %s3460_s3 = smov [#allocation7]  }
  0x78   : > { %s663_s23 = sshll.u32 %s3459_s21, 4  ;;  %s601_s0 = sshll.u32 %s3460_s3, 4  ;;  %s664_s23 = int_to_ptr.vmem [resolvable:$true] %s663_s23  ;;  %s602_s0 = int_to_ptr.vmem [resolvable:$true] %s601_s0 }
  0x79   : > { %s4317_s11 = sld [smem:[#allocation38_spill]] }
  0x7f   : > { %s3168_s1 = scalar_lea.hbm %s4317_s11, 256 }
  0x80   : > { %p3169_p13 = scmp.ne.s32.totalorder %s4317_s11, %s3168_s1  ;;  %p3175_p5 = scmp.lt.u32.totalorder %s3168_s1, %s4317_s11 }
  0x82   : > { %p3171_p0 = pnand %p3169_p13, %p3651_p8 }
  0x84   : > { %p3172_p2 = pneg %p3171_p0 }
  0x86   : > { %p3177_p7 = pnand %p3175_p5, %p3172_p2 }
  0x88   : > { %3180 = shalt.err (!%p3177_p7)
}
  0x89   : > { %s3181_s29 = scalar_lea.vmem %s664_s23, 256  ;;  %p3189_p11 = scmp.lt.s32.totalorder %s664_s23, %s664_s23 }
  0x8a   : > { %p3182_p9 = scmp.ne.s32.totalorder %s664_s23, %s3181_s29  ;;  %p3190_p12 = scmp.lt.s32.totalorder %s3181_s29, %s3181_s29 }
  0x8c   : > { %p3184_p4 = pnand %p3182_p9, %p3651_p8  ;;  %p3191_p1 = por %p3190_p12, %p3189_p11 }
  0x8e   : > { %p3185_p10 = pneg %p3184_p4 }
  0x90   : > { %p3192_p3 = pnand %p3191_p1, %p3185_p10 }
  0x92   : > { %3195 = shalt.err (!%p3192_p3)
}
  0x93   : > { %s4318_s19 = smov 64   ;;  %s4319_s17 = sld [smem:[#allocation32_spill]] }
  0x94   : > { %2941 = dma.hbm_to_vmem [thread:$0]  (!%p3635_p6), %s4317_s11, 256, %s664_s23, [#allocation15], %s4318_s19, %s4318_s19, %s3458_s22  }
  0x99   : > { %s3196_s1 = scalar_lea.hbm %s4319_s17, 256 }
  0x9a   : > { %p3197_p1 = scmp.ne.s32.totalorder %s4319_s17, %s3196_s1  ;;  %p3203_p0 = scmp.lt.u32.totalorder %s3196_s1, %s4319_s17 }
  0x9c   : > { %p3199_p3 = pnand %p3197_p1, %p3651_p8 }
  0x9e   : > { %p3200_p13 = pneg %p3199_p3 }
  0xa0   : > { %p3205_p2 = pnand %p3203_p0, %p3200_p13 }
  0xa2   : > { %3208 = shalt.err (!%p3205_p2)
}
  0xa3   : > { %s3209_s18 = scalar_lea.vmem %s602_s0, 256  ;;  %p3217_p4 = scmp.lt.s32.totalorder %s602_s0, %s602_s0 }
  0xa4   : > { %p3210_p5 = scmp.ne.s32.totalorder %s602_s0, %s3209_s18  ;;  %p3218_p10 = scmp.lt.s32.totalorder %s3209_s18, %s3209_s18 }
  0xa6   : > { %p3212_p7 = pnand %p3210_p5, %p3651_p8  ;;  %p3219_p11 = por %p3218_p10, %p3217_p4 }
  0xa8   : > { %p3213_p9 = pneg %p3212_p7 }
  0xaa   : > { %p3220_p12 = pnand %p3219_p11, %p3213_p9 }
  0xac   : > { %3223 = shalt.err (!%p3220_p12)
}
  0xad   : > { %2926 = dma.hbm_to_vmem [thread:$0]  (!%p3635_p6), %s4319_s17, 256, %s602_s0, [#allocation6], %s4318_s19, %s4318_s19, %s3458_s22  }
  0xae   : > { %s3461_s3 = smov [#allocation10]   ;;  %s3462_s1 = smov [#allocation13]  }
  0xaf   : > { %s625_s28 = sshll.u32 %s3461_s3, 4  ;;  %s653_s27 = sshll.u32 %s3462_s1, 4  ;;  %s626_s28 = int_to_ptr.vmem [resolvable:$true] %s625_s28  ;;  %s654_s27 = int_to_ptr.vmem [resolvable:$true] %s653_s27 }
  0xb0   : > { %s4320_s29 = sld [smem:[#allocation34_spill]] }
  0xb6   : > { %s3224_s18 = scalar_lea.hbm %s4320_s29, 256 }
  0xb7   : > { %p3225_p1 = scmp.ne.s32.totalorder %s4320_s29, %s3224_s18  ;;  %p3231_p0 = scmp.lt.u32.totalorder %s3224_s18, %s4320_s29 }
  0xb9   : > { %p3227_p3 = pnand %p3225_p1, %p3651_p8 }
  0xbb   : > { %p3228_p13 = pneg %p3227_p3 }
  0xbd   : > { %p3233_p2 = pnand %p3231_p0, %p3228_p13 }
  0xbf   : > { %3236 = shalt.err (!%p3233_p2)
}
  0xc0   : > { %s3237_s0 = scalar_lea.vmem %s626_s28, 256  ;;  %p3245_p4 = scmp.lt.s32.totalorder %s626_s28, %s626_s28 }
  0xc1   : > { %p3238_p5 = scmp.ne.s32.totalorder %s626_s28, %s3237_s0  ;;  %p3246_p10 = scmp.lt.s32.totalorder %s3237_s0, %s3237_s0 }
  0xc3   : > { %p3240_p7 = pnand %p3238_p5, %p3651_p8  ;;  %p3247_p11 = por %p3246_p10, %p3245_p4 }
  0xc5   : > { %p3241_p9 = pneg %p3240_p7 }
  0xc7   : > { %p3248_p12 = pnand %p3247_p11, %p3241_p9 }
  0xc9   : > { %3251 = shalt.err (!%p3248_p12)
}
  0xca   : > { %2932 = dma.hbm_to_vmem [thread:$0]  (!%p3635_p6), %s4320_s29, 256, %s626_s28, [#allocation9], %s4318_s19, %s4318_s19, %s3458_s22  }
  0xcb   : > { %s4321_s10 = sld [smem:[#allocation37_spill]] }
  0xd1   : > { %s3252_s3 = scalar_lea.hbm %s4321_s10, 16 }
  0xd2   : > { %p3253_p1 = scmp.ne.s32.totalorder %s4321_s10, %s3252_s3  ;;  %p3259_p0 = scmp.lt.u32.totalorder %s3252_s3, %s4321_s10 }
  0xd4   : > { %p3255_p3 = pnand %p3253_p1, %p3651_p8 }
  0xd6   : > { %p3256_p13 = pneg %p3255_p3 }
  0xd8   : > { %p3261_p2 = pnand %p3259_p0, %p3256_p13 }
  0xda   : > { %3264 = shalt.err (!%p3261_p2)
}
  0xdb   : > { %s3265_s23 = scalar_lea.vmem %s654_s27, 16  ;;  %s3272_s22 = scalar_lea.vmem %s654_s27, 32 }
  0xdc   : > { %p3266_p5 = scmp.ne.s32.totalorder %s654_s27, %s3265_s23  ;;  %p3273_p4 = scmp.lt.s32.totalorder %s654_s27, %s654_s27 }
  0xdd   : > { %p3274_p10 = scmp.lt.s32.totalorder %s3272_s22, %s3265_s23 }
  0xde   : > { %p3268_p7 = pnand %p3266_p5, %p3651_p8 }
  0xdf   : > { %p3275_p11 = por %p3274_p10, %p3273_p4 }
  0xe0   : > { %p3269_p9 = pneg %p3268_p7 }
  0xe2   : > { %p3276_p12 = pnand %p3275_p11, %p3269_p9 }
  0xe4   : > { %3279 = shalt.err (!%p3276_p12)
}
  0xe5   : > { %2938 = dma.hbm_to_vmem [thread:$0]  (!%p3635_p6), %s4321_s10, 16, %s654_s27, [#allocation12]  }
  0xe6   : > { %s3463_s0 = smov [#allocation16]   ;;  %s3464_s11 = smov [#allocation17]  }
  0xe7   : > { %s677_s8 = sshll.u32 %s3463_s0, 4  ;;  %s688_s5 = sshll.u32 %s3464_s11, 4  ;;  %s678_s8 = int_to_ptr.vmem [resolvable:$true] %s677_s8  ;;  %s689_s5 = int_to_ptr.vmem [resolvable:$true] %s688_s5 }
  0xe8   : > { %s3280_s1 = scalar_lea.hbm %s4255_s12, 16 }
  0xe9   : > { %p3281_p1 = scmp.ne.s32.totalorder %s4255_s12, %s3280_s1  ;;  %p3287_p0 = scmp.lt.u32.totalorder %s3280_s1, %s4255_s12 }
  0xeb   : > { %p3283_p3 = pnand %p3281_p1, %p3651_p8 }
  0xed   : > { %p3284_p13 = pneg %p3283_p3 }
  0xef   : > { %p3289_p2 = pnand %p3287_p0, %p3284_p13 }
  0xf1   : > { %3292 = shalt.err (!%p3289_p2)
}
  0xf2   : > { %s3293_s27 = scalar_lea.vmem %s678_s8, 16  ;;  %s3300_s22 = scalar_lea.vmem %s678_s8, 32 }
  0xf3   : > { %p3294_p5 = scmp.ne.s32.totalorder %s678_s8, %s3293_s27  ;;  %p3301_p4 = scmp.lt.s32.totalorder %s678_s8, %s678_s8 }
  0xf4   : > { %p3302_p10 = scmp.lt.s32.totalorder %s3300_s22, %s3293_s27 }
  0xf5   : > { %p3296_p7 = pnand %p3294_p5, %p3651_p8 }
  0xf6   : > { %p3303_p11 = por %p3302_p10, %p3301_p4 }
  0xf7   : > { %p3297_p9 = pneg %p3296_p7 }
  0xf9   : > { %p3304_p12 = pnand %p3303_p11, %p3297_p9 }
  0xfb   : > { %3307 = shalt.err (!%p3304_p12)
}
  0xfc   : > { %2944 = dma.hbm_to_vmem [thread:$0]  (!%p3635_p6), %s4255_s12, 16, %s678_s8, [#allocation15]  }
  0xfd   : > { %s3308_s21 = scalar_lea.hbm %s4256_s13, 16 }
  0xfe   : > { %p3309_p1 = scmp.ne.s32.totalorder %s4256_s13, %s3308_s21  ;;  %p3315_p0 = scmp.lt.u32.totalorder %s3308_s21, %s4256_s13 }
 0x100   : > { %p3311_p3 = pnand %p3309_p1, %p3651_p8 }
 0x102   : > { %p3312_p13 = pneg %p3311_p3 }
 0x104   : > { %p3317_p2 = pnand %p3315_p0, %p3312_p13 }
 0x106   : > { %3320 = shalt.err (!%p3317_p2)
}
 0x107   : > { %s3321_s18 = scalar_lea.vmem %s689_s5, 16  ;;  %s3328_s8 = scalar_lea.vmem %s689_s5, 32 }
 0x108   : > { %p3322_p5 = scmp.ne.s32.totalorder %s689_s5, %s3321_s18  ;;  %p3329_p4 = scmp.lt.s32.totalorder %s689_s5, %s689_s5 }
 0x109   : > { %p3330_p10 = scmp.lt.s32.totalorder %s3328_s8, %s3321_s18 }
 0x10a   : > { %p3324_p7 = pnand %p3322_p5, %p3651_p8 }
 0x10b   : > { %p3331_p11 = por %p3330_p10, %p3329_p4 }
 0x10c   : > { %p3325_p9 = pneg %p3324_p7 }
 0x10e   : > { %p3332_p12 = pnand %p3331_p11, %p3325_p9 }
 0x110   : > { %3335 = shalt.err (!%p3332_p12)
}
 0x111   : > { %2947 = dma.hbm_to_vmem [thread:$0]  (!%p3635_p6), %s4256_s13, 16, %s689_s5, [#allocation18]  }
 0x112   : > { %s2584_s6 = sadd.s32 4294967294, %s3452_s25   ;;  %s3842_s7 = sadd.s32 1, %s3452_s25  }
 0x113   : > { %s103_s22 = sadd.s32 1, %s3448_s24  ;;  %s100_s19 = ssub.s32 %s3452_s25, %s3842_s7 }
 0x114   : > { %p110_p8 = scmp.ne.s32.totalorder %s3448_s24, %s3444_s30  ;;  %p101_p1 = scmp.eq.s32.totalorder %s100_s19, 0 }
 0x115   : > { %p111_p3 = scmp.eq.s32.totalorder %s3452_s25, 0  ;;  %p116_p13 = scmp.ne.s32.totalorder %s3444_s30, %s3440_s4 }
 0x116   : > { %p560_p0 = scmp.eq.s32.totalorder %s3619_s26, 1  ;;  %p4322_p5 = scmp.eq.s32.totalorder %s3619_s26, 0 }
 0x117   : > { %s3854_s28 = scalar_select %p101_p1, %s3448_s24, %s103_s22  }
 0x118   : > { %p112_p2 = por %p111_p3, %p110_p8  ;;  %p3858_p7 = por %p4322_p5, %p116_p13 }
 0x119   : > { %p3862_p6 = por %p560_p0, %p110_p8  ;;  %p566_p9 = scmp.eq.s32.totalorder %s2584_s6, 1 }
 0x11a   : > { %p2965_p4 = scmp.lt.s32.totalorder %s3452_s25, 2  ;;  %s741_s11 = sand.u32 1, %s3448_s24  }
 0x11b   : > { %s4324_s5 = scalar_select %p3862_p6, 1, 0 }
 0x11c   : > { %p3868_p10 = por %p566_p9, %p116_p13  ;;  %s2596_s3 = sshll.u32 %s3452_s25, 4 }
 0x11d   : > { %s4326_s16 = sld [smem:[#allocation29_spill]]  ;;  %s744_s8 = scalar_lea.vmem [#allocation2], %s741_s11 }
 0x11e   : > { %s4325_s21 = scalar_select %p3868_p10, 1, 0 }
 0x11f   : > { %s751_s23 = sshll.u32 %s744_s8, 4  ;;  %p3880_p11 = pnand %p2965_p4, %p112_p2  ;;  %s3878_s23 = int_to_ptr.vmem [resolvable:$true] %s751_s23 }
 0x120   : > { %s742_s6 = scalar_lea.sflag [#allocation3], %s741_s11 }
 0x121   : > { %p3338_p8 = pneg %p3880_p11 }
 0x123   : > { %s3876_s18 = scalar_lea.hbm %s4326_s16, %s2596_s3  ;;  %s3341_s1 = scalar_lea.hbm %s4326_s16, 32 }
 0x124   : > { %s3336_s22 = scalar_lea.hbm %s3876_s18, 16  ;;  %p3342_p13 = scmp.lt.u32.totalorder %s3876_s18, %s4326_s16 }
 0x125   : > { %p3337_p12 = scmp.ne.s32.totalorder %s3876_s18, %s3336_s22  ;;  %p3343_p0 = scmp.lt.u32.totalorder %s3341_s1, %s3336_s22 }
 0x126   : > { %p3345_p5 = scmp.lt.u32.totalorder %s3336_s22, %s3876_s18 }
 0x127   : > { %p3339_p1 = pnand %p3338_p8, %p3337_p12  ;;  %p3344_p2 = por %p3343_p0, %p3342_p13 }
 0x129   : > { %p3340_p3 = pneg %p3339_p1  ;;  %p3346_p9 = por %p3345_p5, %p3344_p2 }
 0x12b   : > { %p3347_p4 = pnand %p3346_p9, %p3340_p3 }
 0x12d   : > { %3350 = shalt.err (!%p3347_p4)
}
 0x12e   : > { %s3351_s11 = scalar_lea.vmem %s3878_s23, 16  ;;  %s3465_s19 = smov [#allocation2]  }
 0x12f   : > { %p3352_p12 = scmp.ne.s32.totalorder %s3878_s23, %s3351_s11  ;;  %s3356_s3 = sshll.u32 %s3465_s19, 4  ;;  %s3357_s3 = int_to_ptr.vmem [resolvable:$false] %s3356_s3 }
 0x130   : > { %s3358_s15 = scalar_lea.vmem %s3357_s3, 32  ;;  %p3359_p6 = scmp.lt.s32.totalorder %s3878_s23, %s3357_s3 }
 0x131   : > { %p3354_p1 = pnand %p3352_p12, %p3338_p8  ;;  %p3360_p13 = scmp.lt.s32.totalorder %s3358_s15, %s3351_s11 }
 0x133   : > { %p3355_p10 = pneg %p3354_p1  ;;  %p3361_p0 = por %p3360_p13, %p3359_p6 }
 0x135   : > { %p3362_p2 = pnand %p3361_p0, %p3355_p10 }
 0x137   : > { %3365 = shalt.err (!%p3362_p2)
}
 0x138   : > { %2951 = dma.hbm_to_vmem [thread:$0]  (!%p3880_p11), %s3876_s18, 16, %s3878_s23, %s742_s6  }
 0x139   : > { %p4328_p3 = scmp.ne.s32.totalorder %s4311_s2, 0 }
 0x13a   : > { %s3912_s22 = sand.u32 (!%p4328_p3), 1, %s3444_s30  }
 0x13b   : > { %760 = sbr.rel (%p4328_p3) target bundleno = 4385 (0x1121), region = 112  ;;  %s763_s1 = scalar_lea.sflag (!%p4328_p3), [#allocation3], %s3912_s22 }
 0x142   : > { %3411 = dma.done.wait (%p3858_p7), %s763_s1, 16  }
 0x143   : > { %3413 = vsyncadd (%p3858_p7), %s763_s1, 4294967280  ;;  %p4329_p6 = scmp.eq.s32.totalorder %s3619_s26, 0 }
 0x145   : > { %3415 = dma.done.wait (%p4329_p6), [#allocation6], 512   ;;  %p4330_p10 = pmov %p4329_p6 }
 0x146   : > { %p4331_p11 = pmov %p4329_p6 }
 0x147   : > { %3417 = vsyncadd (%p4330_p10), [#allocation6], 4294966784 }
 0x148   : > { %3419 = dma.done.wait (%p4331_p11), [#allocation9], 272   ;;  %p4332_p8 = pmov %p4329_p6 }
 0x149   : > { %p4333_p5 = pmov %p4329_p6 }
 0x14a   : > { %3421 = vsyncadd (%p4332_p8), [#allocation9], 4294967024 }
 0x14b   : > { %3423 = dma.done.wait (%p4333_p5), [#allocation12], 32   ;;  %p4334_p9 = pmov %p4333_p5 }
 0x14c   : > { %p4335_p7 = pmov %p4333_p5 }
 0x14d   : > { %3425 = vsyncadd (%p4334_p9), [#allocation12], 4294967264 }
 0x14e   : > { %3427 = dma.done.wait (%p4335_p7), [#allocation15], 272   ;;  %p4336_p4 = pmov %p4333_p5 }
 0x150   : > { %3429 = vsyncadd (%p4336_p4), [#allocation15], 4294967024  ;;  %p4337_p12 = pmov %p4336_p4 }
 0x151   : > { %p4338_p1 = pmov %p4336_p4 }
 0x152   : > { %3431 = dma.done.wait (%p4337_p12), [#allocation18], 16  }
 0x153   : > { %3433 = vsyncadd (%p4338_p1), [#allocation18], 4294967280  ;;  %p872_p13 = scmp.lt.s32.totalorder %s3619_s26, 1  ;;  %v3466_v0 = vmov 0.0   ;;  %vm3467_vm0 = vmmov 0   ;;  %s4339_s27 = sld [smem:[#allocation27_spill]]  ;;  %v885_v27 = vlaneseq }
 0x154   : > { %2724 = vmatprep.subr.bf16.mxu1 %v3466_v0  ;;  %2728 = vmatprep.mubr.msk.bf16.mxu1 %vm3467_vm0, %v3466_v0  ;;  %v3030_v1 = vld [vmem:[#allocation5] sm:$0xff]   ;;  %v3031_v2 = vld [vmem:[#allocation5 + $0x8] sm:$0xff]   ;;  %vm916_vm1 = vcmask 261120   ;;  %s4340_s3 = sld [smem:[#allocation31_spill]]  ;;  %s4286_s15 = smov 104   ;;  %vm970_vm2 = vcmask 64512  }
 0x155   : > { %s3945_s2 = scalar_select %p872_p13, %s3619_s26, 1  ;;  %2738 = vmatprep.subr.bf16.mxu0 %v3466_v0  ;;  %2740 = vmatprep.mubr.msk.bf16.mxu0 %vm3467_vm0, %v3466_v0  ;;  %vm1214_vm3 = vcmask 1043456   ;;  %v886_v28 = vshrl.u32 %v885_v27, 7  ;;  %v888_v29 = vand.u32 127, %v885_v27  ;;  %v3473_v30 = vmov -1e+30  }
 0x156   : > { %2725 = vmatpush3.bf16.msra.mxu1 %v3030_v1  ;;  %s3469_s1 = smov 120   ;;  %s3471_s18 = smov 112   ;;  %vm1419_vm5 = vcmask 130048   ;;  %vm1421_vm6 = vcmask 195584   ;;  %vm2318_vm7 = vcmask 523264  }
 0x157   : > { %s2608_s0 = sshll.u32 %s3945_s2, 3  ;;  %2726 = vmatprep.subr.bf16.mxu1 %v3466_v0  ;;  %s3472_s23 = smov 64   ;;  %vm889_vm4 = vcmp.ge.s32.totalorder %v886_v28, %v888_v29  ;;  %v3032_v28 = vld [vmem:[#allocation7] sm:$0xff]  }
 0x158   : > { %v890_v31 = vsel %vm889_vm4, 0.0, %v3473_v30  ;;  %v3033_v30 = vld [vmem:[#allocation7 + $0x8] sm:$0xff]   ;;  %s4281_s11 = smov 24   ;;  %s4341_s9 = sld [smem:[#allocation36_spill]] }
 0x159   : > { %s875_s6 = scalar_lea.vmem %s4339_s27, %s2608_s0  ;;  %s4284_s0 = smov 96  }
 0x15a   : > { %v3954_v3 = vld [vmem:[%s875_s6] sm:$0xff]  ;;  %2727 = vmatpush3.bf16.msra.mxu1 %v3031_v2  ;;  %s4283_s27 = smov 8   ;;  %s4282_s6 = smov 16  }
 0x15b   : > { %v892_v4 = vpack.c.bf16 %v3954_v3, %v3954_v3  ;;  %2732 = vmatprep.subr.bf16.mxu1 %v3466_v0  ;;  %v2611_v5 = vld [vmem:[%s4340_s3] ss:$0 sm:$0xff]  ;;  %s4349_s3 = sld [smem:[#allocation43_spill]]  ;;  %s4352_s8 = sld [smem:[#allocation40_spill]] }
 0x15c   : > { %s2665_s19 = sshll.u32 %s3619_s26, 7  ;;  %p4358_p2 = scmp.ne.s32.totalorder %s4324_s5, 0 }
 0x15d   : > { %2729 = vmatmul.mubr.msk.bf16.vlgmr.msra.gmra.mrb[0].mxu1 %vm916_vm1, %v892_v4  ;;  %s3477_s26 = smov [#allocation19]  }
 0x15e   : > { %2734 = vmatprep.mubr.msk.bf16.mxu1 %vm3467_vm0, %v3466_v0 }
 0x230   : > { %v954_v6 = vpop.f32.mrb[0].mxu1 }
 0x231   : > { %v955_v7 = vadd.f32 %v2611_v5, %v954_v6  ;;  %v2730_v8 = vpop.f32.mrb[1].mxu1 }
 0x232   : > { %v957_v9 = vpop.f32.mrb[2].mxu1 }
 0x233   : > { %v960_v10 = vpack.c.bf16 %v955_v7, %v955_v7  ;;  %v2731_v11 = vpop.f32.mrb[3].mxu1 }
 0x235   : > { %966 = vrot.lane.b32.xlu1 %v960_v10, %s4286_s15  ;;  %962 = vrot.lane.b32.xlu0 %v960_v10, %s3469_s1 }
 0x239   : > { %968 = vrot.lane.b32.xlu1 %v960_v10, %s4284_s0  ;;  %964 = vrot.lane.b32.xlu0 %v960_v10, %s3471_s18 }
 0x2a7   : > { %v3970_v12 = vpop.permute.xlu1 %966  ;;  %v963_v13 = vpop.permute.xlu0 %962 }
 0x2a8   : > { %1017 = vrot.lane.b32.xlu0 %v963_v13, %s4284_s0 }
 0x2ab   : > { %v969_v14 = vpop.permute.xlu1 %968  ;;  %v3973_v15 = vpop.permute.xlu0 %964 }
 0x2ac   : > { %v975_v16 = vsel %vm970_vm2, %v969_v14, 0  ;;  %1113 = vrot.lane.b32.xlu0 %v3970_v12, %s4284_s0  ;;  %1065 = vrot.lane.b32.xlu1 %v3973_v15, %s4284_s0  ;;  %s4342_s0 = sld [smem:[#allocation28_spill]] }
 0x2ad   : > { %2733 = vmatpush3.bf16.xpose.msra.mxu1 %v975_v16 }
 0x2ae   : > { %2744 = vmatprep.subr.bf16.mxu1 %v3466_v0 }
 0x2b0   : > { %1209 = vrot.lane.b32.xlu0 %v960_v10, %s3472_s23  ;;  %1258 = vrot.lane.b32.xlu1 %v963_v13, %s3472_s23 }
 0x2b4   : > { %2735 = vmatmul.mubr.msk.bf16.vlgmr.msra.gmra.mrb[4].mxu1 %vm970_vm2, %v960_v10 }
 0x2b5   : > { %2746 = vmatprep.mubr.msk.bf16.mxu1 %vm3467_vm0, %v3466_v0 }
 0x31a   : > { %v1018_v17 = vpop.permute.xlu0 %1017 }
 0x31b   : > { %v1023_v18 = vsel %vm970_vm2, %v1018_v17, 0 }
 0x31c   : > { %2739 = vmatpush3.bf16.xpose.msra.mxu0 %v1023_v18 }
 0x31d   : > { %2750 = vmatprep.subr.bf16.mxu0 %v3466_v0 }
 0x31e   : > { %v1066_v19 = vpop.permute.xlu1 %1065  ;;  %v1114_v20 = vpop.permute.xlu0 %1113 }
 0x31f   : > { %v1071_v21 = vsel %vm970_vm2, %v1066_v19, 0  ;;  %v1119_v22 = vsel %vm970_vm2, %v1114_v20, 0 }
 0x320   : > { %2745 = vmatpush3.bf16.xpose.msra.mxu1 %v1071_v21 }
 0x321   : > { %2756 = vmatprep.subr.bf16.mxu1 %v3466_v0 }
 0x322   : > { %v1210_v23 = vpop.permute.xlu0 %1209  ;;  %v1259_v25 = vpop.permute.xlu1 %1258 }
 0x323   : > { %2741 = vmatmul.mubr.msk.bf16.vlgmr.msra.gmra.mrb[0].mxu0 %vm970_vm2, %v963_v13  ;;  %v1216_v24 = vsel %vm1214_vm3, %v1210_v23, 0  ;;  %v1264_v26 = vsel %vm1214_vm3, %v1259_v25, 0 }
 0x324   : > { %2751 = vmatpush3.bf16.xpose.msra.mxu0 %v1119_v22  ;;  %2752 = vmatprep.mubr.msk.bf16.mxu0 %vm3467_vm0, %v3466_v0 }
 0x325   : > { %2762 = vmatprep.subr.bf16.mxu0 %v3466_v0 }
 0x327   : > { %2747 = vmatmul.mubr.msk.bf16.vlgmr.msra.gmra.mrb[8].mxu1 %vm970_vm2, %v3973_v15 }
 0x328   : > { %2757 = vmatpush3.bf16.msra.mxu1 %v1216_v24  ;;  %2758 = vmatprep.mubr.msk.bf16.mxu1 %vm3467_vm0, %v3466_v0 }
 0x329   : > { %2768 = vmatprep.subr.bf16.mxu1 %v3466_v0 }
 0x32b   : > { %2753 = vmatmul.mubr.msk.bf16.vlgmr.msra.gmra.mrb[4].mxu0 %vm970_vm2, %v3970_v12 }
 0x32c   : > { %2763 = vmatpush3.bf16.msra.mxu0 %v1264_v26  ;;  %2764 = vmatprep.mubr.msk.bf16.mxu0 %vm3467_vm0, %v3466_v0 }
 0x32d   : > { %2774 = vmatprep.subr.bf16.mxu0 %v3466_v0 }
 0x387   : > { %v1011_v32 = vpop.f32.mrb[4].mxu1 }
 0x388   : > { %v1161_v33 = vadd.f32 %v1011_v32, %v890_v31  ;;  %v2736_v34 = vpop.f32.mrb[5].mxu1 }
 0x389   : > { %v1014_v35 = vpop.f32.mrb[6].mxu1 }
 0x38a   : > { %v2737_v36 = vpop.f32.mrb[7].mxu1  ;;  %v1165_v37 = vsel %vm970_vm2, %v1161_v33, -inf }
 0x38b   : > { %1166 = vmax.xlane.f32.xlu1 %v1165_v37 }
 0x3f6   : > { %v1059_v38 = vpop.f32.mrb[0].mxu0 }
 0x3f7   : > { %v1162_v39 = vadd.f32 %v1059_v38, %v890_v31  ;;  %v2742_v40 = vpop.f32.mrb[1].mxu0 }
 0x3f8   : > { %v1062_v41 = vpop.f32.mrb[2].mxu0 }
 0x3f9   : > { %v2743_v42 = vpop.f32.mrb[3].mxu0  ;;  %v1168_v43 = vsel %vm970_vm2, %v1162_v39, -inf }
 0x3fa   : > { %1169 = vmax.xlane.f32.xlu0 %v1168_v43  ;;  %v1107_v44 = vpop.f32.mrb[8].mxu1 }
 0x3fb   : > { %v1163_v45 = vadd.f32 %v1107_v44, %v890_v31  ;;  %v2748_v46 = vpop.f32.mrb[9].mxu1 }
 0x3fc   : > { %v1110_v47 = vpop.f32.mrb[10].mxu1 }
 0x3fd   : > { %v2749_v48 = vpop.f32.mrb[11].mxu1  ;;  %v1171_v49 = vsel %vm970_vm2, %v1163_v45, -inf }
 0x3fe   : > { %v1155_v50 = vpop.f32.mrb[4].mxu0  ;;  %1172 = vmax.xlane.f32.xlu0 %v1171_v49 }
 0x3ff   : > { %v1164_v51 = vadd.f32 %v1155_v50, %v890_v31  ;;  %v2754_v52 = vpop.f32.mrb[5].mxu0 }
 0x400   : > { %v1158_v53 = vpop.f32.mrb[6].mxu0 }
 0x401   : > { %v2755_v54 = vpop.f32.mrb[7].mxu0  ;;  %v1174_v55 = vsel %vm970_vm2, %v1164_v51, -inf }
 0x402   : > { %1175 = vmax.xlane.f32.xlu1 %v1174_v55 }
 0x413   : > { %1306 = vrot.lane.b32.xlu1 %v3973_v15, %s3472_s23 }
 0x414   : > { %1354 = vrot.lane.b32.xlu0 %v3970_v12, %s3472_s23  ;;  %s2668_s23 = sshll.u32 %s3945_s2, 4  ;;  %s2607_s2 = sshll.u32 %s3912_s22, 3 }
 0x415   : > { %s880_s15 = scalar_lea.vmem %s4342_s0, %s2668_s23  ;;  %s4344_s0 = smov 96  }
 0x416   : > { %s871_s23 = scalar_lea.vmem [#allocation19], %s2607_s2  ;;  %s3370_s2 = sshll.u32 %s3477_s26, 4  ;;  %s3371_s2 = int_to_ptr.vmem [resolvable:$false] %s3370_s2 }
 0x418   : > { %v1167_v56 = vpop.xlane.xlu1 %1166 }
 0x419   : > { %v1177_v57 = vsub.f32 %v1161_v33, %v1167_v56 }
 0x41b   : > { %v1181_v58 = vmul.f32 1.442695, %v1177_v57 }
 0x41d   : > { %3046 = vpow2.f32 %v1181_v58 }
 0x427   : > { %v3047_v59 = vpop.eup %3046 }
 0x428   : > { %v1205_v60 = vpack.c.bf16 %v3047_v59, %v3047_v59  ;;  %v1189_v16 = vsel %vm970_vm2, %v3047_v59, 0.0  ;;  %v2623_v59 = vld [vmem:[#allocation8] ss:$0 sm:$0xff] }
 0x42a   : > { %2759 = vmatmul.mubr.msk.bf16.vlgmr.msra.gmra.mrb[12].mxu1 %vm970_vm2, %v1205_v60 }
 0x42b   : > { %2770 = vmatprep.mubr.msk.bf16.mxu1 %vm3467_vm0, %v3466_v0 }
 0x487   : > { %v1170_v61 = vpop.xlane.xlu0 %1169 }
 0x488   : > { %v1178_v62 = vsub.f32 %v1162_v39, %v1170_v61 }
 0x48a   : > { %v1183_v63 = vmul.f32 1.442695, %v1178_v62 }
 0x48b   : > { %v1173_v1 = vpop.xlane.xlu0 %1172 }
 0x48c   : > { %3048 = vpow2.f32 %v1183_v63  ;;  %v1179_v2 = vsub.f32 %v1163_v45, %v1173_v1 }
 0x48e   : > { %v1185_v4 = vmul.f32 1.442695, %v1179_v2 }
 0x48f   : > { %v1176_v5 = vpop.xlane.xlu1 %1175  ;;  %v1355_v11 = vpop.permute.xlu0 %1354 }
 0x490   : > { %3050 = vpow2.f32 %v1185_v4  ;;  %v1180_v6 = vsub.f32 %v1164_v51, %v1176_v5  ;;  %v1360_v14 = vsel %vm1214_vm3, %v1355_v11, 0  ;;  %v883_v11 = vld [vmem:[%s880_s15] sm:$0xff] }
 0x492   : > { %v1187_v7 = vmul.f32 1.442695, %v1180_v6 }
 0x493   : > { %v1307_v8 = vpop.permute.xlu1 %1306 }
 0x494   : > { %3052 = vpow2.f32 %v1187_v7  ;;  %v1312_v9 = vsel %vm1214_vm3, %v1307_v8, 0 }
 0x495   : > { %2769 = vmatpush3.bf16.msra.mxu1 %v1312_v9 }
 0x496   : > { %v3049_v10 = vpop.eup %3048  ;;  %2780 = vmatprep.subr.bf16.mxu1 %v3466_v0 }
 0x497   : > { %v1192_v12 = vsel %vm970_vm2, %v3049_v10, 0.0  ;;  %v1206_v13 = vpack.c.bf16 %v3049_v10, %v3049_v10  ;;  %v3034_v10 = vld [vmem:[%s4341_s9] sm:$0xff]  }
 0x498   : > { %1193 = vadd.xlane.f32.xlu1 %v1192_v12  ;;  %v884_v12 = vld [vmem:[%s880_s15 + $0x8] sm:$0xff]  ;;  %s4343_s15 = smov 104  }
 0x499   : > { %2765 = vmatmul.mubr.msk.bf16.vlgmr.msra.gmra.mrb[8].mxu0 %vm970_vm2, %v1206_v13  ;;  %v1589_v13 = vpack.c.bf16 %v884_v12, %v883_v11 }
 0x49a   : > { %v3051_v15 = vpop.eup %3050  ;;  %2775 = vmatpush3.bf16.msra.mxu0 %v1360_v14  ;;  %2776 = vmatprep.mubr.msk.bf16.mxu0 %vm3467_vm0, %v3466_v0  ;;  %v3036_v14 = vld [vmem:[#allocation10] sm:$0xff]  }
 0x49b   : > { %v1195_v17 = vsel %vm970_vm2, %v3051_v15, 0.0  ;;  %v1207_v18 = vpack.c.bf16 %v3051_v15, %v3051_v15  ;;  %2788 = vmatprep.subr.bf16.mxu0 %v3466_v0  ;;  %v3037_v15 = vld [vmem:[#allocation10 + $0x8] sm:$0xff]  }
 0x49c   : > { %1190 = vadd.xlane.f32.xlu1 %v1189_v16  ;;  %1196 = vadd.xlane.f32.xlu0 %v1195_v17 }
 0x49d   : > { %2771 = vmatmul.mubr.msk.bf16.vlgmr.msra.gmra.mrb[16].mxu1 %vm970_vm2, %v1207_v18 }
 0x49e   : > { %v3053_v19 = vpop.eup %3052  ;;  %2784 = vmatprep.mubr.msk.bf16.mxu1 %vm3467_vm0, %v3466_v0  ;;  %2781 = vmatpush3.bf16.msra.mxu1 %v3032_v28 }
 0x49f   : > { %v1198_v20 = vsel %vm970_vm2, %v3053_v19, 0.0  ;;  %v1208_v21 = vpack.c.bf16 %v3053_v19, %v3053_v19  ;;  %2782 = vmatprep.subr.bf16.mxu1 %v3466_v0 }
 0x4a0   : > { %1199 = vadd.xlane.f32.xlu0 %v1198_v20  ;;  %v2627_v20 = vld [vmem:[#allocation17] ss:$0 sm:$0xff] }
 0x4a1   : > { %2777 = vmatmul.mubr.msk.bf16.vlgmr.msra.gmra.mrb[12].mxu0 %vm970_vm2, %v1208_v21 }
 0x4a2   : > { %2792 = vmatprep.mubr.msk.bf16.mxu0 %vm3467_vm0, %v3466_v0  ;;  %2783 = vmatpush3.bf16.msra.mxu1 %v3033_v30 }
 0x4a3   : > { %2796 = vmatprep.subr.bf16.mxu1 %v3466_v0  ;;  %2789 = vmatpush3.bf16.msra.mxu0 %v3036_v14 }
 0x4a4   : > { %2790 = vmatprep.subr.bf16.mxu0 %v3466_v0 }
 0x4a7   : > { %2791 = vmatpush3.bf16.msra.mxu0 %v3037_v15 }
 0x4a8   : > { %2804 = vmatprep.subr.bf16.mxu0 %v3466_v0 }
 0x4fd   : > { %v1252_v22 = vpop.f32.mrb[12].mxu1 }
 0x4fe   : > { %v2760_v23 = vpop.f32.mrb[13].mxu1 }
 0x4ff   : > { %v1255_v24 = vpop.f32.mrb[14].mxu1 }
 0x500   : > { %v2761_v25 = vpop.f32.mrb[15].mxu1 }
 0x525   : > { %v1194_v26 = vpop.xlane.xlu1 %1193 }
 0x526   : > { %3054 = vrcp.f32 %v1194_v26  ;;  %v2633_v26 = vld [vmem:[#allocation13] ss:$0 sm:$0xff] }
 0x529   : > { %v1197_v27 = vpop.xlane.xlu0 %1196  ;;  %v1191_v49 = vpop.xlane.xlu1 %1190 }
 0x52a   : > { %3056 = vrcp.f32 %v1197_v27 }
 0x52d   : > { %v1200_v29 = vpop.xlane.xlu0 %1199 }
 0x52e   : > { %3058 = vrcp.f32 %v1200_v29 }
 0x52f   : > { %3060 = vrcp.f32 %v1191_v49 }
 0x530   : > { %v3055_v31 = vpop.eup %3054 }
 0x534   : > { %v3057_v37 = vpop.eup %3056 }
 0x538   : > { %v3059_v43 = vpop.eup %3058 }
 0x539   : > { %v3061_v50 = vpop.eup %3060 }
 0x53a   : > { %v1402_v53 = vmul.f32 %v3061_v50, %v1252_v22  ;;  %v2628_v22 = vld [vmem:[%s4257_s14] ss:$0 sm:$0xff] }
 0x56c   : > { %v1300_v32 = vpop.f32.mrb[8].mxu0 }
 0x56d   : > { %v1403_v33 = vmul.f32 %v3055_v31, %v1300_v32  ;;  %v2766_v34 = vpop.f32.mrb[9].mxu0 }
 0x56e   : > { %v1303_v35 = vpop.f32.mrb[10].mxu0 }
 0x56f   : > { %v2767_v36 = vpop.f32.mrb[11].mxu0  ;;  %1407 = vrot.lane.b32.xlu0 %v1403_v33, %s4283_s27  ;;  %s4347_s27 = smov 16  }
 0x570   : > { %v1348_v38 = vpop.f32.mrb[16].mxu1 }
 0x571   : > { %v1404_v39 = vmul.f32 %v3057_v37, %v1348_v38  ;;  %v2772_v40 = vpop.f32.mrb[17].mxu1  ;;  %v2629_v37 = vld [vmem:[#allocation11] ss:$0 sm:$0xff] }
 0x572   : > { %v1351_v41 = vpop.f32.mrb[18].mxu1 }
 0x573   : > { %1411 = vrot.lane.b32.xlu1 %v1404_v39, %s4282_s6  ;;  %v2773_v42 = vpop.f32.mrb[19].mxu1  ;;  %s4348_s6 = smov 24  }
 0x574   : > { %v1396_v44 = vpop.f32.mrb[12].mxu0 }
 0x575   : > { %v1405_v45 = vmul.f32 %v3059_v43, %v1396_v44  ;;  %v2778_v46 = vpop.f32.mrb[13].mxu0 }
 0x576   : > { %v1399_v47 = vpop.f32.mrb[14].mxu0 }
 0x577   : > { %v2779_v48 = vpop.f32.mrb[15].mxu0  ;;  %1415 = vrot.lane.b32.xlu1 %v1405_v45, %s4281_s11  ;;  %s4351_s11 = sld [smem:[#allocation39_spill]] }
 0x5e1   : > { %v1408_v51 = vpop.permute.xlu0 %1407 }
 0x5e2   : > { %v1418_v54 = vsel %vm970_vm2, %v1402_v53, %v1408_v51 }
 0x5e5   : > { %v1412_v52 = vpop.permute.xlu1 %1411 }
 0x5e6   : > { %v1420_v55 = vsel %vm1419_vm5, %v1418_v54, %v1412_v52 }
 0x5e9   : > { %v1416_v56 = vpop.permute.xlu1 %1415 }
 0x5ea   : > { %v1422_v57 = vsel %vm1421_vm6, %v1420_v55, %v1416_v56 }
 0x5eb   : > { %v1423_v58 = vpack.c.bf16 %v1422_v57, %v1422_v57 }
 0x5ed   : > { %2785 = vmatmul.mubr.msk.bf16.vlgmr.msra.gmra.mrb[20].mxu1 %vm916_vm1, %v1423_v58 }
 0x5ee   : > { %2800 = vmatprep.mubr.msk.bf16.mxu1 %vm3467_vm0, %v3466_v0  ;;  %2797 = vmatpush3.bf16.msra.mxu1 %v3034_v10 }
 0x5ef   : > { %2798 = vmatprep.subr.bf16.mxu1 %v3466_v0 }
 0x6c0   : > { %v1484_v60 = vpop.f32.mrb[20].mxu1 }
 0x6c1   : > { %v1485_v61 = vadd.f32 %v2623_v59, %v1484_v60  ;;  %v2786_v62 = vpop.f32.mrb[21].mxu1 }
 0x6c2   : > { %v1487_v63 = vpop.f32.mrb[22].mxu1 }
 0x6c3   : > { %v2787_v1 = vpop.f32.mrb[23].mxu1  ;;  %v1490_v2 = vadd.f32 %v1485_v61, %v3954_v3  ;;  %v3035_v3 = vld [vmem:[%s4341_s9 + $0x8] sm:$0xff]   ;;  %s4357_s9 = sld [smem:[#allocation47_spill]] }
 0x6c4   : > { %2799 = vmatpush3.bf16.msra.mxu1 %v3035_v3 }
 0x6c5   : > { %v1491_v4 = vsel %vm916_vm1, %v1490_v2, 0.0  ;;  %2810 = vmatprep.subr.bf16.mxu1 %v3466_v0 }
 0x6c6   : > { %1492 = vadd.xlane.f32.xlu0 %v1491_v4 }
 0x6c7   : > { %2801 = vmatmul.mubr.msk.bf16.vlgmr.msra.gmra.mrb[24].mxu1 %vm916_vm1, %v1589_v13 }
 0x6c8   : > { %2812 = vmatprep.mubr.msk.bf16.mxu1 %vm3467_vm0, %v3466_v0 }
 0x6c9   : > { %s4198_s10 = scalar_lea.hbm %s4357_s9, %s2665_s19 }
 0x753   : > { %v1493_v5 = vpop.xlane.xlu0 %1492 }
 0x754   : > { %v1495_v6 = vmul.f32 0.03125, %v1493_v5 }
 0x756   : > { %v1496_v7 = vsub.f32 %v1490_v2, %v1495_v6 }
 0x758   : > { %v1497_v8 = vmul.f32 %v1496_v7, %v1496_v7 }
 0x75a   : > { %v1498_v9 = vsel %vm916_vm1, %v1497_v8, 0.0 }
 0x75b   : > { %1499 = vadd.xlane.f32.xlu1 %v1498_v9 }
 0x79a   : > { %v1650_v27 = vpop.f32.mrb[24].mxu1 }
 0x79b   : > { %v1651_v28 = vadd.f32 %v2633_v26, %v1650_v27  ;;  %v2802_v29 = vpop.f32.mrb[25].mxu1 }
 0x79c   : > { %v1653_v30 = vpop.f32.mrb[26].mxu1 }
 0x79d   : > { %v1654_v31 = vadd.f32 %v2633_v26, %v1653_v30  ;;  %v2803_v32 = vpop.f32.mrb[27].mxu1 }
 0x79f   : > { %v1657_v33 = vpack.c.bf16 %v1654_v31, %v1651_v28 }
 0x7a1   : > { %1668 = vrot.lane.b32.xlu1 %v1657_v33, %s3471_s18  ;;  %1666 = vrot.lane.b32.xlu0 %v1657_v33, %s3469_s1  ;;  %v1676_v34 = vsel %vm970_vm2, %v1657_v33, 0 }
 0x7a5   : > { %1670 = vrot.lane.b32.xlu1 %v1657_v33, %s4343_s15 }
 0x7e8   : > { %v1500_v16 = vpop.xlane.xlu1 %1499 }
 0x7e9   : > { %v1501_v17 = vmul.f32 0.03125, %v1500_v16 }
 0x7eb   : > { %v1502_v18 = vadd.f32 1e-05, %v1501_v17 }
 0x7ed   : > { %3062 = vrsqrt.f32 %v1502_v18 }
 0x7f7   : > { %v3063_v19 = vpop.eup %3062 }
 0x7f8   : > { %v1504_v21 = vmul.f32 %v3063_v19, %v1496_v7 }
 0x7fa   : > { %v1512_v23 = vmul.f32 %v2627_v20, %v1504_v21 }
 0x7fc   : > { %v4069_v24 = vadd.f32 %v2628_v22, %v1512_v23 }
 0x7fe   : > { %v1521_v25 = vpack.c.bf16 %v4069_v24, %v4069_v24 }
 0x800   : > { %2793 = vmatmul.mubr.msk.bf16.vlgmr.msra.gmra.mrb[16].mxu0 %vm916_vm1, %v1521_v25 }
 0x801   : > { %2806 = vmatprep.mubr.msk.bf16.mxu0 %vm3467_vm0, %v3466_v0  ;;  %2805 = vmatpush3.bf16.xpose.msra.mxu0 %v1676_v34 }
 0x802   : > { %2816 = vmatprep.subr.bf16.mxu0 %v3466_v0 }
 0x813   : > { %v4081_v35 = vpop.permute.xlu0 %1666  ;;  %v1669_v44 = vpop.permute.xlu1 %1668 }
 0x814   : > { %v1722_v36 = vsel %vm970_vm2, %v4081_v35, 0  ;;  %v1768_v45 = vsel %vm970_vm2, %v1669_v44, 0 }
 0x815   : > { %2811 = vmatpush3.bf16.xpose.msra.mxu1 %v1722_v36 }
 0x816   : > { %2822 = vmatprep.subr.bf16.mxu1 %v3466_v0 }
 0x817   : > { %v1671_v46 = vpop.permute.xlu1 %1670 }
 0x818   : > { %v1814_v49 = vsel %vm970_vm2, %v1671_v46, 0 }
 0x8d3   : > { %v1582_v38 = vpop.f32.mrb[16].mxu0 }
 0x8d4   : > { %v1583_v39 = vadd.f32 %v2629_v37, %v1582_v38  ;;  %v2794_v40 = vpop.f32.mrb[17].mxu0 }
 0x8d5   : > { %v1585_v41 = vpop.f32.mrb[18].mxu0 }
 0x8d6   : > { %v1588_v42 = vpack.c.bf16 %v1583_v39, %v1583_v39  ;;  %v2795_v43 = vpop.f32.mrb[19].mxu0 }
 0x8d8   : > { %1663 = vrot.lane.b32.xlu1 %v1588_v42, %s4343_s15  ;;  %1659 = vrot.lane.b32.xlu0 %v1588_v42, %s3469_s1  ;;  %s4345_s1 = scalar_lea.vmem [#allocation2], %s3912_s22  ;;  %s2394_s15 = scalar_lea.sflag [#allocation4], %s3912_s22 }
 0x8d9   : > { %2807 = vmatmul.mubr.msk.bf16.vlgmr.msra.gmra.mrb[20].mxu0 %vm970_vm2, %v1588_v42  ;;  %v2641_v52 = vld [vmem:[%s4345_s1] ss:$0 sm:$0xff] }
 0x8da   : > { %2817 = vmatpush3.bf16.xpose.msra.mxu0 %v1768_v45  ;;  %2818 = vmatprep.mubr.msk.bf16.mxu0 %vm3467_vm0, %v3466_v0 }
 0x8db   : > { %2828 = vmatprep.subr.bf16.mxu0 %v3466_v0 }
 0x8dc   : > { %1910 = vrot.lane.b32.xlu1 %v1657_v33, %s4344_s0  ;;  %1661 = vrot.lane.b32.xlu0 %v1588_v42, %s3471_s18  ;;  %s4346_s18 = smov 8  }
 0x94a   : > { %v1664_v47 = vpop.permute.xlu1 %1663  ;;  %v1660_v48 = vpop.permute.xlu0 %1659 }
 0x94b   : > { %2813 = vmatmul.mubr.msk.bf16.vlgmr.msra.gmra.mrb[28].mxu1 %vm970_vm2, %v1660_v48  ;;  %v3038_v48 = vld [vmem:[#allocation14] sm:$0xff]  }
 0x94c   : > { %2823 = vmatpush3.bf16.xpose.msra.mxu1 %v1814_v49  ;;  %2824 = vmatprep.mubr.msk.bf16.mxu1 %vm3467_vm0, %v3466_v0 }
 0x94d   : > { %2834 = vmatprep.subr.bf16.mxu1 %v3466_v0 }
 0x94e   : > { %v1911_v50 = vpop.permute.xlu1 %1910  ;;  %v1662_v51 = vpop.permute.xlu0 %1661 }
 0x94f   : > { %2819 = vmatmul.mubr.msk.bf16.vlgmr.msra.gmra.mrb[24].mxu0 %vm970_vm2, %v1662_v51 }
 0x950   : > { %2829 = vmatpush3.bf16.msra.mxu0 %v1911_v50  ;;  %2830 = vmatprep.mubr.msk.bf16.mxu0 %vm3467_vm0, %v3466_v0  ;;  %v3039_v50 = vld [vmem:[#allocation14 + $0x8] sm:$0xff]  }
 0x951   : > { %2840 = vmatprep.subr.bf16.mxu0 %v3466_v0 }
 0x953   : > { %2825 = vmatmul.mubr.msk.bf16.vlgmr.msra.gmra.mrb[32].mxu1 %vm970_vm2, %v1664_v47 }
 0x954   : > { %2836 = vmatprep.mubr.msk.bf16.mxu1 %vm3467_vm0, %v3466_v0 }
 0x9ac   : > { %v1712_v53 = vpop.f32.mrb[20].mxu0 }
 0x9ad   : > { %v1862_v54 = vadd.f32 %v2641_v52, %v1712_v53  ;;  %v2808_v55 = vpop.f32.mrb[21].mxu0 }
 0x9ae   : > { %v1715_v56 = vpop.f32.mrb[22].mxu0 }
 0x9af   : > { %v2809_v57 = vpop.f32.mrb[23].mxu0  ;;  %v1866_v58 = vsel %vm1419_vm5, %v1862_v54, -inf }
 0x9b0   : > { %1867 = vmax.xlane.f32.xlu0 %v1866_v58 }
 0xa1e   : > { %v1758_v59 = vpop.f32.mrb[28].mxu1 }
 0xa1f   : > { %v1863_v60 = vadd.f32 %v2641_v52, %v1758_v59  ;;  %v2814_v61 = vpop.f32.mrb[29].mxu1 }
 0xa20   : > { %v1761_v62 = vpop.f32.mrb[30].mxu1 }
 0xa21   : > { %v2815_v63 = vpop.f32.mrb[31].mxu1  ;;  %v1869_v1 = vsel %vm1419_vm5, %v1863_v60, -inf }
 0xa22   : > { %v1804_v2 = vpop.f32.mrb[24].mxu0  ;;  %1870 = vmax.xlane.f32.xlu1 %v1869_v1 }
 0xa23   : > { %v1864_v4 = vadd.f32 %v2641_v52, %v1804_v2  ;;  %v2820_v5 = vpop.f32.mrb[25].mxu0 }
 0xa24   : > { %v1807_v6 = vpop.f32.mrb[26].mxu0 }
 0xa25   : > { %v2821_v7 = vpop.f32.mrb[27].mxu0  ;;  %v1872_v8 = vsel %vm1419_vm5, %v1864_v4, -inf }
 0xa26   : > { %1873 = vmax.xlane.f32.xlu0 %v1872_v8  ;;  %v1850_v9 = vpop.f32.mrb[32].mxu1 }
 0xa27   : > { %v1865_v10 = vadd.f32 %v2641_v52, %v1850_v9  ;;  %v2826_v3 = vpop.f32.mrb[33].mxu1 }
 0xa28   : > { %v1853_v11 = vpop.f32.mrb[34].mxu1 }
 0xa29   : > { %v2827_v12 = vpop.f32.mrb[35].mxu1  ;;  %v1875_v13 = vsel %vm1419_vm5, %v1865_v10, -inf }
 0xa2a   : > { %1876 = vmax.xlane.f32.xlu0 %v1875_v13 }
 0xa33   : > { %2002 = vrot.lane.b32.xlu1 %v1669_v44, %s4344_s0 }
 0xa37   : > { %2048 = vrot.lane.b32.xlu1 %v1671_v46, %s4344_s0 }
 0xa3d   : > { %v1868_v14 = vpop.xlane.xlu0 %1867 }
 0xa3e   : > { %v1878_v15 = vsub.f32 %v1862_v54, %v1868_v14 }
 0xa40   : > { %v1882_v16 = vmul.f32 1.442695, %v1878_v15  ;;  %1956 = vrot.lane.b32.xlu0 %v4081_v35, %s4344_s0  ;;  %s4350_s0 = sld [smem:[#allocation45_spill]] }
 0xa42   : > { %3064 = vpow2.f32 %v1882_v16  ;;  %v2646_v16 = vld [vmem:[#allocation16] ss:$0 sm:$0xff] }
 0xa4c   : > { %v3065_v17 = vpop.eup %3064 }
 0xa4d   : > { %v1906_v18 = vpack.c.bf16 %v3065_v17, %v3065_v17  ;;  %v1890_v41 = vsel %vm1419_vm5, %v3065_v17, 0.0 }
 0xa4f   : > { %2831 = vmatmul.mubr.msk.bf16.vlgmr.msra.gmra.mrb[28].mxu0 %vm1419_vm5, %v1906_v18 }
 0xa50   : > { %2842 = vmatprep.mubr.msk.bf16.mxu0 %vm3467_vm0, %v3466_v0 }
 0xaaf   : > { %v1871_v19 = vpop.xlane.xlu1 %1870 }
 0xab0   : > { %v1879_v20 = vsub.f32 %v1863_v60, %v1871_v19 }
 0xab2   : > { %v1884_v21 = vmul.f32 1.442695, %v1879_v20 }
 0xab3   : > { %v1874_v22 = vpop.xlane.xlu0 %1873  ;;  %v2003_v23 = vpop.permute.xlu1 %2002 }
 0xab4   : > { %3066 = vpow2.f32 %v1884_v21  ;;  %v1880_v25 = vsub.f32 %v1864_v4, %v1874_v22  ;;  %2841 = vmatpush3.bf16.msra.mxu0 %v2003_v23 }
 0xab5   : > { %2852 = vmatprep.subr.bf16.mxu0 %v3466_v0 }
 0xab6   : > { %v1886_v26 = vmul.f32 1.442695, %v1880_v25 }
 0xab7   : > { %v1877_v27 = vpop.xlane.xlu0 %1876  ;;  %v2049_v34 = vpop.permute.xlu1 %2048 }
 0xab8   : > { %3068 = vpow2.f32 %v1886_v26  ;;  %v1881_v28 = vsub.f32 %v1865_v10, %v1877_v27 }
 0xaba   : > { %v1888_v29 = vmul.f32 1.442695, %v1881_v28 }
 0xabb   : > { %v1957_v30 = vpop.permute.xlu0 %1956 }
 0xabc   : > { %3070 = vpow2.f32 %v1888_v29  ;;  %2835 = vmatpush3.bf16.msra.mxu1 %v1957_v30  ;;  %v3040_v30 = vld [vmem:[%s4349_s3] sm:$0xff]  }
 0xabd   : > { %2846 = vmatprep.subr.bf16.mxu1 %v3466_v0 }
 0xabe   : > { %v3067_v31 = vpop.eup %3066 }
 0xabf   : > { %v1893_v32 = vsel %vm1419_vm5, %v3067_v31, 0.0  ;;  %v1907_v33 = vpack.c.bf16 %v3067_v31, %v3067_v31  ;;  %v3041_v31 = vld [vmem:[%s4349_s3 + $0x8] sm:$0xff]  }
 0xac0   : > { %1894 = vadd.xlane.f32.xlu0 %v1893_v32  ;;  %v3043_v32 = vld [vmem:[%s4350_s0 + $0x8] sm:$0xff]  }
 0xac1   : > { %2837 = vmatmul.mubr.msk.bf16.vlgmr.msra.gmra.mrb[36].mxu1 %vm1419_vm5, %v1907_v33 }
 0xac2   : > { %v3069_v35 = vpop.eup %3068  ;;  %2847 = vmatpush3.bf16.msra.mxu1 %v2049_v34  ;;  %2848 = vmatprep.mubr.msk.bf16.mxu1 %vm3467_vm0, %v3466_v0 }
 0xac3   : > { %v1896_v36 = vsel %vm1419_vm5, %v3069_v35, 0.0  ;;  %v1908_v37 = vpack.c.bf16 %v3069_v35, %v3069_v35  ;;  %2860 = vmatprep.subr.bf16.mxu1 %v3466_v0 }
 0xac4   : > { %1897 = vadd.xlane.f32.xlu1 %v1896_v36 }
 0xac5   : > { %2843 = vmatmul.mubr.msk.bf16.vlgmr.msra.gmra.mrb[32].mxu0 %vm1419_vm5, %v1908_v37  ;;  %v2650_v37 = vld [vmem:[%s4351_s11] ss:$0 sm:$0xff]  ;;  %s4353_s11 = sld [smem:[#allocation44_spill]] }
 0xac6   : > { %v3071_v38 = vpop.eup %3070  ;;  %2856 = vmatprep.mubr.msk.bf16.mxu0 %vm3467_vm0, %v3466_v0  ;;  %2853 = vmatpush3.bf16.msra.mxu0 %v3038_v48 }
 0xac7   : > { %v1899_v39 = vsel %vm1419_vm5, %v3071_v38, 0.0  ;;  %v1909_v40 = vpack.c.bf16 %v3071_v38, %v3071_v38  ;;  %2854 = vmatprep.subr.bf16.mxu0 %v3466_v0 }
 0xac8   : > { %1900 = vadd.xlane.f32.xlu0 %v1899_v39  ;;  %v2651_v39 = vld [vmem:[%s4352_s8] ss:$0 sm:$0xff]  ;;  %s4354_s8 = sld [smem:[#allocation46_spill]] }
 0xac9   : > { %2849 = vmatmul.mubr.msk.bf16.vlgmr.msra.gmra.mrb[40].mxu1 %vm1419_vm5, %v1909_v40 }
 0xaca   : > { %2864 = vmatprep.mubr.msk.bf16.mxu1 %vm3467_vm0, %v3466_v0  ;;  %2855 = vmatpush3.bf16.msra.mxu0 %v3039_v50 }
 0xacb   : > { %2868 = vmatprep.subr.bf16.mxu0 %v3466_v0  ;;  %2861 = vmatpush3.bf16.msra.mxu1 %v3040_v30 }
 0xacc   : > { %1891 = vadd.xlane.f32.xlu0 %v1890_v41  ;;  %2862 = vmatprep.subr.bf16.mxu1 %v3466_v0 }
 0xacf   : > { %2863 = vmatpush3.bf16.msra.mxu1 %v3041_v31 }
 0xb22   : > { %v1950_v42 = vpop.f32.mrb[28].mxu0 }
 0xb23   : > { %v2832_v43 = vpop.f32.mrb[29].mxu0 }
 0xb24   : > { %v1953_v44 = vpop.f32.mrb[30].mxu0  ;;  %v3044_v43 = vld [vmem:[%s4350_s0 + $0x10] sm:$0xff]  }
 0xb25   : > { %v2833_v45 = vpop.f32.mrb[31].mxu0  ;;  %v3045_v44 = vld [vmem:[%s4350_s0 + $0x18] sm:$0xff]  }
 0xb26   : > { %v2652_v45 = vld [vmem:[%s4353_s11] ss:$0 sm:$0xff]  ;;  %s4356_s11 = sld [smem:[#allocation42_spill]] }
 0xb4d   : > { %v1895_v46 = vpop.xlane.xlu0 %1894 }
 0xb4e   : > { %3072 = vrcp.f32 %v1895_v46 }
 0xb51   : > { %v1898_v47 = vpop.xlane.xlu1 %1897 }
 0xb52   : > { %3074 = vrcp.f32 %v1898_v47 }
 0xb55   : > { %v1901_v49 = vpop.xlane.xlu0 %1900 }
 0xb56   : > { %3076 = vrcp.f32 %v1901_v49 }
 0xb58   : > { %v3073_v51 = vpop.eup %3072 }
 0xb59   : > { %v1892_v7 = vpop.xlane.xlu0 %1891 }
 0xb5a   : > { %3078 = vrcp.f32 %v1892_v7 }
 0xb5c   : > { %v3075_v57 = vpop.eup %3074 }
 0xb60   : > { %v3077_v63 = vpop.eup %3076 }
 0xb64   : > { %v3079_v8 = vpop.eup %3078 }
 0xb65   : > { %v2094_v10 = vmul.f32 %v3079_v8, %v1950_v42 }
 0xb94   : > { %v1996_v52 = vpop.f32.mrb[36].mxu1 }
 0xb95   : > { %v2095_v53 = vmul.f32 %v3073_v51, %v1996_v52  ;;  %v2838_v54 = vpop.f32.mrb[37].mxu1 }
 0xb96   : > { %v1999_v55 = vpop.f32.mrb[38].mxu1 }
 0xb97   : > { %2099 = vrot.lane.b32.xlu1 %v2095_v53, %s4346_s18  ;;  %v2839_v56 = vpop.f32.mrb[39].mxu1  ;;  %s4355_s18 = sld [smem:[#allocation41_spill]] }
 0xb98   : > { %v2042_v58 = vpop.f32.mrb[32].mxu0 }
 0xb99   : > { %v2096_v59 = vmul.f32 %v3075_v57, %v2042_v58  ;;  %v2844_v60 = vpop.f32.mrb[33].mxu0 }
 0xb9a   : > { %v2045_v61 = vpop.f32.mrb[34].mxu0 }
 0xb9b   : > { %v2845_v62 = vpop.f32.mrb[35].mxu0  ;;  %2103 = vrot.lane.b32.xlu0 %v2096_v59, %s4347_s27 }
 0xb9c   : > { %v2088_v1 = vpop.f32.mrb[40].mxu1 }
 0xb9d   : > { %v2097_v2 = vmul.f32 %v3077_v63, %v2088_v1  ;;  %v2850_v4 = vpop.f32.mrb[41].mxu1  ;;  %v2662_v7 = vld [vmem:[%s4355_s18] ss:$0 sm:$0xff]  ;;  %s3372_s18 = scalar_lea.vmem %s3371_s2, 256 }
 0xb9e   : > { %v2091_v5 = vpop.f32.mrb[42].mxu1 }
 0xb9f   : > { %2107 = vrot.lane.b32.xlu1 %v2097_v2, %s4348_s6  ;;  %v2851_v6 = vpop.f32.mrb[43].mxu1 }
 0xc09   : > { %v2100_v9 = vpop.permute.xlu1 %2099 }
 0xc0a   : > { %v2110_v11 = vsel %vm970_vm2, %v2094_v10, %v2100_v9  ;;  %v2663_v9 = vld [vmem:[%s4356_s11] ss:$0 sm:$0xff] }
 0xc0d   : > { %v2104_v3 = vpop.permute.xlu0 %2103 }
 0xc0e   : > { %v2111_v12 = vsel %vm1419_vm5, %v2110_v11, %v2104_v3 }
 0xc11   : > { %v2108_v13 = vpop.permute.xlu1 %2107 }
 0xc12   : > { %v2112_v14 = vsel %vm1421_vm6, %v2111_v12, %v2108_v13 }
 0xc13   : > { %v2113_v15 = vpack.c.bf16 %v2112_v14, %v2112_v14 }
 0xc15   : > { %2857 = vmatmul.mubr.msk.bf16.vlgmr.msra.gmra.mrb[36].mxu0 %vm916_vm1, %v2113_v15 }
 0xc16   : > { %2876 = vmatprep.mubr.msk.bf16.mxu0 %vm3467_vm0, %v3466_v0 }
 0xce8   : > { %v2174_v17 = vpop.f32.mrb[36].mxu0 }
 0xce9   : > { %v2175_v18 = vadd.f32 %v2646_v16, %v2174_v17  ;;  %v2858_v19 = vpop.f32.mrb[37].mxu0 }
 0xcea   : > { %v2177_v20 = vpop.f32.mrb[38].mxu0 }
 0xceb   : > { %v2859_v21 = vpop.f32.mrb[39].mxu0  ;;  %v2180_v22 = vadd.f32 %v2175_v18, %v4069_v24  ;;  %v3042_v24 = vld [vmem:[%s4350_s0] sm:$0xff]  }
 0xcec   : > { %2869 = vmatpush3.bf16.msra.mxu0 %v3042_v24 }
 0xced   : > { %v2181_v23 = vsel %vm916_vm1, %v2180_v22, 0.0  ;;  %2870 = vmatprep.subr.bf16.mxu0 %v3466_v0 }
 0xcee   : > { %2182 = vadd.xlane.f32.xlu1 %v2181_v23 }
 0xcf0   : > { %2871 = vmatpush3.bf16.msra.mxu0 %v3043_v32 }
 0xcf1   : > { %2872 = vmatprep.subr.bf16.mxu0 %v3466_v0 }
 0xcf4   : > { %2873 = vmatpush3.bf16.msra.mxu0 %v3044_v43 }
 0xcf5   : > { %2874 = vmatprep.subr.bf16.mxu0 %v3466_v0  ;;  %v2656_v0 = vld [vmem:[%s4354_s8] ss:$0 sm:$0xff]  ;;  %s2407_s8 = sshll.u32 %s871_s23, 4  ;;  %s4200_s8 = int_to_ptr.vmem [resolvable:$true] %s2407_s8 }
 0xcf6   : > { %s3366_s1 = scalar_lea.vmem %s4200_s8, 128  ;;  %p3373_p10 = scmp.lt.s32.totalorder %s4200_s8, %s3371_s2 }
 0xcf7   : > { %p3367_p0 = scmp.ne.s32.totalorder %s4200_s8, %s3366_s1  ;;  %p3374_p11 = scmp.lt.s32.totalorder %s3372_s18, %s3366_s1 }
 0xcf8   : > { %2875 = vmatpush3.bf16.msra.mxu0 %v3045_v44 }
 0xcf9   : > { %p3368_p3 = pnand %p3367_p0, %p4358_p2  ;;  %p3375_p8 = por %p3374_p11, %p3373_p10 }
 0xcfb   : > { %p3369_p6 = pneg %p3368_p3 }
 0xcfd   : > { %p3376_p5 = pnand %p3375_p8, %p3369_p6 }
 0xd7b   : > { %v2183_v25 = vpop.xlane.xlu1 %2182 }
 0xd7c   : > { %v2184_v26 = vmul.f32 0.03125, %v2183_v25 }
 0xd7e   : > { %v2185_v27 = vsub.f32 %v2180_v22, %v2184_v26 }
 0xd80   : > { %v2186_v28 = vmul.f32 %v2185_v27, %v2185_v27 }
 0xd82   : > { %v2187_v29 = vsel %vm916_vm1, %v2186_v28, 0.0 }
 0xd83   : > { %2188 = vadd.xlane.f32.xlu0 %v2187_v29 }
 0xe10   : > { %v2189_v33 = vpop.xlane.xlu0 %2188 }
 0xe11   : > { %v2190_v34 = vmul.f32 0.03125, %v2189_v33 }
 0xe13   : > { %v2191_v35 = vadd.f32 1e-05, %v2190_v34 }
 0xe15   : > { %3080 = vrsqrt.f32 %v2191_v35 }
 0xe1f   : > { %v3081_v36 = vpop.eup %3080 }
 0xe20   : > { %v2193_v38 = vmul.f32 %v3081_v36, %v2185_v27 }
 0xe22   : > { %v2201_v40 = vmul.f32 %v2650_v37, %v2193_v38 }
 0xe24   : > { %v2209_v41 = vadd.f32 %v2651_v39, %v2201_v40 }
 0xe26   : > { %v2210_v42 = vpack.c.bf16 %v2209_v41, %v2209_v41 }
 0xe28   : > { %2865 = vmatmul.mubr.msk.bf16.vlgmr.msra.gmra.mrb[44].mxu1 %vm916_vm1, %v2210_v42 }
 0xefb   : > { %v2271_v46 = vpop.f32.mrb[44].mxu1 }
 0xefc   : > { %v2272_v47 = vadd.f32 %v2652_v45, %v2271_v46  ;;  %v2866_v48 = vpop.f32.mrb[45].mxu1 }
 0xefd   : > { %v2274_v49 = vpop.f32.mrb[46].mxu1 }
 0xefe   : > { %v2277_v50 = vmax.f32 %v2272_v47, 0.0  ;;  %v2867_v51 = vpop.f32.mrb[47].mxu1 }
 0xf00   : > { %v2278_v52 = vpack.c.bf16 %v2277_v50, %v2277_v50 }
 0xf02   : > { %2877 = vmatmul.mubr.msk.bf16.vlgmr.msra.gmra.mrb[40].mxu0 %vm2318_vm7, %v2278_v52 }
 0xfd5   : > { %v2356_v53 = vpop.f32.mrb[40].mxu0 }
 0xfd6   : > { %v2357_v54 = vadd.f32 %v2656_v0, %v2356_v53  ;;  %v2878_v55 = vpop.f32.mrb[41].mxu0 }
 0xfd7   : > { %v2359_v56 = vpop.f32.mrb[42].mxu0 }
 0xfd8   : > { %v2879_v57 = vpop.f32.mrb[43].mxu0  ;;  %v2362_v58 = vadd.f32 %v2357_v54, %v2209_v41 }
 0xfda   : > { %v2363_v59 = vsel %vm916_vm1, %v2362_v58, 0.0 }
 0xfdb   : > { %2364 = vadd.xlane.f32.xlu0 %v2363_v59 }
0x1068   : > { %v2365_v60 = vpop.xlane.xlu0 %2364 }
0x1069   : > { %v2366_v61 = vmul.f32 0.03125, %v2365_v60 }
0x106b   : > { %v2367_v62 = vsub.f32 %v2362_v58, %v2366_v61 }
0x106d   : > { %v2368_v63 = vmul.f32 %v2367_v62, %v2367_v62 }
0x106f   : > { %v2369_v1 = vsel %vm916_vm1, %v2368_v63, 0.0 }
0x1070   : > { %2370 = vadd.xlane.f32.xlu1 %v2369_v1 }
0x10fd   : > { %v2371_v2 = vpop.xlane.xlu1 %2370 }
0x10fe   : > { %v2372_v4 = vmul.f32 0.03125, %v2371_v2 }
0x1100   : > { %v2373_v5 = vadd.f32 1e-05, %v2372_v4 }
0x1102   : > { %3082 = vrsqrt.f32 %v2373_v5 }
0x110c   : > { %v3083_v6 = vpop.eup %3082 }
0x110d   : > { %v2375_v8 = vmul.f32 %v3083_v6, %v2367_v62 }
0x110f   : > { %v2383_v10 = vmul.f32 %v2662_v7, %v2375_v8 }
0x1111   : > { %v2391_v3 = vadd.f32 %v2663_v9, %v2383_v10 }
0x1113   : > { %2392 = vst.msk [vmem:[%s871_s23] sm:$0xff] %vm916_vm1, %v2391_v3 }
0x1114   : > { %3379 = shalt.err (!%p3376_p5)
}
0x1115   : > { %s3380_s22 = scalar_lea.hbm %s4198_s10, 128  ;;  %s3384_s27 = scalar_lea.hbm %s4357_s9, 256 }
0x1116   : > { %p3381_p9 = scmp.ne.s32.totalorder %s4198_s10, %s3380_s22  ;;  %p3385_p12 = scmp.lt.u32.totalorder %s4198_s10, %s4357_s9 }
0x1117   : > { %p3386_p1 = scmp.lt.u32.totalorder %s3384_s27, %s3380_s22  ;;  %p3388_p0 = scmp.lt.u32.totalorder %s3380_s22, %s4198_s10 }
0x1118   : > { %p3382_p7 = pnand %p3381_p9, %p4358_p2 }
0x1119   : > { %p3387_p13 = por %p3386_p1, %p3385_p12 }
0x111a   : > { %p3383_p4 = pneg %p3382_p7 }
0x111b   : > { %p3389_p3 = por %p3388_p0, %p3387_p13 }
0x111d   : > { %p3390_p6 = pnand %p3389_p3, %p3383_p4 }
0x111f   : > { %3393 = shalt.err (!%p3390_p6)
}
0x1120   : > { %2918 = dma.vmem_to_hbm [thread:$0]  (%p4358_p2), %s4200_s8, 128, %s4198_s10, %s2394_s15  }
0x1121 PF: > { %s2419_s19 = sand.u32 1, %s3440_s4   ;;  %p4359_p10 = scmp.ne.s32.totalorder %s4325_s21, 0 }
0x1122   : > { %p4360_p11 = scmp.ge.s32.totalorder %s3452_s25, 2  ;;  %s2420_s23 = scalar_lea.sflag [#allocation4], %s2419_s19 }
0x1124   : > { %p2953_p8 = pnand %p4360_p11, %p4359_p10 }
0x1126   : > { %3435 = dma.done.wait (!%p2953_p8), %s2420_s23, 128  }
0x1127   : > { %3437 = vsyncadd (!%p2953_p8), %s2420_s23, 4294967168  ;;  %p41_p5 = scmp.ge.s32.totalorder %s3842_s7, 4   ;;  %s4361_s4 = smov %s3444_s30 }
0x1128   : > { %s4362_s30 = smov %s3448_s24  ;;  %s4363_s24 = smov %s3854_s28 }
0x1129   : > { %s4364_s25 = smov %s3842_s7  ;;  %43 = sbr.rel (!%p41_p5) target bundleno = 32 (0x20), region = 199 }
0x1130   :  { %2425 = vsyncpa [#allocation3], 1 }
0x1131   :  { %2427 = vsyncpa [#allocation3 + $0x1], 1 }
0x1132   :  { %2428 = vsyncpa [#allocation6], 1 }
0x1133   :  { %2429 = vsyncpa [#allocation9], 1 }
0x1134   :  { %2430 = vsyncpa [#allocation12], 1 }
0x1135   :  { %2431 = vsyncpa [#allocation15], 1 }
0x1136   :  { %2432 = vsyncpa [#allocation18], 1 }
0x1137   :  { %2433 = vsyncpa [#allocation4], 1 }
0x1138   :  { %2435 = vsyncpa [#allocation4 + $0x1], 1 }

// kernel: tpu_custom_call.1
= control target key start
LH: loop header
LB: loop body
LE: loop exit
PB: predicated region body
PF: predicated region fallthrough
CT: control target
= control target key end

     0   :  { %s4243_s0 = inlined_call_operand.vmem [shape: f32[2,8,32], index: 0, kind: input, shape index: {}]   ;;  %s4244_s1 = inlined_call_operand.vmem [shape: f32[2,16,32], index: 1, kind: input, shape index: {}]   ;;  %s4245_s2 = inlined_call_operand.hbm [shape: f32[2,1,16], index: 2, kind: input, shape index: {}]   ;;  %s4246_s3 = inlined_call_operand.hbm [shape: bf16[32,96], index: 3, kind: input, shape index: {}]   ;;  %s4247_s4 = inlined_call_operand.vmem [shape: f32[1,96], index: 4, kind: input, shape index: {}]   ;;  %s4248_s5 = inlined_call_operand.hbm [shape: bf16[32,32], index: 5, kind: input, shape index: {}]   ;;  %s4249_s6 = inlined_call_operand.hbm [shape: f32[1,32], index: 6, kind: input, shape index: {}]   ;;  %s4250_s7 = inlined_call_operand.hbm [shape: bf16[32,32], index: 7, kind: input, shape index: {}]   ;;  %s4251_s8 = inlined_call_operand.hbm [shape: f32[1,32], index: 8, kind: input, shape index: {}]   ;;  %s4252_s9 = inlined_call_operand.vmem [shape: bf16[32,64], index: 9, kind: input, shape index: {}]   ;;  %s4253_s10 = inlined_call_operand.hbm [shape: f32[1,64], index: 10, kind: input, shape index: {}]   ;;  %s4254_s11 = inlined_call_operand.hbm [shape: bf16[32,32], index: 11, kind: input, shape index: {}]   ;;  %s4255_s12 = inlined_call_operand.hbm [shape: f32[1,32], index: 12, kind: input, shape index: {}]   ;;  %s4256_s13 = inlined_call_operand.hbm [shape: f32[1,32], index: 13, kind: input, shape index: {}]   ;;  %s4257_s14 = inlined_call_operand.vmem [shape: f32[1,32], index: 14, kind: input, shape index: {}]   ;;  %s4258_s15 = inlined_call_operand.vmem [shape: f32[1,32], index: 15, kind: input, shape index: {}]   ;;  %s4259_s16 = inlined_call_operand.vmem [shape: f32[1,32], index: 16, kind: input, shape index: {}]   ;;  %s4260_s17 = inlined_call_operand.vmem [shape: f32[1,32], index: 17, kind: input, shape index: {}]   ;;  %s4261_s18 = inlined_call_operand.vmem [shape: f32[1,32], index: 18, kind: input, shape index: {}]   ;;  %s4262_s19 = inlined_call_operand.vmem [shape: bf16[32,64], index: 19, kind: input, shape index: {}]   ;;  %s4263_s20 = inlined_call_operand.vmem [shape: f32[1,64], index: 20, kind: input, shape index: {}]   ;;  %s4264_s21 = inlined_call_operand.vmem [shape: bf16[64,32], index: 21, kind: input, shape index: {}]   ;;  %s4265_s22 = inlined_call_operand.vmem [shape: f32[1,32], index: 22, kind: input, shape index: {}]   ;;  %s4266_s23 = inlined_call_operand.hbm [shape: f32[2,8,32], index: 23, kind: output, shape index: {}]  }
   0x1   :  { %4290 = sst [smem:[#allocation27_spill]] %s4243_s0 }
   0x2   :  { %4291 = sst [smem:[#allocation28_spill]] %s4244_s1 }
   0x3   :  { %4292 = sst [smem:[#allocation29_spill]] %s4245_s2 }
   0x4   :  { %4293 = sst [smem:[#allocation30_spill]] %s4246_s3 }
   0x5   :  { %4294 = sst [smem:[#allocation31_spill]] %s4247_s4 }
   0x6   :  { %4295 = sst [smem:[#allocation32_spill]] %s4248_s5 }
   0x7   :  { %4296 = sst [smem:[#allocation33_spill]] %s4249_s6 }
   0x8   :  { %4297 = sst [smem:[#allocation34_spill]] %s4250_s7 }
   0x9   :  { %4298 = sst [smem:[#allocation35_spill]] %s4251_s8 }
   0xa   :  { %4299 = sst [smem:[#allocation36_spill]] %s4252_s9 }
   0xb   :  { %4300 = sst [smem:[#allocation37_spill]] %s4253_s10 }
   0xc   :  { %4301 = sst [smem:[#allocation38_spill]] %s4254_s11 }
   0xd   :  { %4302 = sst [smem:[#allocation39_spill]] %s4258_s15 }
   0xe   :  { %4303 = sst [smem:[#allocation40_spill]] %s4259_s16 }
   0xf   :  { %4304 = sst [smem:[#allocation41_spill]] %s4260_s17 }
  0x10   :  { %4305 = sst [smem:[#allocation42_spill]] %s4261_s18 }
  0x11   :  { %4306 = sst [smem:[#allocation43_spill]] %s4262_s19 }
  0x12   :  { %4307 = sst [smem:[#allocation44_spill]] %s4263_s20 }
  0x13   :  { %4308 = sst [smem:[#allocation45_spill]] %s4264_s21 }
  0x14   :  { %4309 = sst [smem:[#allocation46_spill]] %s4265_s22 }
  0x15   :  { %4310 = sst [smem:[#allocation47_spill]] %s4266_s23 }
  0x16   :  { %28 = vsyncpa [#allocation3], 0 }
  0x17   :  { %30 = vsyncpa [#allocation3 + $0x1], 0 }
  0x18   :  { %31 = vsyncpa [#allocation6], 0 }
  0x19   :  { %32 = vsyncpa [#allocation9], 0 }
  0x1a   :  { %33 = vsyncpa [#allocation12], 0 }
  0x1b   :  { %34 = vsyncpa [#allocation15], 0 }
  0x1c   :  { %35 = vsyncpa [#allocation18], 0 }
  0x1d   :  { %36 = vsyncpa [#allocation4], 0 }
  0x1e   :  { %38 = vsyncpa [#allocation4 + $0x1], 0  ;;  %s3598_s4 = smov 0   ;;  %s3600_s30 = smov 0  }
  0x1f   :  { %s3602_s24 = smov 0   ;;  %s3604_s25 = smov 0  }
  0x20 LB: > { %s3454_s5 = smov [#allocation5]   ;;  %s3619_s26 = sadd.s32 4294967295, %s3452_s25   ;;  %s3452_s25 = sphi %s3604_s25, %s4364_s25   ;;  %s3448_s24 = sphi %s3602_s24, %s4363_s24   ;;  %s3444_s30 = sphi %s3600_s30, %s4362_s30   ;;  %s3440_s4 = sphi %s3598_s4, %s4361_s4  }
  0x21   : > { %s585_s1 = sshll.u32 %s3454_s5, 4  ;;  %p2585_p0 = scmp.ge.s32.totalorder %s3452_s25, 1  ;;  %s3624_s1 = int_to_ptr.vmem [resolvable:$true] %s585_s1 }
  0x22   : > { %p4277_p1 = scmp.eq.s32.totalorder %s3619_s26, 0  ;;  %p573_p2 = scmp.lt.s32.totalorder %s3452_s25, 3 }
  0x23   : > { %s3455_s6 = smov [#allocation8]   ;;  %s3456_s28 = smov [#allocation11]  }
  0x24   : > { %p3626_p3 = pnand %p2585_p0, %p573_p2  ;;  %s615_s27 = sshll.u32 %s3455_s6, 4  ;;  %s3639_s27 = int_to_ptr.vmem [resolvable:$true] %s615_s27 }
  0x25   : > { %s639_s29 = sshll.u32 %s3456_s28, 4  ;;  %s4313_s5 = sld [smem:[#allocation30_spill]]  ;;  %s3641_s29 = int_to_ptr.vmem [resolvable:$true] %s639_s29 }
  0x26   : > { %s4311_s2 = scalar_select %p3626_p3, 1, 0 }
  0x27   : > { %p2920_p5 = pneg %p3626_p3 }
  0x29   : > { %p3635_p6 = pnand %p2920_p5, %p4277_p1 }
  0x2b   : > { %s3084_s23 = scalar_lea.hbm %s4313_s5, 256  ;;  %p3651_p8 = pneg %p3635_p6 }
  0x2c   : > { %p3085_p7 = scmp.ne.s32.totalorder %s4313_s5, %s3084_s23  ;;  %p3091_p11 = scmp.lt.u32.totalorder %s3084_s23, %s4313_s5 }
  0x2e   : > { %p3087_p9 = pnand %p3651_p8, %p3085_p7 }
  0x30   : > { %p3088_p10 = pneg %p3087_p9 }
  0x32   : > { %p3093_p12 = pnand %p3091_p11, %p3088_p10 }
  0x34   : > { %3096 = shalt.err (!%p3093_p12)
}
  0x35   : > { %s3097_s17 = scalar_lea.vmem %s3624_s1, 256  ;;  %p3105_p5 = scmp.lt.s32.totalorder %s3624_s1, %s3624_s1 }
  0x36   : > { %p3098_p13 = scmp.ne.s32.totalorder %s3624_s1, %s3097_s17  ;;  %p3106_p4 = scmp.lt.s32.totalorder %s3097_s17, %s3097_s17 }
  0x38   : > { %p3100_p0 = pnand %p3098_p13, %p3651_p8  ;;  %p3107_p7 = por %p3106_p4, %p3105_p5 }
  0x3a   : > { %p3101_p2 = pneg %p3100_p0 }
  0x3c   : > { %p3108_p9 = pnand %p3107_p7, %p3101_p2 }
  0x3e   : > { %3111 = shalt.err (!%p3108_p9)
}
  0x3f   : > { %s4275_s18 = smov 64   ;;  %s3458_s22 = smov 4  }
  0x40   : > { %2923 = dma.hbm_to_vmem [thread:$0]  (!%p3635_p6), %s4313_s5, 256, %s3624_s1, [#allocation6], %s4275_s18, %s4275_s18, %s3458_s22  }
  0x41   : > { %s4315_s20 = sld [smem:[#allocation33_spill]] }
  0x47   : > { %s3112_s17 = scalar_lea.hbm %s4315_s20, 16 }
  0x48   : > { %p3113_p4 = scmp.ne.s32.totalorder %s4315_s20, %s3112_s17  ;;  %p3119_p12 = scmp.lt.u32.totalorder %s3112_s17, %s4315_s20 }
  0x4a   : > { %p3115_p10 = pnand %p3113_p4, %p3651_p8 }
  0x4c   : > { %p3116_p11 = pneg %p3115_p10 }
  0x4e   : > { %p3121_p13 = pnand %p3119_p12, %p3116_p11 }
  0x50   : > { %3124 = shalt.err (!%p3121_p13)
}
  0x51   : > { %s3125_s1 = scalar_lea.vmem %s3639_s27, 16  ;;  %s3132_s15 = scalar_lea.vmem %s3639_s27, 32 }
  0x52   : > { %p3126_p0 = scmp.ne.s32.totalorder %s3639_s27, %s3125_s1  ;;  %p3133_p7 = scmp.lt.s32.totalorder %s3639_s27, %s3639_s27 }
  0x53   : > { %p3134_p9 = scmp.lt.s32.totalorder %s3132_s15, %s3125_s1 }
  0x54   : > { %p3128_p2 = pnand %p3126_p0, %p3651_p8 }
  0x55   : > { %p3135_p4 = por %p3134_p9, %p3133_p7 }
  0x56   : > { %p3129_p5 = pneg %p3128_p2 }
  0x58   : > { %p3136_p10 = pnand %p3135_p4, %p3129_p5 }
  0x5a   : > { %3139 = shalt.err (!%p3136_p10)
}
  0x5b   : > { %2929 = dma.hbm_to_vmem [thread:$0]  (!%p3635_p6), %s4315_s20, 16, %s3639_s27, [#allocation9]  }
  0x5c   : > { %s4316_s8 = sld [smem:[#allocation35_spill]] }
  0x62   : > { %s3140_s3 = scalar_lea.hbm %s4316_s8, 16 }
  0x63   : > { %p3141_p11 = scmp.ne.s32.totalorder %s4316_s8, %s3140_s3  ;;  %p3147_p0 = scmp.lt.u32.totalorder %s3140_s3, %s4316_s8 }
  0x65   : > { %p3143_p12 = pnand %p3141_p11, %p3651_p8 }
  0x67   : > { %p3144_p13 = pneg %p3143_p12 }
  0x69   : > { %p3149_p2 = pnand %p3147_p0, %p3144_p13 }
  0x6b   : > { %3152 = shalt.err (!%p3149_p2)
}
  0x6c   : > { %s3153_s27 = scalar_lea.vmem %s3641_s29, 16  ;;  %s3160_s15 = scalar_lea.vmem %s3641_s29, 32 }
  0x6d   : > { %p3154_p5 = scmp.ne.s32.totalorder %s3641_s29, %s3153_s27  ;;  %p3161_p4 = scmp.lt.s32.totalorder %s3641_s29, %s3641_s29 }
  0x6e   : > { %p3162_p10 = scmp.lt.s32.totalorder %s3160_s15, %s3153_s27 }
  0x6f   : > { %p3156_p7 = pnand %p3154_p5, %p3651_p8 }
  0x70   : > { %p3163_p11 = por %p3162_p10, %p3161_p4 }
  0x71   : > { %p3157_p9 = pneg %p3156_p7 }
  0x73   : > { %p3164_p12 = pnand %p3163_p11, %p3157_p9 }
  0x75   : > { %3167 = shalt.err (!%p3164_p12)
}
  0x76   : > { %2935 = dma.hbm_to_vmem [thread:$0]  (!%p3635_p6), %s4316_s8, 16, %s3641_s29, [#allocation12]  }
  0x77   : > { %s3459_s21 = smov [#allocation14]   ;;  %s3460_s3 = smov [#allocation7]  }
  0x78   : > { %s663_s23 = sshll.u32 %s3459_s21, 4  ;;  %s601_s0 = sshll.u32 %s3460_s3, 4  ;;  %s664_s23 = int_to_ptr.vmem [resolvable:$true] %s663_s23  ;;  %s602_s0 = int_to_ptr.vmem [resolvable:$true] %s601_s0 }
  0x79   : > { %s4317_s11 = sld [smem:[#allocation38_spill]] }
  0x7f   : > { %s3168_s1 = scalar_lea.hbm %s4317_s11, 256 }
  0x80   : > { %p3169_p13 = scmp.ne.s32.totalorder %s4317_s11, %s3168_s1  ;;  %p3175_p5 = scmp.lt.u32.totalorder %s3168_s1, %s4317_s11 }
  0x82   : > { %p3171_p0 = pnand %p3169_p13, %p3651_p8 }
  0x84   : > { %p3172_p2 = pneg %p3171_p0 }
  0x86   : > { %p3177_p7 = pnand %p3175_p5, %p3172_p2 }
  0x88   : > { %3180 = shalt.err (!%p3177_p7)
}
  0x89   : > { %s3181_s29 = scalar_lea.vmem %s664_s23, 256  ;;  %p3189_p11 = scmp.lt.s32.totalorder %s664_s23, %s664_s23 }
  0x8a   : > { %p3182_p9 = scmp.ne.s32.totalorder %s664_s23, %s3181_s29  ;;  %p3190_p12 = scmp.lt.s32.totalorder %s3181_s29, %s3181_s29 }
  0x8c   : > { %p3184_p4 = pnand %p3182_p9, %p3651_p8  ;;  %p3191_p1 = por %p3190_p12, %p3189_p11 }
  0x8e   : > { %p3185_p10 = pneg %p3184_p4 }
  0x90   : > { %p3192_p3 = pnand %p3191_p1, %p3185_p10 }
  0x92   : > { %3195 = shalt.err (!%p3192_p3)
}
  0x93   : > { %s4318_s19 = smov 64   ;;  %s4319_s17 = sld [smem:[#allocation32_spill]] }
  0x94   : > { %2941 = dma.hbm_to_vmem [thread:$0]  (!%p3635_p6), %s4317_s11, 256, %s664_s23, [#allocation15], %s4318_s19, %s4318_s19, %s3458_s22  }
  0x99   : > { %s3196_s1 = scalar_lea.hbm %s4319_s17, 256 }
  0x9a   : > { %p3197_p1 = scmp.ne.s32.totalorder %s4319_s17, %s3196_s1  ;;  %p3203_p0 = scmp.lt.u32.totalorder %s3196_s1, %s4319_s17 }
  0x9c   : > { %p3199_p3 = pnand %p3197_p1, %p3651_p8 }
  0x9e   : > { %p3200_p13 = pneg %p3199_p3 }
  0xa0   : > { %p3205_p2 = pnand %p3203_p0, %p3200_p13 }
  0xa2   : > { %3208 = shalt.err (!%p3205_p2)
}
  0xa3   : > { %s3209_s18 = scalar_lea.vmem %s602_s0, 256  ;;  %p3217_p4 = scmp.lt.s32.totalorder %s602_s0, %s602_s0 }
  0xa4   : > { %p3210_p5 = scmp.ne.s32.totalorder %s602_s0, %s3209_s18  ;;  %p3218_p10 = scmp.lt.s32.totalorder %s3209_s18, %s3209_s18 }
  0xa6   : > { %p3212_p7 = pnand %p3210_p5, %p3651_p8  ;;  %p3219_p11 = por %p3218_p10, %p3217_p4 }
  0xa8   : > { %p3213_p9 = pneg %p3212_p7 }
  0xaa   : > { %p3220_p12 = pnand %p3219_p11, %p3213_p9 }
  0xac   : > { %3223 = shalt.err (!%p3220_p12)
}
  0xad   : > { %2926 = dma.hbm_to_vmem [thread:$0]  (!%p3635_p6), %s4319_s17, 256, %s602_s0, [#allocation6], %s4318_s19, %s4318_s19, %s3458_s22  }
  0xae   : > { %s3461_s3 = smov [#allocation10]   ;;  %s3462_s1 = smov [#allocation13]  }
  0xaf   : > { %s625_s28 = sshll.u32 %s3461_s3, 4  ;;  %s653_s27 = sshll.u32 %s3462_s1, 4  ;;  %s626_s28 = int_to_ptr.vmem [resolvable:$true] %s625_s28  ;;  %s654_s27 = int_to_ptr.vmem [resolvable:$true] %s653_s27 }
  0xb0   : > { %s4320_s29 = sld [smem:[#allocation34_spill]] }
  0xb6   : > { %s3224_s18 = scalar_lea.hbm %s4320_s29, 256 }
  0xb7   : > { %p3225_p1 = scmp.ne.s32.totalorder %s4320_s29, %s3224_s18  ;;  %p3231_p0 = scmp.lt.u32.totalorder %s3224_s18, %s4320_s29 }
  0xb9   : > { %p3227_p3 = pnand %p3225_p1, %p3651_p8 }
  0xbb   : > { %p3228_p13 = pneg %p3227_p3 }
  0xbd   : > { %p3233_p2 = pnand %p3231_p0, %p3228_p13 }
  0xbf   : > { %3236 = shalt.err (!%p3233_p2)
}
  0xc0   : > { %s3237_s0 = scalar_lea.vmem %s626_s28, 256  ;;  %p3245_p4 = scmp.lt.s32.totalorder %s626_s28, %s626_s28 }
  0xc1   : > { %p3238_p5 = scmp.ne.s32.totalorder %s626_s28, %s3237_s0  ;;  %p3246_p10 = scmp.lt.s32.totalorder %s3237_s0, %s3237_s0 }
  0xc3   : > { %p3240_p7 = pnand %p3238_p5, %p3651_p8  ;;  %p3247_p11 = por %p3246_p10, %p3245_p4 }
  0xc5   : > { %p3241_p9 = pneg %p3240_p7 }
  0xc7   : > { %p3248_p12 = pnand %p3247_p11, %p3241_p9 }
  0xc9   : > { %3251 = shalt.err (!%p3248_p12)
}
  0xca   : > { %2932 = dma.hbm_to_vmem [thread:$0]  (!%p3635_p6), %s4320_s29, 256, %s626_s28, [#allocation9], %s4318_s19, %s4318_s19, %s3458_s22  }
  0xcb   : > { %s4321_s10 = sld [smem:[#allocation37_spill]] }
  0xd1   : > { %s3252_s3 = scalar_lea.hbm %s4321_s10, 16 }
  0xd2   : > { %p3253_p1 = scmp.ne.s32.totalorder %s4321_s10, %s3252_s3  ;;  %p3259_p0 = scmp.lt.u32.totalorder %s3252_s3, %s4321_s10 }
  0xd4   : > { %p3255_p3 = pnand %p3253_p1, %p3651_p8 }
  0xd6   : > { %p3256_p13 = pneg %p3255_p3 }
  0xd8   : > { %p3261_p2 = pnand %p3259_p0, %p3256_p13 }
  0xda   : > { %3264 = shalt.err (!%p3261_p2)
}
  0xdb   : > { %s3265_s23 = scalar_lea.vmem %s654_s27, 16  ;;  %s3272_s22 = scalar_lea.vmem %s654_s27, 32 }
  0xdc   : > { %p3266_p5 = scmp.ne.s32.totalorder %s654_s27, %s3265_s23  ;;  %p3273_p4 = scmp.lt.s32.totalorder %s654_s27, %s654_s27 }
  0xdd   : > { %p3274_p10 = scmp.lt.s32.totalorder %s3272_s22, %s3265_s23 }
  0xde   : > { %p3268_p7 = pnand %p3266_p5, %p3651_p8 }
  0xdf   : > { %p3275_p11 = por %p3274_p10, %p3273_p4 }
  0xe0   : > { %p3269_p9 = pneg %p3268_p7 }
  0xe2   : > { %p3276_p12 = pnand %p3275_p11, %p3269_p9 }
  0xe4   : > { %3279 = shalt.err (!%p3276_p12)
}
  0xe5   : > { %2938 = dma.hbm_to_vmem [thread:$0]  (!%p3635_p6), %s4321_s10, 16, %s654_s27, [#allocation12]  }
  0xe6   : > { %s3463_s0 = smov [#allocation16]   ;;  %s3464_s11 = smov [#allocation17]  }
  0xe7   : > { %s677_s8 = sshll.u32 %s3463_s0, 4  ;;  %s688_s5 = sshll.u32 %s3464_s11, 4  ;;  %s678_s8 = int_to_ptr.vmem [resolvable:$true] %s677_s8  ;;  %s689_s5 = int_to_ptr.vmem [resolvable:$true] %s688_s5 }
  0xe8   : > { %s3280_s1 = scalar_lea.hbm %s4255_s12, 16 }
  0xe9   : > { %p3281_p1 = scmp.ne.s32.totalorder %s4255_s12, %s3280_s1  ;;  %p3287_p0 = scmp.lt.u32.totalorder %s3280_s1, %s4255_s12 }
  0xeb   : > { %p3283_p3 = pnand %p3281_p1, %p3651_p8 }
  0xed   : > { %p3284_p13 = pneg %p3283_p3 }
  0xef   : > { %p3289_p2 = pnand %p3287_p0, %p3284_p13 }
  0xf1   : > { %3292 = shalt.err (!%p3289_p2)
}
  0xf2   : > { %s3293_s27 = scalar_lea.vmem %s678_s8, 16  ;;  %s3300_s22 = scalar_lea.vmem %s678_s8, 32 }
  0xf3   : > { %p3294_p5 = scmp.ne.s32.totalorder %s678_s8, %s3293_s27  ;;  %p3301_p4 = scmp.lt.s32.totalorder %s678_s8, %s678_s8 }
  0xf4   : > { %p3302_p10 = scmp.lt.s32.totalorder %s3300_s22, %s3293_s27 }
  0xf5   : > { %p3296_p7 = pnand %p3294_p5, %p3651_p8 }
  0xf6   : > { %p3303_p11 = por %p3302_p10, %p3301_p4 }
  0xf7   : > { %p3297_p9 = pneg %p3296_p7 }
  0xf9   : > { %p3304_p12 = pnand %p3303_p11, %p3297_p9 }
  0xfb   : > { %3307 = shalt.err (!%p3304_p12)
}
  0xfc   : > { %2944 = dma.hbm_to_vmem [thread:$0]  (!%p3635_p6), %s4255_s12, 16, %s678_s8, [#allocation15]  }
  0xfd   : > { %s3308_s21 = scalar_lea.hbm %s4256_s13, 16 }
  0xfe   : > { %p3309_p1 = scmp.ne.s32.totalorder %s4256_s13, %s3308_s21  ;;  %p3315_p0 = scmp.lt.u32.totalorder %s3308_s21, %s4256_s13 }
 0x100   : > { %p3311_p3 = pnand %p3309_p1, %p3651_p8 }
 0x102   : > { %p3312_p13 = pneg %p3311_p3 }
 0x104   : > { %p3317_p2 = pnand %p3315_p0, %p3312_p13 }
 0x106   : > { %3320 = shalt.err (!%p3317_p2)
}
 0x107   : > { %s3321_s18 = scalar_lea.vmem %s689_s5, 16  ;;  %s3328_s8 = scalar_lea.vmem %s689_s5, 32 }
 0x108   : > { %p3322_p5 = scmp.ne.s32.totalorder %s689_s5, %s3321_s18  ;;  %p3329_p4 = scmp.lt.s32.totalorder %s689_s5, %s689_s5 }
 0x109   : > { %p3330_p10 = scmp.lt.s32.totalorder %s3328_s8, %s3321_s18 }
 0x10a   : > { %p3324_p7 = pnand %p3322_p5, %p3651_p8 }
 0x10b   : > { %p3331_p11 = por %p3330_p10, %p3329_p4 }
 0x10c   : > { %p3325_p9 = pneg %p3324_p7 }
 0x10e   : > { %p3332_p12 = pnand %p3331_p11, %p3325_p9 }
 0x110   : > { %3335 = shalt.err (!%p3332_p12)
}
 0x111   : > { %2947 = dma.hbm_to_vmem [thread:$0]  (!%p3635_p6), %s4256_s13, 16, %s689_s5, [#allocation18]  }
 0x112   : > { %s2584_s6 = sadd.s32 4294967294, %s3452_s25   ;;  %s3842_s7 = sadd.s32 1, %s3452_s25  }
 0x113   : > { %s103_s22 = sadd.s32 1, %s3448_s24  ;;  %s100_s19 = ssub.s32 %s3452_s25, %s3842_s7 }
 0x114   : > { %p110_p8 = scmp.ne.s32.totalorder %s3448_s24, %s3444_s30  ;;  %p101_p1 = scmp.eq.s32.totalorder %s100_s19, 0 }
 0x115   : > { %p111_p3 = scmp.eq.s32.totalorder %s3452_s25, 0  ;;  %p116_p13 = scmp.ne.s32.totalorder %s3444_s30, %s3440_s4 }
 0x116   : > { %p560_p0 = scmp.eq.s32.totalorder %s3619_s26, 1  ;;  %p4322_p5 = scmp.eq.s32.totalorder %s3619_s26, 0 }
 0x117   : > { %s3854_s28 = scalar_select %p101_p1, %s3448_s24, %s103_s22  }
 0x118   : > { %p112_p2 = por %p111_p3, %p110_p8  ;;  %p3858_p7 = por %p4322_p5, %p116_p13 }
 0x119   : > { %p3862_p6 = por %p560_p0, %p110_p8  ;;  %p566_p9 = scmp.eq.s32.totalorder %s2584_s6, 1 }
 0x11a   : > { %p2965_p4 = scmp.lt.s32.totalorder %s3452_s25, 2  ;;  %s741_s11 = sand.u32 1, %s3448_s24  }
 0x11b   : > { %s4324_s5 = scalar_select %p3862_p6, 1, 0 }
 0x11c   : > { %p3868_p10 = por %p566_p9, %p116_p13  ;;  %s2596_s3 = sshll.u32 %s3452_s25, 4 }
 0x11d   : > { %s4326_s16 = sld [smem:[#allocation29_spill]]  ;;  %s744_s8 = scalar_lea.vmem [#allocation2], %s741_s11 }
 0x11e   : > { %s4325_s21 = scalar_select %p3868_p10, 1, 0 }
 0x11f   : > { %s751_s23 = sshll.u32 %s744_s8, 4  ;;  %p3880_p11 = pnand %p2965_p4, %p112_p2  ;;  %s3878_s23 = int_to_ptr.vmem [resolvable:$true] %s751_s23 }
 0x120   : > { %s742_s6 = scalar_lea.sflag [#allocation3], %s741_s11 }
 0x121   : > { %p3338_p8 = pneg %p3880_p11 }
 0x123   : > { %s3876_s18 = scalar_lea.hbm %s4326_s16, %s2596_s3  ;;  %s3341_s1 = scalar_lea.hbm %s4326_s16, 32 }
 0x124   : > { %s3336_s22 = scalar_lea.hbm %s3876_s18, 16  ;;  %p3342_p13 = scmp.lt.u32.totalorder %s3876_s18, %s4326_s16 }
 0x125   : > { %p3337_p12 = scmp.ne.s32.totalorder %s3876_s18, %s3336_s22  ;;  %p3343_p0 = scmp.lt.u32.totalorder %s3341_s1, %s3336_s22 }
 0x126   : > { %p3345_p5 = scmp.lt.u32.totalorder %s3336_s22, %s3876_s18 }
 0x127   : > { %p3339_p1 = pnand %p3338_p8, %p3337_p12  ;;  %p3344_p2 = por %p3343_p0, %p3342_p13 }
 0x129   : > { %p3340_p3 = pneg %p3339_p1  ;;  %p3346_p9 = por %p3345_p5, %p3344_p2 }
 0x12b   : > { %p3347_p4 = pnand %p3346_p9, %p3340_p3 }
 0x12d   : > { %3350 = shalt.err (!%p3347_p4)
}
 0x12e   : > { %s3351_s11 = scalar_lea.vmem %s3878_s23, 16  ;;  %s3465_s19 = smov [#allocation2]  }
 0x12f   : > { %p3352_p12 = scmp.ne.s32.totalorder %s3878_s23, %s3351_s11  ;;  %s3356_s3 = sshll.u32 %s3465_s19, 4  ;;  %s3357_s3 = int_to_ptr.vmem [resolvable:$false] %s3356_s3 }
 0x130   : > { %s3358_s15 = scalar_lea.vmem %s3357_s3, 32  ;;  %p3359_p6 = scmp.lt.s32.totalorder %s3878_s23, %s3357_s3 }
 0x131   : > { %p3354_p1 = pnand %p3352_p12, %p3338_p8  ;;  %p3360_p13 = scmp.lt.s32.totalorder %s3358_s15, %s3351_s11 }
 0x133   : > { %p3355_p10 = pneg %p3354_p1  ;;  %p3361_p0 = por %p3360_p13, %p3359_p6 }
 0x135   : > { %p3362_p2 = pnand %p3361_p0, %p3355_p10 }
 0x137   : > { %3365 = shalt.err (!%p3362_p2)
}
 0x138   : > { %2951 = dma.hbm_to_vmem [thread:$0]  (!%p3880_p11), %s3876_s18, 16, %s3878_s23, %s742_s6  }
 0x139   : > { %p4328_p3 = scmp.ne.s32.totalorder %s4311_s2, 0 }
 0x13a   : > { %s3912_s22 = sand.u32 (!%p4328_p3), 1, %s3444_s30  }
 0x13b   : > { %760 = sbr.rel (%p4328_p3) target bundleno = 4385 (0x1121), region = 112  ;;  %s763_s1 = scalar_lea.sflag (!%p4328_p3), [#allocation3], %s3912_s22 }
 0x142   : > { %3411 = dma.done.wait (%p3858_p7), %s763_s1, 16  }
 0x143   : > { %3413 = vsyncadd (%p3858_p7), %s763_s1, 4294967280  ;;  %p4329_p6 = scmp.eq.s32.totalorder %s3619_s26, 0 }
 0x145   : > { %3415 = dma.done.wait (%p4329_p6), [#allocation6], 512   ;;  %p4330_p10 = pmov %p4329_p6 }
 0x146   : > { %p4331_p11 = pmov %p4329_p6 }
 0x147   : > { %3417 = vsyncadd (%p4330_p10), [#allocation6], 4294966784 }
 0x148   : > { %3419 = dma.done.wait (%p4331_p11), [#allocation9], 272   ;;  %p4332_p8 = pmov %p4329_p6 }
 0x149   : > { %p4333_p5 = pmov %p4329_p6 }
 0x14a   : > { %3421 = vsyncadd (%p4332_p8), [#allocation9], 4294967024 }
 0x14b   : > { %3423 = dma.done.wait (%p4333_p5), [#allocation12], 32   ;;  %p4334_p9 = pmov %p4333_p5 }
 0x14c   : > { %p4335_p7 = pmov %p4333_p5 }
 0x14d   : > { %3425 = vsyncadd (%p4334_p9), [#allocation12], 4294967264 }
 0x14e   : > { %3427 = dma.done.wait (%p4335_p7), [#allocation15], 272   ;;  %p4336_p4 = pmov %p4333_p5 }
 0x150   : > { %3429 = vsyncadd (%p4336_p4), [#allocation15], 4294967024  ;;  %p4337_p12 = pmov %p4336_p4 }
 0x151   : > { %p4338_p1 = pmov %p4336_p4 }
 0x152   : > { %3431 = dma.done.wait (%p4337_p12), [#allocation18], 16  }
 0x153   : > { %3433 = vsyncadd (%p4338_p1), [#allocation18], 4294967280  ;;  %p872_p13 = scmp.lt.s32.totalorder %s3619_s26, 1  ;;  %v3466_v0 = vmov 0.0   ;;  %vm3467_vm0 = vmmov 0   ;;  %s4339_s27 = sld [smem:[#allocation27_spill]]  ;;  %v885_v27 = vlaneseq }
 0x154   : > { %2724 = vmatprep.subr.bf16.mxu1 %v3466_v0  ;;  %2728 = vmatprep.mubr.msk.bf16.mxu1 %vm3467_vm0, %v3466_v0  ;;  %v3030_v1 = vld [vmem:[#allocation5] sm:$0xff]   ;;  %v3031_v2 = vld [vmem:[#allocation5 + $0x8] sm:$0xff]   ;;  %vm916_vm1 = vcmask 261120   ;;  %s4340_s3 = sld [smem:[#allocation31_spill]]  ;;  %s4286_s15 = smov 104   ;;  %vm970_vm2 = vcmask 64512  }
 0x155   : > { %s3945_s2 = scalar_select %p872_p13, %s3619_s26, 1  ;;  %2738 = vmatprep.subr.bf16.mxu0 %v3466_v0  ;;  %2740 = vmatprep.mubr.msk.bf16.mxu0 %vm3467_vm0, %v3466_v0  ;;  %vm1214_vm3 = vcmask 1043456   ;;  %v886_v28 = vshrl.u32 %v885_v27, 7  ;;  %v888_v29 = vand.u32 127, %v885_v27  ;;  %v3473_v30 = vmov -1e+30  }
 0x156   : > { %2725 = vmatpush3.bf16.msra.mxu1 %v3030_v1  ;;  %s3469_s1 = smov 120   ;;  %s3471_s18 = smov 112   ;;  %vm1419_vm5 = vcmask 130048   ;;  %vm1421_vm6 = vcmask 195584   ;;  %vm2318_vm7 = vcmask 523264  }
 0x157   : > { %s2608_s0 = sshll.u32 %s3945_s2, 3  ;;  %2726 = vmatprep.subr.bf16.mxu1 %v3466_v0  ;;  %s3472_s23 = smov 64   ;;  %vm889_vm4 = vcmp.ge.s32.totalorder %v886_v28, %v888_v29  ;;  %v3032_v28 = vld [vmem:[#allocation7] sm:$0xff]  }
 0x158   : > { %v890_v31 = vsel %vm889_vm4, 0.0, %v3473_v30  ;;  %v3033_v30 = vld [vmem:[#allocation7 + $0x8] sm:$0xff]   ;;  %s4281_s11 = smov 24   ;;  %s4341_s9 = sld [smem:[#allocation36_spill]] }
 0x159   : > { %s875_s6 = scalar_lea.vmem %s4339_s27, %s2608_s0  ;;  %s4284_s0 = smov 96  }
 0x15a   : > { %v3954_v3 = vld [vmem:[%s875_s6] sm:$0xff]  ;;  %2727 = vmatpush3.bf16.msra.mxu1 %v3031_v2  ;;  %s4283_s27 = smov 8   ;;  %s4282_s6 = smov 16  }
 0x15b   : > { %v892_v4 = vpack.c.bf16 %v3954_v3, %v3954_v3  ;;  %2732 = vmatprep.subr.bf16.mxu1 %v3466_v0  ;;  %v2611_v5 = vld [vmem:[%s4340_s3] ss:$0 sm:$0xff]  ;;  %s4349_s3 = sld [smem:[#allocation43_spill]]  ;;  %s4352_s8 = sld [smem:[#allocation40_spill]] }
 0x15c   : > { %s2665_s19 = sshll.u32 %s3619_s26, 7  ;;  %p4358_p2 = scmp.ne.s32.totalorder %s4324_s5, 0 }
 0x15d   : > { %2729 = vmatmul.mubr.msk.bf16.vlgmr.msra.gmra.mrb[0].mxu1 %vm916_vm1, %v892_v4  ;;  %s3477_s26 = smov [#allocation19]  }
 0x15e   : > { %2734 = vmatprep.mubr.msk.bf16.mxu1 %vm3467_vm0, %v3466_v0 }
 0x230   : > { %v954_v6 = vpop.f32.mrb[0].mxu1 }
 0x231   : > { %v955_v7 = vadd.f32 %v2611_v5, %v954_v6  ;;  %v2730_v8 = vpop.f32.mrb[1].mxu1 }
 0x232   : > { %v957_v9 = vpop.f32.mrb[2].mxu1 }
 0x233   : > { %v960_v10 = vpack.c.bf16 %v955_v7, %v955_v7  ;;  %v2731_v11 = vpop.f32.mrb[3].mxu1 }
 0x235   : > { %966 = vrot.lane.b32.xlu1 %v960_v10, %s4286_s15  ;;  %962 = vrot.lane.b32.xlu0 %v960_v10, %s3469_s1 }
 0x239   : > { %968 = vrot.lane.b32.xlu1 %v960_v10, %s4284_s0  ;;  %964 = vrot.lane.b32.xlu0 %v960_v10, %s3471_s18 }
 0x2a7   : > { %v3970_v12 = vpop.permute.xlu1 %966  ;;  %v963_v13 = vpop.permute.xlu0 %962 }
 0x2a8   : > { %1017 = vrot.lane.b32.xlu0 %v963_v13, %s4284_s0 }
 0x2ab   : > { %v969_v14 = vpop.permute.xlu1 %968  ;;  %v3973_v15 = vpop.permute.xlu0 %964 }
 0x2ac   : > { %v975_v16 = vsel %vm970_vm2, %v969_v14, 0  ;;  %1113 = vrot.lane.b32.xlu0 %v3970_v12, %s4284_s0  ;;  %1065 = vrot.lane.b32.xlu1 %v3973_v15, %s4284_s0  ;;  %s4342_s0 = sld [smem:[#allocation28_spill]] }
 0x2ad   : > { %2733 = vmatpush3.bf16.xpose.msra.mxu1 %v975_v16 }
 0x2ae   : > { %2744 = vmatprep.subr.bf16.mxu1 %v3466_v0 }
 0x2b0   : > { %1209 = vrot.lane.b32.xlu0 %v960_v10, %s3472_s23  ;;  %1258 = vrot.lane.b32.xlu1 %v963_v13, %s3472_s23 }
 0x2b4   : > { %2735 = vmatmul.mubr.msk.bf16.vlgmr.msra.gmra.mrb[4].mxu1 %vm970_vm2, %v960_v10 }
 0x2b5   : > { %2746 = vmatprep.mubr.msk.bf16.mxu1 %vm3467_vm0, %v3466_v0 }
 0x31a   : > { %v1018_v17 = vpop.permute.xlu0 %1017 }
 0x31b   : > { %v1023_v18 = vsel %vm970_vm2, %v1018_v17, 0 }
 0x31c   : > { %2739 = vmatpush3.bf16.xpose.msra.mxu0 %v1023_v18 }
 0x31d   : > { %2750 = vmatprep.subr.bf16.mxu0 %v3466_v0 }
 0x31e   : > { %v1066_v19 = vpop.permute.xlu1 %1065  ;;  %v1114_v20 = vpop.permute.xlu0 %1113 }
 0x31f   : > { %v1071_v21 = vsel %vm970_vm2, %v1066_v19, 0  ;;  %v1119_v22 = vsel %vm970_vm2, %v1114_v20, 0 }
 0x320   : > { %2745 = vmatpush3.bf16.xpose.msra.mxu1 %v1071_v21 }
 0x321   : > { %2756 = vmatprep.subr.bf16.mxu1 %v3466_v0 }
 0x322   : > { %v1210_v23 = vpop.permute.xlu0 %1209  ;;  %v1259_v25 = vpop.permute.xlu1 %1258 }
 0x323   : > { %2741 = vmatmul.mubr.msk.bf16.vlgmr.msra.gmra.mrb[0].mxu0 %vm970_vm2, %v963_v13  ;;  %v1216_v24 = vsel %vm1214_vm3, %v1210_v23, 0  ;;  %v1264_v26 = vsel %vm1214_vm3, %v1259_v25, 0 }
 0x324   : > { %2751 = vmatpush3.bf16.xpose.msra.mxu0 %v1119_v22  ;;  %2752 = vmatprep.mubr.msk.bf16.mxu0 %vm3467_vm0, %v3466_v0 }
 0x325   : > { %2762 = vmatprep.subr.bf16.mxu0 %v3466_v0 }
 0x327   : > { %2747 = vmatmul.mubr.msk.bf16.vlgmr.msra.gmra.mrb[8].mxu1 %vm970_vm2, %v3973_v15 }
 0x328   : > { %2757 = vmatpush3.bf16.msra.mxu1 %v1216_v24  ;;  %2758 = vmatprep.mubr.msk.bf16.mxu1 %vm3467_vm0, %v3466_v0 }
 0x329   : > { %2768 = vmatprep.subr.bf16.mxu1 %v3466_v0 }
 0x32b   : > { %2753 = vmatmul.mubr.msk.bf16.vlgmr.msra.gmra.mrb[4].mxu0 %vm970_vm2, %v3970_v12 }
 0x32c   : > { %2763 = vmatpush3.bf16.msra.mxu0 %v1264_v26  ;;  %2764 = vmatprep.mubr.msk.bf16.mxu0 %vm3467_vm0, %v3466_v0 }
 0x32d   : > { %2774 = vmatprep.subr.bf16.mxu0 %v3466_v0 }
 0x387   : > { %v1011_v32 = vpop.f32.mrb[4].mxu1 }
 0x388   : > { %v1161_v33 = vadd.f32 %v1011_v32, %v890_v31  ;;  %v2736_v34 = vpop.f32.mrb[5].mxu1 }
 0x389   : > { %v1014_v35 = vpop.f32.mrb[6].mxu1 }
 0x38a   : > { %v2737_v36 = vpop.f32.mrb[7].mxu1  ;;  %v1165_v37 = vsel %vm970_vm2, %v1161_v33, -inf }
 0x38b   : > { %1166 = vmax.xlane.f32.xlu1 %v1165_v37 }
 0x3f6   : > { %v1059_v38 = vpop.f32.mrb[0].mxu0 }
 0x3f7   : > { %v1162_v39 = vadd.f32 %v1059_v38, %v890_v31  ;;  %v2742_v40 = vpop.f32.mrb[1].mxu0 }
 0x3f8   : > { %v1062_v41 = vpop.f32.mrb[2].mxu0 }
 0x3f9   : > { %v2743_v42 = vpop.f32.mrb[3].mxu0  ;;  %v1168_v43 = vsel %vm970_vm2, %v1162_v39, -inf }
 0x3fa   : > { %1169 = vmax.xlane.f32.xlu0 %v1168_v43  ;;  %v1107_v44 = vpop.f32.mrb[8].mxu1 }
 0x3fb   : > { %v1163_v45 = vadd.f32 %v1107_v44, %v890_v31  ;;  %v2748_v46 = vpop.f32.mrb[9].mxu1 }
 0x3fc   : > { %v1110_v47 = vpop.f32.mrb[10].mxu1 }
 0x3fd   : > { %v2749_v48 = vpop.f32.mrb[11].mxu1  ;;  %v1171_v49 = vsel %vm970_vm2, %v1163_v45, -inf }
 0x3fe   : > { %v1155_v50 = vpop.f32.mrb[4].mxu0  ;;  %1172 = vmax.xlane.f32.xlu0 %v1171_v49 }
 0x3ff   : > { %v1164_v51 = vadd.f32 %v1155_v50, %v890_v31  ;;  %v2754_v52 = vpop.f32.mrb[5].mxu0 }
 0x400   : > { %v1158_v53 = vpop.f32.mrb[6].mxu0 }
 0x401   : > { %v2755_v54 = vpop.f32.mrb[7].mxu0  ;;  %v1174_v55 = vsel %vm970_vm2, %v1164_v51, -inf }
 0x402   : > { %1175 = vmax.xlane.f32.xlu1 %v1174_v55 }
 0x413   : > { %1306 = vrot.lane.b32.xlu1 %v3973_v15, %s3472_s23 }
 0x414   : > { %1354 = vrot.lane.b32.xlu0 %v3970_v12, %s3472_s23  ;;  %s2668_s23 = sshll.u32 %s3945_s2, 4  ;;  %s2607_s2 = sshll.u32 %s3912_s22, 3 }
 0x415   : > { %s880_s15 = scalar_lea.vmem %s4342_s0, %s2668_s23  ;;  %s4344_s0 = smov 96  }
 0x416   : > { %s871_s23 = scalar_lea.vmem [#allocation19], %s2607_s2  ;;  %s3370_s2 = sshll.u32 %s3477_s26, 4  ;;  %s3371_s2 = int_to_ptr.vmem [resolvable:$false] %s3370_s2 }
 0x418   : > { %v1167_v56 = vpop.xlane.xlu1 %1166 }
 0x419   : > { %v1177_v57 = vsub.f32 %v1161_v33, %v1167_v56 }
 0x41b   : > { %v1181_v58 = vmul.f32 1.442695, %v1177_v57 }
 0x41d   : > { %3046 = vpow2.f32 %v1181_v58 }
 0x427   : > { %v3047_v59 = vpop.eup %3046 }
 0x428   : > { %v1205_v60 = vpack.c.bf16 %v3047_v59, %v3047_v59  ;;  %v1189_v16 = vsel %vm970_vm2, %v3047_v59, 0.0  ;;  %v2623_v59 = vld [vmem:[#allocation8] ss:$0 sm:$0xff] }
 0x42a   : > { %2759 = vmatmul.mubr.msk.bf16.vlgmr.msra.gmra.mrb[12].mxu1 %vm970_vm2, %v1205_v60 }
 0x42b   : > { %2770 = vmatprep.mubr.msk.bf16.mxu1 %vm3467_vm0, %v3466_v0 }
 0x487   : > { %v1170_v61 = vpop.xlane.xlu0 %1169 }
 0x488   : > { %v1178_v62 = vsub.f32 %v1162_v39, %v1170_v61 }
 0x48a   : > { %v1183_v63 = vmul.f32 1.442695, %v1178_v62 }
 0x48b   : > { %v1173_v1 = vpop.xlane.xlu0 %1172 }
 0x48c   : > { %3048 = vpow2.f32 %v1183_v63  ;;  %v1179_v2 = vsub.f32 %v1163_v45, %v1173_v1 }
 0x48e   : > { %v1185_v4 = vmul.f32 1.442695, %v1179_v2 }
 0x48f   : > { %v1176_v5 = vpop.xlane.xlu1 %1175  ;;  %v1355_v11 = vpop.permute.xlu0 %1354 }
 0x490   : > { %3050 = vpow2.f32 %v1185_v4  ;;  %v1180_v6 = vsub.f32 %v1164_v51, %v1176_v5  ;;  %v1360_v14 = vsel %vm1214_vm3, %v1355_v11, 0  ;;  %v883_v11 = vld [vmem:[%s880_s15] sm:$0xff] }
 0x492   : > { %v1187_v7 = vmul.f32 1.442695, %v1180_v6 }
 0x493   : > { %v1307_v8 = vpop.permute.xlu1 %1306 }
 0x494   : > { %3052 = vpow2.f32 %v1187_v7  ;;  %v1312_v9 = vsel %vm1214_vm3, %v1307_v8, 0 }
 0x495   : > { %2769 = vmatpush3.bf16.msra.mxu1 %v1312_v9 }
 0x496   : > { %v3049_v10 = vpop.eup %3048  ;;  %2780 = vmatprep.subr.bf16.mxu1 %v3466_v0 }
 0x497   : > { %v1192_v12 = vsel %vm970_vm2, %v3049_v10, 0.0  ;;  %v1206_v13 = vpack.c.bf16 %v3049_v10, %v3049_v10  ;;  %v3034_v10 = vld [vmem:[%s4341_s9] sm:$0xff]  }
 0x498   : > { %1193 = vadd.xlane.f32.xlu1 %v1192_v12  ;;  %v884_v12 = vld [vmem:[%s880_s15 + $0x8] sm:$0xff]  ;;  %s4343_s15 = smov 104  }
 0x499   : > { %2765 = vmatmul.mubr.msk.bf16.vlgmr.msra.gmra.mrb[8].mxu0 %vm970_vm2, %v1206_v13  ;;  %v1589_v13 = vpack.c.bf16 %v884_v12, %v883_v11 }
 0x49a   : > { %v3051_v15 = vpop.eup %3050  ;;  %2775 = vmatpush3.bf16.msra.mxu0 %v1360_v14  ;;  %2776 = vmatprep.mubr.msk.bf16.mxu0 %vm3467_vm0, %v3466_v0  ;;  %v3036_v14 = vld [vmem:[#allocation10] sm:$0xff]  }
 0x49b   : > { %v1195_v17 = vsel %vm970_vm2, %v3051_v15, 0.0  ;;  %v1207_v18 = vpack.c.bf16 %v3051_v15, %v3051_v15  ;;  %2788 = vmatprep.subr.bf16.mxu0 %v3466_v0  ;;  %v3037_v15 = vld [vmem:[#allocation10 + $0x8] sm:$0xff]  }
 0x49c   : > { %1190 = vadd.xlane.f32.xlu1 %v1189_v16  ;;  %1196 = vadd.xlane.f32.xlu0 %v1195_v17 }
 0x49d   : > { %2771 = vmatmul.mubr.msk.bf16.vlgmr.msra.gmra.mrb[16].mxu1 %vm970_vm2, %v1207_v18 }
 0x49e   : > { %v3053_v19 = vpop.eup %3052  ;;  %2784 = vmatprep.mubr.msk.bf16.mxu1 %vm3467_vm0, %v3466_v0  ;;  %2781 = vmatpush3.bf16.msra.mxu1 %v3032_v28 }
 0x49f   : > { %v1198_v20 = vsel %vm970_vm2, %v3053_v19, 0.0  ;;  %v1208_v21 = vpack.c.bf16 %v3053_v19, %v3053_v19  ;;  %2782 = vmatprep.subr.bf16.mxu1 %v3466_v0 }
 0x4a0   : > { %1199 = vadd.xlane.f32.xlu0 %v1198_v20  ;;  %v2627_v20 = vld [vmem:[#allocation17] ss:$0 sm:$0xff] }
 0x4a1   : > { %2777 = vmatmul.mubr.msk.bf16.vlgmr.msra.gmra.mrb[12].mxu0 %vm970_vm2, %v1208_v21 }
 0x4a2   : > { %2792 = vmatprep.mubr.msk.bf16.mxu0 %vm3467_vm0, %v3466_v0  ;;  %2783 = vmatpush3.bf16.msra.mxu1 %v3033_v30 }
 0x4a3   : > { %2796 = vmatprep.subr.bf16.mxu1 %v3466_v0  ;;  %2789 = vmatpush3.bf16.msra.mxu0 %v3036_v14 }
 0x4a4   : > { %2790 = vmatprep.subr.bf16.mxu0 %v3466_v0 }
 0x4a7   : > { %2791 = vmatpush3.bf16.msra.mxu0 %v3037_v15 }
 0x4a8   : > { %2804 = vmatprep.subr.bf16.mxu0 %v3466_v0 }
 0x4fd   : > { %v1252_v22 = vpop.f32.mrb[12].mxu1 }
 0x4fe   : > { %v2760_v23 = vpop.f32.mrb[13].mxu1 }
 0x4ff   : > { %v1255_v24 = vpop.f32.mrb[14].mxu1 }
 0x500   : > { %v2761_v25 = vpop.f32.mrb[15].mxu1 }
 0x525   : > { %v1194_v26 = vpop.xlane.xlu1 %1193 }
 0x526   : > { %3054 = vrcp.f32 %v1194_v26  ;;  %v2633_v26 = vld [vmem:[#allocation13] ss:$0 sm:$0xff] }
 0x529   : > { %v1197_v27 = vpop.xlane.xlu0 %1196  ;;  %v1191_v49 = vpop.xlane.xlu1 %1190 }
 0x52a   : > { %3056 = vrcp.f32 %v1197_v27 }
 0x52d   : > { %v1200_v29 = vpop.xlane.xlu0 %1199 }
 0x52e   : > { %3058 = vrcp.f32 %v1200_v29 }
 0x52f   : > { %3060 = vrcp.f32 %v1191_v49 }
 0x530   : > { %v3055_v31 = vpop.eup %3054 }
 0x534   : > { %v3057_v37 = vpop.eup %3056 }
 0x538   : > { %v3059_v43 = vpop.eup %3058 }
 0x539   : > { %v3061_v50 = vpop.eup %3060 }
 0x53a   : > { %v1402_v53 = vmul.f32 %v3061_v50, %v1252_v22  ;;  %v2628_v22 = vld [vmem:[%s4257_s14] ss:$0 sm:$0xff] }
 0x56c   : > { %v1300_v32 = vpop.f32.mrb[8].mxu0 }
 0x56d   : > { %v1403_v33 = vmul.f32 %v3055_v31, %v1300_v32  ;;  %v2766_v34 = vpop.f32.mrb[9].mxu0 }
 0x56e   : > { %v1303_v35 = vpop.f32.mrb[10].mxu0 }
 0x56f   : > { %v2767_v36 = vpop.f32.mrb[11].mxu0  ;;  %1407 = vrot.lane.b32.xlu0 %v1403_v33, %s4283_s27  ;;  %s4347_s27 = smov 16  }
 0x570   : > { %v1348_v38 = vpop.f32.mrb[16].mxu1 }
 0x571   : > { %v1404_v39 = vmul.f32 %v3057_v37, %v1348_v38  ;;  %v2772_v40 = vpop.f32.mrb[17].mxu1  ;;  %v2629_v37 = vld [vmem:[#allocation11] ss:$0 sm:$0xff] }
 0x572   : > { %v1351_v41 = vpop.f32.mrb[18].mxu1 }
 0x573   : > { %1411 = vrot.lane.b32.xlu1 %v1404_v39, %s4282_s6  ;;  %v2773_v42 = vpop.f32.mrb[19].mxu1  ;;  %s4348_s6 = smov 24  }
 0x574   : > { %v1396_v44 = vpop.f32.mrb[12].mxu0 }
 0x575   : > { %v1405_v45 = vmul.f32 %v3059_v43, %v1396_v44  ;;  %v2778_v46 = vpop.f32.mrb[13].mxu0 }
 0x576   : > { %v1399_v47 = vpop.f32.mrb[14].mxu0 }
 0x577   : > { %v2779_v48 = vpop.f32.mrb[15].mxu0  ;;  %1415 = vrot.lane.b32.xlu1 %v1405_v45, %s4281_s11  ;;  %s4351_s11 = sld [smem:[#allocation39_spill]] }
 0x5e1   : > { %v1408_v51 = vpop.permute.xlu0 %1407 }
 0x5e2   : > { %v1418_v54 = vsel %vm970_vm2, %v1402_v53, %v1408_v51 }
 0x5e5   : > { %v1412_v52 = vpop.permute.xlu1 %1411 }
 0x5e6   : > { %v1420_v55 = vsel %vm1419_vm5, %v1418_v54, %v1412_v52 }
 0x5e9   : > { %v1416_v56 = vpop.permute.xlu1 %1415 }
 0x5ea   : > { %v1422_v57 = vsel %vm1421_vm6, %v1420_v55, %v1416_v56 }
 0x5eb   : > { %v1423_v58 = vpack.c.bf16 %v1422_v57, %v1422_v57 }
 0x5ed   : > { %2785 = vmatmul.mubr.msk.bf16.vlgmr.msra.gmra.mrb[20].mxu1 %vm916_vm1, %v1423_v58 }
 0x5ee   : > { %2800 = vmatprep.mubr.msk.bf16.mxu1 %vm3467_vm0, %v3466_v0  ;;  %2797 = vmatpush3.bf16.msra.mxu1 %v3034_v10 }
 0x5ef   : > { %2798 = vmatprep.subr.bf16.mxu1 %v3466_v0 }
 0x6c0   : > { %v1484_v60 = vpop.f32.mrb[20].mxu1 }
 0x6c1   : > { %v1485_v61 = vadd.f32 %v2623_v59, %v1484_v60  ;;  %v2786_v62 = vpop.f32.mrb[21].mxu1 }
 0x6c2   : > { %v1487_v63 = vpop.f32.mrb[22].mxu1 }
 0x6c3   : > { %v2787_v1 = vpop.f32.mrb[23].mxu1  ;;  %v1490_v2 = vadd.f32 %v1485_v61, %v3954_v3  ;;  %v3035_v3 = vld [vmem:[%s4341_s9 + $0x8] sm:$0xff]   ;;  %s4357_s9 = sld [smem:[#allocation47_spill]] }
 0x6c4   : > { %2799 = vmatpush3.bf16.msra.mxu1 %v3035_v3 }
 0x6c5   : > { %v1491_v4 = vsel %vm916_vm1, %v1490_v2, 0.0  ;;  %2810 = vmatprep.subr.bf16.mxu1 %v3466_v0 }
 0x6c6   : > { %1492 = vadd.xlane.f32.xlu0 %v1491_v4 }
 0x6c7   : > { %2801 = vmatmul.mubr.msk.bf16.vlgmr.msra.gmra.mrb[24].mxu1 %vm916_vm1, %v1589_v13 }
 0x6c8   : > { %2812 = vmatprep.mubr.msk.bf16.mxu1 %vm3467_vm0, %v3466_v0 }
 0x6c9   : > { %s4198_s10 = scalar_lea.hbm %s4357_s9, %s2665_s19 }
 0x753   : > { %v1493_v5 = vpop.xlane.xlu0 %1492 }
 0x754   : > { %v1495_v6 = vmul.f32 0.03125, %v1493_v5 }
 0x756   : > { %v1496_v7 = vsub.f32 %v1490_v2, %v1495_v6 }
 0x758   : > { %v1497_v8 = vmul.f32 %v1496_v7, %v1496_v7 }
 0x75a   : > { %v1498_v9 = vsel %vm916_vm1, %v1497_v8, 0.0 }
 0x75b   : > { %1499 = vadd.xlane.f32.xlu1 %v1498_v9 }
 0x79a   : > { %v1650_v27 = vpop.f32.mrb[24].mxu1 }
 0x79b   : > { %v1651_v28 = vadd.f32 %v2633_v26, %v1650_v27  ;;  %v2802_v29 = vpop.f32.mrb[25].mxu1 }
 0x79c   : > { %v1653_v30 = vpop.f32.mrb[26].mxu1 }
 0x79d   : > { %v1654_v31 = vadd.f32 %v2633_v26, %v1653_v30  ;;  %v2803_v32 = vpop.f32.mrb[27].mxu1 }
 0x79f   : > { %v1657_v33 = vpack.c.bf16 %v1654_v31, %v1651_v28 }
 0x7a1   : > { %1668 = vrot.lane.b32.xlu1 %v1657_v33, %s3471_s18  ;;  %1666 = vrot.lane.b32.xlu0 %v1657_v33, %s3469_s1  ;;  %v1676_v34 = vsel %vm970_vm2, %v1657_v33, 0 }
 0x7a5   : > { %1670 = vrot.lane.b32.xlu1 %v1657_v33, %s4343_s15 }
 0x7e8   : > { %v1500_v16 = vpop.xlane.xlu1 %1499 }
 0x7e9   : > { %v1501_v17 = vmul.f32 0.03125, %v1500_v16 }
 0x7eb   : > { %v1502_v18 = vadd.f32 1e-05, %v1501_v17 }
 0x7ed   : > { %3062 = vrsqrt.f32 %v1502_v18 }
 0x7f7   : > { %v3063_v19 = vpop.eup %3062 }
 0x7f8   : > { %v1504_v21 = vmul.f32 %v3063_v19, %v1496_v7 }
 0x7fa   : > { %v1512_v23 = vmul.f32 %v2627_v20, %v1504_v21 }
 0x7fc   : > { %v4069_v24 = vadd.f32 %v2628_v22, %v1512_v23 }
 0x7fe   : > { %v1521_v25 = vpack.c.bf16 %v4069_v24, %v4069_v24 }
 0x800   : > { %2793 = vmatmul.mubr.msk.bf16.vlgmr.msra.gmra.mrb[16].mxu0 %vm916_vm1, %v1521_v25 }
 0x801   : > { %2806 = vmatprep.mubr.msk.bf16.mxu0 %vm3467_vm0, %v3466_v0  ;;  %2805 = vmatpush3.bf16.xpose.msra.mxu0 %v1676_v34 }
 0x802   : > { %2816 = vmatprep.subr.bf16.mxu0 %v3466_v0 }
 0x813   : > { %v4081_v35 = vpop.permute.xlu0 %1666  ;;  %v1669_v44 = vpop.permute.xlu1 %1668 }
 0x814   : > { %v1722_v36 = vsel %vm970_vm2, %v4081_v35, 0  ;;  %v1768_v45 = vsel %vm970_vm2, %v1669_v44, 0 }
 0x815   : > { %2811 = vmatpush3.bf16.xpose.msra.mxu1 %v1722_v36 }
 0x816   : > { %2822 = vmatprep.subr.bf16.mxu1 %v3466_v0 }
 0x817   : > { %v1671_v46 = vpop.permute.xlu1 %1670 }
 0x818   : > { %v1814_v49 = vsel %vm970_vm2, %v1671_v46, 0 }
 0x8d3   : > { %v1582_v38 = vpop.f32.mrb[16].mxu0 }
 0x8d4   : > { %v1583_v39 = vadd.f32 %v2629_v37, %v1582_v38  ;;  %v2794_v40 = vpop.f32.mrb[17].mxu0 }
 0x8d5   : > { %v1585_v41 = vpop.f32.mrb[18].mxu0 }
 0x8d6   : > { %v1588_v42 = vpack.c.bf16 %v1583_v39, %v1583_v39  ;;  %v2795_v43 = vpop.f32.mrb[19].mxu0 }
 0x8d8   : > { %1663 = vrot.lane.b32.xlu1 %v1588_v42, %s4343_s15  ;;  %1659 = vrot.lane.b32.xlu0 %v1588_v42, %s3469_s1  ;;  %s4345_s1 = scalar_lea.vmem [#allocation2], %s3912_s22  ;;  %s2394_s15 = scalar_lea.sflag [#allocation4], %s3912_s22 }
 0x8d9   : > { %2807 = vmatmul.mubr.msk.bf16.vlgmr.msra.gmra.mrb[20].mxu0 %vm970_vm2, %v1588_v42  ;;  %v2641_v52 = vld [vmem:[%s4345_s1] ss:$0 sm:$0xff] }
 0x8da   : > { %2817 = vmatpush3.bf16.xpose.msra.mxu0 %v1768_v45  ;;  %2818 = vmatprep.mubr.msk.bf16.mxu0 %vm3467_vm0, %v3466_v0 }
 0x8db   : > { %2828 = vmatprep.subr.bf16.mxu0 %v3466_v0 }
 0x8dc   : > { %1910 = vrot.lane.b32.xlu1 %v1657_v33, %s4344_s0  ;;  %1661 = vrot.lane.b32.xlu0 %v1588_v42, %s3471_s18  ;;  %s4346_s18 = smov 8  }
 0x94a   : > { %v1664_v47 = vpop.permute.xlu1 %1663  ;;  %v1660_v48 = vpop.permute.xlu0 %1659 }
 0x94b   : > { %2813 = vmatmul.mubr.msk.bf16.vlgmr.msra.gmra.mrb[28].mxu1 %vm970_vm2, %v1660_v48  ;;  %v3038_v48 = vld [vmem:[#allocation14] sm:$0xff]  }
 0x94c   : > { %2823 = vmatpush3.bf16.xpose.msra.mxu1 %v1814_v49  ;;  %2824 = vmatprep.mubr.msk.bf16.mxu1 %vm3467_vm0, %v3466_v0 }
 0x94d   : > { %2834 = vmatprep.subr.bf16.mxu1 %v3466_v0 }
 0x94e   : > { %v1911_v50 = vpop.permute.xlu1 %1910  ;;  %v1662_v51 = vpop.permute.xlu0 %1661 }
 0x94f   : > { %2819 = vmatmul.mubr.msk.bf16.vlgmr.msra.gmra.mrb[24].mxu0 %vm970_vm2, %v1662_v51 }
 0x950   : > { %2829 = vmatpush3.bf16.msra.mxu0 %v1911_v50  ;;  %2830 = vmatprep.mubr.msk.bf16.mxu0 %vm3467_vm0, %v3466_v0  ;;  %v3039_v50 = vld [vmem:[#allocation14 + $0x8] sm:$0xff]  }
 0x951   : > { %2840 = vmatprep.subr.bf16.mxu0 %v3466_v0 }
 0x953   : > { %2825 = vmatmul.mubr.msk.bf16.vlgmr.msra.gmra.mrb[32].mxu1 %vm970_vm2, %v1664_v47 }
 0x954   : > { %2836 = vmatprep.mubr.msk.bf16.mxu1 %vm3467_vm0, %v3466_v0 }
 0x9ac   : > { %v1712_v53 = vpop.f32.mrb[20].mxu0 }
 0x9ad   : > { %v1862_v54 = vadd.f32 %v2641_v52, %v1712_v53  ;;  %v2808_v55 = vpop.f32.mrb[21].mxu0 }
 0x9ae   : > { %v1715_v56 = vpop.f32.mrb[22].mxu0 }
 0x9af   : > { %v2809_v57 = vpop.f32.mrb[23].mxu0  ;;  %v1866_v58 = vsel %vm1419_vm5, %v1862_v54, -inf }
 0x9b0   : > { %1867 = vmax.xlane.f32.xlu0 %v1866_v58 }
 0xa1e   : > { %v1758_v59 = vpop.f32.mrb[28].mxu1 }
 0xa1f   : > { %v1863_v60 = vadd.f32 %v2641_v52, %v1758_v59  ;;  %v2814_v61 = vpop.f32.mrb[29].mxu1 }
 0xa20   : > { %v1761_v62 = vpop.f32.mrb[30].mxu1 }
 0xa21   : > { %v2815_v63 = vpop.f32.mrb[31].mxu1  ;;  %v1869_v1 = vsel %vm1419_vm5, %v1863_v60, -inf }
 0xa22   : > { %v1804_v2 = vpop.f32.mrb[24].mxu0  ;;  %1870 = vmax.xlane.f32.xlu1 %v1869_v1 }
 0xa23   : > { %v1864_v4 = vadd.f32 %v2641_v52, %v1804_v2  ;;  %v2820_v5 = vpop.f32.mrb[25].mxu0 }
 0xa24   : > { %v1807_v6 = vpop.f32.mrb[26].mxu0 }
 0xa25   : > { %v2821_v7 = vpop.f32.mrb[27].mxu0  ;;  %v1872_v8 = vsel %vm1419_vm5, %v1864_v4, -inf }
 0xa26   : > { %1873 = vmax.xlane.f32.xlu0 %v1872_v8  ;;  %v1850_v9 = vpop.f32.mrb[32].mxu1 }
 0xa27   : > { %v1865_v10 = vadd.f32 %v2641_v52, %v1850_v9  ;;  %v2826_v3 = vpop.f32.mrb[33].mxu1 }
 0xa28   : > { %v1853_v11 = vpop.f32.mrb[34].mxu1 }
 0xa29   : > { %v2827_v12 = vpop.f32.mrb[35].mxu1  ;;  %v1875_v13 = vsel %vm1419_vm5, %v1865_v10, -inf }
 0xa2a   : > { %1876 = vmax.xlane.f32.xlu0 %v1875_v13 }
 0xa33   : > { %2002 = vrot.lane.b32.xlu1 %v1669_v44, %s4344_s0 }
 0xa37   : > { %2048 = vrot.lane.b32.xlu1 %v1671_v46, %s4344_s0 }
 0xa3d   : > { %v1868_v14 = vpop.xlane.xlu0 %1867 }
 0xa3e   : > { %v1878_v15 = vsub.f32 %v1862_v54, %v1868_v14 }
 0xa40   : > { %v1882_v16 = vmul.f32 1.442695, %v1878_v15  ;;  %1956 = vrot.lane.b32.xlu0 %v4081_v35, %s4344_s0  ;;  %s4350_s0 = sld [smem:[#allocation45_spill]] }
 0xa42   : > { %3064 = vpow2.f32 %v1882_v16  ;;  %v2646_v16 = vld [vmem:[#allocation16] ss:$0 sm:$0xff] }
 0xa4c   : > { %v3065_v17 = vpop.eup %3064 }
 0xa4d   : > { %v1906_v18 = vpack.c.bf16 %v3065_v17, %v3065_v17  ;;  %v1890_v41 = vsel %vm1419_vm5, %v3065_v17, 0.0 }
 0xa4f   : > { %2831 = vmatmul.mubr.msk.bf16.vlgmr.msra.gmra.mrb[28].mxu0 %vm1419_vm5, %v1906_v18 }
 0xa50   : > { %2842 = vmatprep.mubr.msk.bf16.mxu0 %vm3467_vm0, %v3466_v0 }
 0xaaf   : > { %v1871_v19 = vpop.xlane.xlu1 %1870 }
 0xab0   : > { %v1879_v20 = vsub.f32 %v1863_v60, %v1871_v19 }
 0xab2   : > { %v1884_v21 = vmul.f32 1.442695, %v1879_v20 }
 0xab3   : > { %v1874_v22 = vpop.xlane.xlu0 %1873  ;;  %v2003_v23 = vpop.permute.xlu1 %2002 }
 0xab4   : > { %3066 = vpow2.f32 %v1884_v21  ;;  %v1880_v25 = vsub.f32 %v1864_v4, %v1874_v22  ;;  %2841 = vmatpush3.bf16.msra.mxu0 %v2003_v23 }
 0xab5   : > { %2852 = vmatprep.subr.bf16.mxu0 %v3466_v0 }
 0xab6   : > { %v1886_v26 = vmul.f32 1.442695, %v1880_v25 }
 0xab7   : > { %v1877_v27 = vpop.xlane.xlu0 %1876  ;;  %v2049_v34 = vpop.permute.xlu1 %2048 }
 0xab8   : > { %3068 = vpow2.f32 %v1886_v26  ;;  %v1881_v28 = vsub.f32 %v1865_v10, %v1877_v27 }
 0xaba   : > { %v1888_v29 = vmul.f32 1.442695, %v1881_v28 }
 0xabb   : > { %v1957_v30 = vpop.permute.xlu0 %1956 }
 0xabc   : > { %3070 = vpow2.f32 %v1888_v29  ;;  %2835 = vmatpush3.bf16.msra.mxu1 %v1957_v30  ;;  %v3040_v30 = vld [vmem:[%s4349_s3] sm:$0xff]  }
 0xabd   : > { %2846 = vmatprep.subr.bf16.mxu1 %v3466_v0 }
 0xabe   : > { %v3067_v31 = vpop.eup %3066 }
 0xabf   : > { %v1893_v32 = vsel %vm1419_vm5, %v3067_v31, 0.0  ;;  %v1907_v33 = vpack.c.bf16 %v3067_v31, %v3067_v31  ;;  %v3041_v31 = vld [vmem:[%s4349_s3 + $0x8] sm:$0xff]  }
 0xac0   : > { %1894 = vadd.xlane.f32.xlu0 %v1893_v32  ;;  %v3043_v32 = vld [vmem:[%s4350_s0 + $0x8] sm:$0xff]  }
 0xac1   : > { %2837 = vmatmul.mubr.msk.bf16.vlgmr.msra.gmra.mrb[36].mxu1 %vm1419_vm5, %v1907_v33 }
 0xac2   : > { %v3069_v35 = vpop.eup %3068  ;;  %2847 = vmatpush3.bf16.msra.mxu1 %v2049_v34  ;;  %2848 = vmatprep.mubr.msk.bf16.mxu1 %vm3467_vm0, %v3466_v0 }
 0xac3   : > { %v1896_v36 = vsel %vm1419_vm5, %v3069_v35, 0.0  ;;  %v1908_v37 = vpack.c.bf16 %v3069_v35, %v3069_v35  ;;  %2860 = vmatprep.subr.bf16.mxu1 %v3466_v0 }
 0xac4   : > { %1897 = vadd.xlane.f32.xlu1 %v1896_v36 }
 0xac5   : > { %2843 = vmatmul.mubr.msk.bf16.vlgmr.msra.gmra.mrb[32].mxu0 %vm1419_vm5, %v1908_v37  ;;  %v2650_v37 = vld [vmem:[%s4351_s11] ss:$0 sm:$0xff]  ;;  %s4353_s11 = sld [smem:[#allocation44_spill]] }
 0xac6   : > { %v3071_v38 = vpop.eup %3070  ;;  %2856 = vmatprep.mubr.msk.bf16.mxu0 %vm3467_vm0, %v3466_v0  ;;  %2853 = vmatpush3.bf16.msra.mxu0 %v3038_v48 }
 0xac7   : > { %v1899_v39 = vsel %vm1419_vm5, %v3071_v38, 0.0  ;;  %v1909_v40 = vpack.c.bf16 %v3071_v38, %v3071_v38  ;;  %2854 = vmatprep.subr.bf16.mxu0 %v3466_v0 }
 0xac8   : > { %1900 = vadd.xlane.f32.xlu0 %v1899_v39  ;;  %v2651_v39 = vld [vmem:[%s4352_s8] ss:$0 sm:$0xff]  ;;  %s4354_s8 = sld [smem:[#allocation46_spill]] }
 0xac9   : > { %2849 = vmatmul.mubr.msk.bf16.vlgmr.msra.gmra.mrb[40].mxu1 %vm1419_vm5, %v1909_v40 }
 0xaca   : > { %2864 = vmatprep.mubr.msk.bf16.mxu1 %vm3467_vm0, %v3466_v0  ;;  %2855 = vmatpush3.bf16.msra.mxu0 %v3039_v50 }
 0xacb   : > { %2868 = vmatprep.subr.bf16.mxu0 %v3466_v0  ;;  %2861 = vmatpush3.bf16.msra.mxu1 %v3040_v30 }
 0xacc   : > { %1891 = vadd.xlane.f32.xlu0 %v1890_v41  ;;  %2862 = vmatprep.subr.bf16.mxu1 %v3466_v0 }
 0xacf   : > { %2863 = vmatpush3.bf16.msra.mxu1 %v3041_v31 }
 0xb22   : > { %v1950_v42 = vpop.f32.mrb[28].mxu0 }
 0xb23   : > { %v2832_v43 = vpop.f32.mrb[29].mxu0 }
 0xb24   : > { %v1953_v44 = vpop.f32.mrb[30].mxu0  ;;  %v3044_v43 = vld [vmem:[%s4350_s0 + $0x10] sm:$0xff]  }
 0xb25   : > { %v2833_v45 = vpop.f32.mrb[31].mxu0  ;;  %v3045_v44 = vld [vmem:[%s4350_s0 + $0x18] sm:$0xff]  }
 0xb26   : > { %v2652_v45 = vld [vmem:[%s4353_s11] ss:$0 sm:$0xff]  ;;  %s4356_s11 = sld [smem:[#allocation42_spill]] }
 0xb4d   : > { %v1895_v46 = vpop.xlane.xlu0 %1894 }
 0xb4e   : > { %3072 = vrcp.f32 %v1895_v46 }
 0xb51   : > { %v1898_v47 = vpop.xlane.xlu1 %1897 }
 0xb52   : > { %3074 = vrcp.f32 %v1898_v47 }
 0xb55   : > { %v1901_v49 = vpop.xlane.xlu0 %1900 }
 0xb56   : > { %3076 = vrcp.f32 %v1901_v49 }
 0xb58   : > { %v3073_v51 = vpop.eup %3072 }
 0xb59   : > { %v1892_v7 = vpop.xlane.xlu0 %1891 }
 0xb5a   : > { %3078 = vrcp.f32 %v1892_v7 }
 0xb5c   : > { %v3075_v57 = vpop.eup %3074 }
 0xb60   : > { %v3077_v63 = vpop.eup %3076 }
 0xb64   : > { %v3079_v8 = vpop.eup %3078 }
 0xb65   : > { %v2094_v10 = vmul.f32 %v3079_v8, %v1950_v42 }
 0xb94   : > { %v1996_v52 = vpop.f32.mrb[36].mxu1 }
 0xb95   : > { %v2095_v53 = vmul.f32 %v3073_v51, %v1996_v52  ;;  %v2838_v54 = vpop.f32.mrb[37].mxu1 }
 0xb96   : > { %v1999_v55 = vpop.f32.mrb[38].mxu1 }
 0xb97   : > { %2099 = vrot.lane.b32.xlu1 %v2095_v53, %s4346_s18  ;;  %v2839_v56 = vpop.f32.mrb[39].mxu1  ;;  %s4355_s18 = sld [smem:[#allocation41_spill]] }
 0xb98   : > { %v2042_v58 = vpop.f32.mrb[32].mxu0 }
 0xb99   : > { %v2096_v59 = vmul.f32 %v3075_v57, %v2042_v58  ;;  %v2844_v60 = vpop.f32.mrb[33].mxu0 }
 0xb9a   : > { %v2045_v61 = vpop.f32.mrb[34].mxu0 }
 0xb9b   : > { %v2845_v62 = vpop.f32.mrb[35].mxu0  ;;  %2103 = vrot.lane.b32.xlu0 %v2096_v59, %s4347_s27 }
 0xb9c   : > { %v2088_v1 = vpop.f32.mrb[40].mxu1 }
 0xb9d   : > { %v2097_v2 = vmul.f32 %v3077_v63, %v2088_v1  ;;  %v2850_v4 = vpop.f32.mrb[41].mxu1  ;;  %v2662_v7 = vld [vmem:[%s4355_s18] ss:$0 sm:$0xff]  ;;  %s3372_s18 = scalar_lea.vmem %s3371_s2, 256 }
 0xb9e   : > { %v2091_v5 = vpop.f32.mrb[42].mxu1 }
 0xb9f   : > { %2107 = vrot.lane.b32.xlu1 %v2097_v2, %s4348_s6  ;;  %v2851_v6 = vpop.f32.mrb[43].mxu1 }
 0xc09   : > { %v2100_v9 = vpop.permute.xlu1 %2099 }
 0xc0a   : > { %v2110_v11 = vsel %vm970_vm2, %v2094_v10, %v2100_v9  ;;  %v2663_v9 = vld [vmem:[%s4356_s11] ss:$0 sm:$0xff] }
 0xc0d   : > { %v2104_v3 = vpop.permute.xlu0 %2103 }
 0xc0e   : > { %v2111_v12 = vsel %vm1419_vm5, %v2110_v11, %v2104_v3 }
 0xc11   : > { %v2108_v13 = vpop.permute.xlu1 %2107 }
 0xc12   : > { %v2112_v14 = vsel %vm1421_vm6, %v2111_v12, %v2108_v13 }
 0xc13   : > { %v2113_v15 = vpack.c.bf16 %v2112_v14, %v2112_v14 }
 0xc15   : > { %2857 = vmatmul.mubr.msk.bf16.vlgmr.msra.gmra.mrb[36].mxu0 %vm916_vm1, %v2113_v15 }
 0xc16   : > { %2876 = vmatprep.mubr.msk.bf16.mxu0 %vm3467_vm0, %v3466_v0 }
 0xce8   : > { %v2174_v17 = vpop.f32.mrb[36].mxu0 }
 0xce9   : > { %v2175_v18 = vadd.f32 %v2646_v16, %v2174_v17  ;;  %v2858_v19 = vpop.f32.mrb[37].mxu0 }
 0xcea   : > { %v2177_v20 = vpop.f32.mrb[38].mxu0 }
 0xceb   : > { %v2859_v21 = vpop.f32.mrb[39].mxu0  ;;  %v2180_v22 = vadd.f32 %v2175_v18, %v4069_v24  ;;  %v3042_v24 = vld [vmem:[%s4350_s0] sm:$0xff]  }
 0xcec   : > { %2869 = vmatpush3.bf16.msra.mxu0 %v3042_v24 }
 0xced   : > { %v2181_v23 = vsel %vm916_vm1, %v2180_v22, 0.0  ;;  %2870 = vmatprep.subr.bf16.mxu0 %v3466_v0 }
 0xcee   : > { %2182 = vadd.xlane.f32.xlu1 %v2181_v23 }
 0xcf0   : > { %2871 = vmatpush3.bf16.msra.mxu0 %v3043_v32 }
 0xcf1   : > { %2872 = vmatprep.subr.bf16.mxu0 %v3466_v0 }
 0xcf4   : > { %2873 = vmatpush3.bf16.msra.mxu0 %v3044_v43 }
 0xcf5   : > { %2874 = vmatprep.subr.bf16.mxu0 %v3466_v0  ;;  %v2656_v0 = vld [vmem:[%s4354_s8] ss:$0 sm:$0xff]  ;;  %s2407_s8 = sshll.u32 %s871_s23, 4  ;;  %s4200_s8 = int_to_ptr.vmem [resolvable:$true] %s2407_s8 }
 0xcf6   : > { %s3366_s1 = scalar_lea.vmem %s4200_s8, 128  ;;  %p3373_p10 = scmp.lt.s32.totalorder %s4200_s8, %s3371_s2 }
 0xcf7   : > { %p3367_p0 = scmp.ne.s32.totalorder %s4200_s8, %s3366_s1  ;;  %p3374_p11 = scmp.lt.s32.totalorder %s3372_s18, %s3366_s1 }
 0xcf8   : > { %2875 = vmatpush3.bf16.msra.mxu0 %v3045_v44 }
 0xcf9   : > { %p3368_p3 = pnand %p3367_p0, %p4358_p2  ;;  %p3375_p8 = por %p3374_p11, %p3373_p10 }
 0xcfb   : > { %p3369_p6 = pneg %p3368_p3 }
 0xcfd   : > { %p3376_p5 = pnand %p3375_p8, %p3369_p6 }
 0xd7b   : > { %v2183_v25 = vpop.xlane.xlu1 %2182 }
 0xd7c   : > { %v2184_v26 = vmul.f32 0.03125, %v2183_v25 }
 0xd7e   : > { %v2185_v27 = vsub.f32 %v2180_v22, %v2184_v26 }
 0xd80   : > { %v2186_v28 = vmul.f32 %v2185_v27, %v2185_v27 }
 0xd82   : > { %v2187_v29 = vsel %vm916_vm1, %v2186_v28, 0.0 }
 0xd83   : > { %2188 = vadd.xlane.f32.xlu0 %v2187_v29 }
 0xe10   : > { %v2189_v33 = vpop.xlane.xlu0 %2188 }
 0xe11   : > { %v2190_v34 = vmul.f32 0.03125, %v2189_v33 }
 0xe13   : > { %v2191_v35 = vadd.f32 1e-05, %v2190_v34 }
 0xe15   : > { %3080 = vrsqrt.f32 %v2191_v35 }
 0xe1f   : > { %v3081_v36 = vpop.eup %3080 }
 0xe20   : > { %v2193_v38 = vmul.f32 %v3081_v36, %v2185_v27 }
 0xe22   : > { %v2201_v40 = vmul.f32 %v2650_v37, %v2193_v38 }
 0xe24   : > { %v2209_v41 = vadd.f32 %v2651_v39, %v2201_v40 }
 0xe26   : > { %v2210_v42 = vpack.c.bf16 %v2209_v41, %v2209_v41 }
 0xe28   : > { %2865 = vmatmul.mubr.msk.bf16.vlgmr.msra.gmra.mrb[44].mxu1 %vm916_vm1, %v2210_v42 }
 0xefb   : > { %v2271_v46 = vpop.f32.mrb[44].mxu1 }
 0xefc   : > { %v2272_v47 = vadd.f32 %v2652_v45, %v2271_v46  ;;  %v2866_v48 = vpop.f32.mrb[45].mxu1 }
 0xefd   : > { %v2274_v49 = vpop.f32.mrb[46].mxu1 }
 0xefe   : > { %v2277_v50 = vmax.f32 %v2272_v47, 0.0  ;;  %v2867_v51 = vpop.f32.mrb[47].mxu1 }
 0xf00   : > { %v2278_v52 = vpack.c.bf16 %v2277_v50, %v2277_v50 }
 0xf02   : > { %2877 = vmatmul.mubr.msk.bf16.vlgmr.msra.gmra.mrb[40].mxu0 %vm2318_vm7, %v2278_v52 }
 0xfd5   : > { %v2356_v53 = vpop.f32.mrb[40].mxu0 }
 0xfd6   : > { %v2357_v54 = vadd.f32 %v2656_v0, %v2356_v53  ;;  %v2878_v55 = vpop.f32.mrb[41].mxu0 }
 0xfd7   : > { %v2359_v56 = vpop.f32.mrb[42].mxu0 }
 0xfd8   : > { %v2879_v57 = vpop.f32.mrb[43].mxu0  ;;  %v2362_v58 = vadd.f32 %v2357_v54, %v2209_v41 }
 0xfda   : > { %v2363_v59 = vsel %vm916_vm1, %v2362_v58, 0.0 }
 0xfdb   : > { %2364 = vadd.xlane.f32.xlu0 %v2363_v59 }
0x1068   : > { %v2365_v60 = vpop.xlane.xlu0 %2364 }
0x1069   : > { %v2366_v61 = vmul.f32 0.03125, %v2365_v60 }
0x106b   : > { %v2367_v62 = vsub.f32 %v2362_v58, %v2366_v61 }
0x106d   : > { %v2368_v63 = vmul.f32 %v2367_v62, %v2367_v62 }
0x106f   : > { %v2369_v1 = vsel %vm916_vm1, %v2368_v63, 0.0 }
0x1070   : > { %2370 = vadd.xlane.f32.xlu1 %v2369_v1 }
0x10fd   : > { %v2371_v2 = vpop.xlane.xlu1 %2370 }
0x10fe   : > { %v2372_v4 = vmul.f32 0.03125, %v2371_v2 }
0x1100   : > { %v2373_v5 = vadd.f32 1e-05, %v2372_v4 }
0x1102   : > { %3082 = vrsqrt.f32 %v2373_v5 }
0x110c   : > { %v3083_v6 = vpop.eup %3082 }
0x110d   : > { %v2375_v8 = vmul.f32 %v3083_v6, %v2367_v62 }
0x110f   : > { %v2383_v10 = vmul.f32 %v2662_v7, %v2375_v8 }
0x1111   : > { %v2391_v3 = vadd.f32 %v2663_v9, %v2383_v10 }
0x1113   : > { %2392 = vst.msk [vmem:[%s871_s23] sm:$0xff] %vm916_vm1, %v2391_v3 }
0x1114   : > { %3379 = shalt.err (!%p3376_p5)
}
0x1115   : > { %s3380_s22 = scalar_lea.hbm %s4198_s10, 128  ;;  %s3384_s27 = scalar_lea.hbm %s4357_s9, 256 }
0x1116   : > { %p3381_p9 = scmp.ne.s32.totalorder %s4198_s10, %s3380_s22  ;;  %p3385_p12 = scmp.lt.u32.totalorder %s4198_s10, %s4357_s9 }
0x1117   : > { %p3386_p1 = scmp.lt.u32.totalorder %s3384_s27, %s3380_s22  ;;  %p3388_p0 = scmp.lt.u32.totalorder %s3380_s22, %s4198_s10 }
0x1118   : > { %p3382_p7 = pnand %p3381_p9, %p4358_p2 }
0x1119   : > { %p3387_p13 = por %p3386_p1, %p3385_p12 }
0x111a   : > { %p3383_p4 = pneg %p3382_p7 }
0x111b   : > { %p3389_p3 = por %p3388_p0, %p3387_p13 }
0x111d   : > { %p3390_p6 = pnand %p3389_p3, %p3383_p4 }
0x111f   : > { %3393 = shalt.err (!%p3390_p6)
}
0x1120   : > { %2918 = dma.vmem_to_hbm [thread:$0]  (%p4358_p2), %s4200_s8, 128, %s4198_s10, %s2394_s15  }
0x1121 PF: > { %s2419_s19 = sand.u32 1, %s3440_s4   ;;  %p4359_p10 = scmp.ne.s32.totalorder %s4325_s21, 0 }
0x1122   : > { %p4360_p11 = scmp.ge.s32.totalorder %s3452_s25, 2  ;;  %s2420_s23 = scalar_lea.sflag [#allocation4], %s2419_s19 }
0x1124   : > { %p2953_p8 = pnand %p4360_p11, %p4359_p10 }
0x1126   : > { %3435 = dma.done.wait (!%p2953_p8), %s2420_s23, 128  }
0x1127   : > { %3437 = vsyncadd (!%p2953_p8), %s2420_s23, 4294967168  ;;  %p41_p5 = scmp.ge.s32.totalorder %s3842_s7, 4   ;;  %s4361_s4 = smov %s3444_s30 }
0x1128   : > { %s4362_s30 = smov %s3448_s24  ;;  %s4363_s24 = smov %s3854_s28 }
0x1129   : > { %s4364_s25 = smov %s3842_s7  ;;  %43 = sbr.rel (!%p41_p5) target bundleno = 32 (0x20), region = 199 }
0x1130   :  { %2425 = vsyncpa [#allocation3], 1 }
0x1131   :  { %2427 = vsyncpa [#allocation3 + $0x1], 1 }
0x1132   :  { %2428 = vsyncpa [#allocation6], 1 }
0x1133   :  { %2429 = vsyncpa [#allocation9], 1 }
0x1134   :  { %2430 = vsyncpa [#allocation12], 1 }
0x1135   :  { %2431 = vsyncpa [#allocation15], 1 }
0x1136   :  { %2432 = vsyncpa [#allocation18], 1 }
0x1137   :  { %2433 = vsyncpa [#allocation4], 1 }
0x1138   :  { %2435 = vsyncpa [#allocation4 + $0x1], 1 }

</bundles_post_ra>
